<compile_context>
chip_gen: v7x
topology: tpu7x:2x2x1
jax: 0.10.0
libtpu: 0.0.40
codegen_flags: <defaults>
</compile_context>

<pallas_src>
import functools

import numpy as np
import jax
import jax.numpy as jnp
from jax import lax
from jax.experimental import pallas as pl
from jax.experimental.pallas import tpu as pltpu


# ----------------------------------------------------------------------------
# Host-side parameter construction (mirrors _fspecial_gauss_1d / same_padding /
# F.avg_pool2d(kernel=2, stride=2, padding=s%2, count_include_pad=True)).
# ----------------------------------------------------------------------------
def _fspecial_gauss_1d(size, sigma):
    coords = np.arange(size, dtype=np.float32) - size // 2
    g = np.exp(-(coords ** 2) / (2.0 * sigma ** 2))
    return (g / g.sum()).astype(np.float32)


def _blur_matrix(s, win):
    """Right-multiply matrix M (s,s): (x @ M)[..., j] = sum_k win[k]*x[..., j+k-pad]
    (SAME zero padding, stride 1).  If s < win_size the reference skips the blur
    along that axis -> identity."""
    size = win.shape[0]
    if s < size:
        return np.eye(s, dtype=np.float32)
    pad = (size - 1) // 2                      # same_padding(kernel_size, dilation=1)
    m = np.zeros((s, s), dtype=np.float32)
    for j in range(s):
        for k in range(size):
            src = j + k - pad
            if 0 <= src < s:
                m[src, j] = win[k]
    return m


def _pool_matrix(s):
    """Right-multiply matrix (s, s2) implementing avg_pool1d(kernel=2, stride=2,
    padding=s%2, count_include_pad=True) along the last axis."""
    pad = s % 2
    s2 = (s + pad) // 2
    m = np.zeros((s, s2), dtype=np.float32)
    for j in range(s2):
        for k in range(2):
            src = 2 * j + k - pad
            if 0 <= src < s:
                m[src, j] = 0.5
    return m


def _round_up(x, m):
    return -(-x // m) * m


def _vmem_plan():
    """Explicit scoped-VMEM limit + planning budget: ~64 MiB on v5e/v6e
    (128 MiB physical), ~32 MiB on v7x (64 MiB per TensorCore)."""
    phys = 64 << 20
    try:
        info = pltpu.get_tpu_info()
        phys = int(getattr(info, "vmem_capacity_bytes", phys)) or phys
    except Exception:
        pass
    limit = phys // 2
    budget = (limit * 3) // 4          # headroom for compiler-managed temporaries
    return limit, budget


def _plan_level(nc, h, w, in_itemsize, vmem_budget):
    """Pick P (planes per grid step, a divisor of nc -> no plane padding) and HC
    (output-row chunk of the fused H-pass/SSIM epilogue) from (8/16,128)-padded
    VMEM footprints, keeping enough grid steps for pipelining / megacore."""
    wp = _round_up(w, 128)                       # lane padding
    hp = _round_up(h, 16)                        # sublane padding (bf16 packs 16)
    h2 = max(1, (h + h % 2) // 2)
    w2 = max(1, (w + w % 2) // 2)
    h2p = _round_up(h2, 16)
    w2p = _round_up(w2, 128)
    # grid-invariant blur/pool matrices + slack for compiler temporaries
    fixed = 2 * (hp * hp + wp * wp + h2p * hp + wp * w2p) + (2 << 20)

    def best_hc(p):
        # keep the ~10 chunk-resident f32 intermediates around ~6 MiB
        target = max(8, (6 << 20) // (10 * 4 * p * wp))
        hc = h
        for d in range(8, min(h, target) + 1, 8):
            if h % d == 0:
                hc = d                            # largest mult-of-8 divisor <= target
        return hc

    def footprint(p, hc):
        per_plane = (
            2 * 2 * hp * wp * in_itemsize                   # double-buffered x/y blocks
            + (2 * hp * wp * 2 if in_itemsize > 2 else 0)   # in-kernel bf16 casts (lvl 0)
            + 5 * hp * wp * 2                               # five bf16 W-pass intermediates
            + 2 * 2 * h2p * w2p * 2                         # double-buffered pooled outputs
            + h2p * hp * 2                                  # pool-H matrix broadcast
        )
        chunk = 10 * hc * wp * 4 + hc * hp * 2              # f32 temps + blur-H broadcast
        return fixed + p * (per_plane + chunk)

    min_steps = 1 if nc == 1 else (2 if nc < 8 else 4)      # pipeline / megacore steps
    p_cap = max(1, nc // min_steps)
    p_pick, hc_pick = 1, best_hc(1)
    for d in sorted((d for d in range(1, nc + 1) if nc % d == 0 and d <= p_cap),
                    reverse=True):
        hc = best_hc(d)
        if footprint(d, hc) <= vmem_budget:
            p_pick, hc_pick = d, hc
            break
    # TODO(synk): if even P=1 overflows (very large planes) an H-halo tiling of
    #             the separable blur is needed; not implemented.
    return p_pick, hc_pick


# ----------------------------------------------------------------------------
# Pallas kernel: one SSIM level for P planes per grid step (+ fused 2x pooling)
# ----------------------------------------------------------------------------
def _ssim_level_kernel(*refs, P, H, W, HC, H2, W2, C1, C2, do_pool):
    if do_pool:
        (x_ref, y_ref, mh_ref, mw_ref, ph_ref, pw_ref,
         ssim_ref, cs_ref, px_ref, py_ref) = refs
    else:
        x_ref, y_ref, mh_ref, mw_ref, ssim_ref, cs_ref = refs

    f32, bf16 = jnp.float32, jnp.bfloat16

    # In-kernel bf16 cast: level 0 arrives as f32 (no wrapper cast pass, half the
    # level-0 HBM re-read); later levels are already bf16 (no-op).
    xb = x_ref[...].astype(bf16)                 # (P, H, W)
    yb = y_ref[...].astype(bf16)
    mw = mw_ref[...]                             # (W, W) bf16, right-multiply

    def wpass(t):                                # (P,H,W) bf16 -> (P,H,W) bf16
        s = jnp.dot(t.reshape(P * H, W), mw, preferred_element_type=f32)
        return s.reshape(P, H, W).astype(bf16)

    # Only these five full-size intermediates stay live across the epilogue.
    sx, sy = wpass(xb), wpass(yb)
    sxx, syy, sxy = wpass(xb * xb), wpass(yb * yb), wpass(xb * yb)

    n_chunks = H // HC
    bdims = (((2,), (1,)), ((0,), (0,)))         # (P,HC,H) x (P,H,W) -> (P,HC,W)
    inv_hw = 1.0 / float(H * W)

    def chunk_body(c, carry):
        ssim_acc, cs_acc = carry
        # Per-chunk broadcast of HC rows of the H-blur matrix (never a full
        # (P,H,H) slab).  TODO(synk): un-batched (H,P*W) contraction would need a
        # sublane->lane relayout; batched form already fills MXU N for W >= 256.
        mh_c = jnp.broadcast_to(mh_ref[c], (P, HC, H))

        def hpass(s):
            return lax.dot_general(mh_c, s, bdims, preferred_element_type=f32)

        mu1, mu2 = hpass(sx), hpass(sy)
        e_xx, e_yy, e_xy = hpass(sxx), hpass(syy), hpass(sxy)

        mu1_sq, mu2_sq, mu1_mu2 = mu1 * mu1, mu2 * mu2, mu1 * mu2
        s1_sq = e_xx - mu1_sq
        s2_sq = e_yy - mu2_sq
        s12 = e_xy - mu1_mu2

        lum = (2.0 * mu1_mu2 + C1) * pl.reciprocal(mu1_sq + mu2_sq + C1, approx=True)
        inv_den = pl.reciprocal(s1_sq + s2_sq + C2, approx=True)
        # luminance * contrast * structure with C3 = C2/2 collapses exactly to:
        ssim_map = lum * (2.0 * s12 + C2) * inv_den
        # cs keeps the reference "contrast" term; clamp variances so the sqrt
        # cannot NaN on negative float residues (torch would propagate NaN here).
        s1s2 = jnp.sqrt(jnp.maximum(s1_sq, 0.0) * jnp.maximum(s2_sq, 0.0))
        cs_map = (2.0 * s1s2 + C2) * inv_den

        def psum(m):                             # (P,HC,W) -> (P,1,1)
            return jnp.sum(jnp.sum(m, axis=2, keepdims=True), axis=1, keepdims=True)

        return ssim_acc + psum(ssim_map), cs_acc + psum(cs_map)

    zero = jnp.zeros((P, 1, 1), f32)
    if n_chunks == 1:
        ssim_sum, cs_sum = chunk_body(0, (zero, zero))
    else:
        ssim_sum, cs_sum = lax.fori_loop(0, n_chunks, chunk_body, (zero, zero))

    ssim_ref[...] = ssim_sum * inv_hw
    cs_ref[...] = cs_sum * inv_hw

    if do_pool:
        # Fused 2x avg-pool of X, Y feeding the next level (odd sizes /
        # left-zero-pad / count_include_pad fall out of the matrices).
        pw = pw_ref[...]                                     # (W, W2) bf16
        phb = jnp.broadcast_to(ph_ref[...], (P, H2, H))      # hoisted, used twice

        def pool2(t):                            # (P,H,W) bf16 -> (P,H2,W2) bf16
            s = jnp.dot(t.reshape(P * H, W), pw, preferred_element_type=f32)
            s = s.reshape(P, H, W2).astype(bf16)
            r = lax.dot_general(phb, s, (((2,), (1,)), ((0,), (0,))),
                                preferred_element_type=f32)
            return r.astype(bf16)

        px_ref[...] = pool2(xb)
        py_ref[...] = pool2(yb)


def _ssim_level(xp, yp, win_1d, data_range, K, *, pool, vmem_limit, vmem_budget):
    """One MS-SSIM level.  xp, yp: (NC, H, W) planes (f32 at level 0, bf16 after).
    Returns (ssim (NC,), cs (NC,), pooled_x, pooled_y)."""
    NC, H, W = xp.shape
    in_itemsize = jnp.dtype(xp.dtype).itemsize
    P, HC = _plan_level(NC, H, W, in_itemsize, vmem_budget)
    G = NC // P
    n_chunks = H // HC
    K1, K2 = K
    C1 = float((K1 * data_range) ** 2)
    C2 = float((K2 * data_range) ** 2)

    mh = jnp.asarray(_blur_matrix(H, win_1d).T.reshape(n_chunks, HC, H),
                     dtype=jnp.bfloat16)                              # left-multiply rows
    mw = jnp.asarray(_blur_matrix(W, win_1d), dtype=jnp.bfloat16)     # right-multiply

    in_arrays = [xp, yp, mh, mw]
    in_specs = [
        pl.BlockSpec((P, H, W), lambda i: (i, 0, 0)),
        pl.BlockSpec((P, H, W), lambda i: (i, 0, 0)),
        pl.BlockSpec((n_chunks, HC, H), lambda i: (0, 0, 0)),
        pl.BlockSpec((W, W), lambda i: (0, 0)),
    ]
    out_shape = [jax.ShapeDtypeStruct((NC, 1, 1), jnp.float32),
                 jax.ShapeDtypeStruct((NC, 1, 1), jnp.float32)]
    out_specs = [pl.BlockSpec((P, 1, 1), lambda i: (i, 0, 0)),
                 pl.BlockSpec((P, 1, 1), lambda i: (i, 0, 0))]

    H2 = W2 = 1
    if pool:
        ph_np = _pool_matrix(H)
        pw_np = _pool_matrix(W)
        H2, W2 = ph_np.shape[1], pw_np.shape[1]
        ph = jnp.asarray(ph_np.T, dtype=jnp.bfloat16)     # (H2, H) left-multiply
        pw = jnp.asarray(pw_np, dtype=jnp.bfloat16)       # (W, W2) right-multiply
        in_arrays += [ph, pw]
        in_specs += [pl.BlockSpec((H2, H), lambda i: (0, 0)),
                     pl.BlockSpec((W, W2), lambda i: (0, 0))]
        out_shape += [jax.ShapeDtypeStruct((NC, H2, W2), jnp.bfloat16),
                      jax.ShapeDtypeStruct((NC, H2, W2), jnp.bfloat16)]
        out_specs += [pl.BlockSpec((P, H2, W2), lambda i: (i, 0, 0)),
                      pl.BlockSpec((P, H2, W2), lambda i: (i, 0, 0))]

    kernel = functools.partial(_ssim_level_kernel, P=P, H=H, W=W, HC=HC,
                               H2=H2, W2=W2, C1=C1, C2=C2, do_pool=pool)

    outs = pl.pallas_call(
        kernel,
        out_shape=tuple(out_shape),
        grid=(G,),
        in_specs=in_specs,
        out_specs=tuple(out_specs),
        compiler_params=pltpu.CompilerParams(
            dimension_semantics=("parallel",),     # planes independent -> megacore
            vmem_limit_bytes=vmem_limit),
    )(*in_arrays)

    if pool:
        ssim_nc, cs_nc, px, py = outs
        return ssim_nc.reshape(NC), cs_nc.reshape(NC), px, py
    ssim_nc, cs_nc = outs
    return ssim_nc.reshape(NC), cs_nc.reshape(NC), None, None


# ----------------------------------------------------------------------------
# Multi-scale glue
# ----------------------------------------------------------------------------
def ms_ssim_pallas(X, Y, *, data_range=255.0, size_average=True, win_size=11,
                   win_sigma=1.5, win=None, weights=None, K=(0.01, 0.03)):
    if X.shape != Y.shape:
        raise ValueError("Input images should have the same dimensions.")
    for d in range(X.ndim - 1, 1, -1):        # squeeze trailing singleton dims
        if X.shape[d] == 1:
            X = jnp.squeeze(X, axis=d)
            Y = jnp.squeeze(Y, axis=d)
    if X.ndim != 4:
        raise ValueError(f"Only 4-d (N,C,H,W) inputs supported here, got {X.shape}")

    if win is not None:
        w_np = np.asarray(win, dtype=np.float32)
        win_size = int(w_np.shape[-1])
        win_1d = w_np.reshape(-1, win_size)[0]  # per-channel windows are identical
    else:
        win_1d = None
    if win_size % 2 != 1:
        raise ValueError("Window size should be odd.")
    smaller_side = min(X.shape[-2:])
    assert smaller_side > (win_size - 1) * 2 ** 4, (
        "Image size should be larger than %d due to the 4 downsamplings in ms-ssim"
        % ((win_size - 1) * 2 ** 4))

    if weights is None:
        weights = [0.0448, 0.2856, 0.3001, 0.2363, 0.1333]
    weights = np.asarray(weights, dtype=np.float32)
    if win_1d is None:
        win_1d = _fspecial_gauss_1d(win_size, win_sigma)

    N, C, H, W = X.shape
    NC = N * C
    # Level-0 planes stay in the input dtype (f32) -- the bf16 cast happens
    # inside the kernel, saving a wrapper-side HBM pass; no plane padding since
    # the per-step plane count always divides NC.
    xp = X.reshape(NC, H, W)
    yp = Y.reshape(NC, H, W)

    vmem_limit, vmem_budget = _vmem_plan()
    levels = int(weights.shape[0])
    mcs = []
    ssim_nc = None
    for i in range(levels):
        last = (i == levels - 1)
        ssim_nc, cs_nc, xp_next, yp_next = _ssim_level(
            xp, yp, win_1d, float(data_range), K,
            pool=not last, vmem_limit=vmem_limit, vmem_budget=vmem_budget)
        if not last:
            mcs.append(jax.nn.relu(cs_nc).reshape(N, C))
            xp, yp = xp_next, yp_next   # pooled bf16 planes straight out of the kernel

    ssim_pc = jax.nn.relu(ssim_nc).reshape(N, C)
    mcs_and_ssim = jnp.stack(mcs + [ssim_pc], axis=0)                     # (L, N, C)
    wts = jnp.asarray(weights).reshape(-1, 1, 1)
    ms_val = jnp.prod(mcs_and_ssim ** wts, axis=0)                        # (N, C)
    if size_average:
        return ms_val.mean()
    return ms_val.mean(axis=1)


class MS_SSIM_Pallas:
    """Equivalent of the torch MS_SSIM module (forward pass only)."""

    def __init__(self, data_range=255.0, size_average=True, win_size=11,
                 win_sigma=1.5, channels=3, spatial_dims=2, weights=None,
                 K=(0.01, 0.03)):
        assert spatial_dims == 2, "only 2-D spatial dims implemented"
        self.win_size = win_size
        # torch stores the window repeated over channels ([C,1,1,win]); the
        # per-channel windows are identical, so one 1-D window suffices.
        self.win = _fspecial_gauss_1d(win_size, win_sigma)
        self.size_average = size_average
        self.data_range = data_range
        self.weights = weights
        self.K = K
        self.channels = channels

    def __call__(self, X, Y):
        return ms_ssim_pallas(X, Y, data_range=self.data_range,
                              size_average=self.size_average,
                              win=self.win, weights=self.weights, K=self.K)


if __name__ == "__main__":
    key = jax.random.PRNGKey(0)
    k1, k2 = jax.random.split(key)
    # Small demo: batch=2, channels=3, spatial=48x48; win_size=3 satisfies the
    # MS-SSIM constraint smaller_side > (win_size - 1) * 16 = 32.
    N, C, H, W = 2, 3, 48, 48
    X = jax.random.uniform(k1, (N, C, H, W), dtype=jnp.float32)
    Y = jax.random.uniform(k2, (N, C, H, W), dtype=jnp.float32)

    model = MS_SSIM_Pallas(data_range=1.0, size_average=True, win_size=3,
                           win_sigma=1.5, channels=C, spatial_dims=2)
    out = jax.block_until_ready(model(X, Y))
    assert out.shape == (), out.shape
    assert bool(jnp.isfinite(out)), out
    print("KERNEL_OK")
</pallas_src>

<mosaic_0001>
module attributes {stable_mosaic.version = 11 : i64} {
  func.func @_ssim_level_kernel(%arg0: i32, %arg1: memref<3x48x48xf32, #tpu.memory_space<vmem>>, %arg2: memref<3x48x48xf32, #tpu.memory_space<vmem>>, %arg3: memref<1x48x48xbf16, #tpu.memory_space<vmem>>, %arg4: memref<48x48xbf16, #tpu.memory_space<vmem>>, %arg5: memref<24x48xbf16, #tpu.memory_space<vmem>>, %arg6: memref<48x24xbf16, #tpu.memory_space<vmem>>, %arg7: memref<3x1x1xf32, #tpu.memory_space<vmem>>, %arg8: memref<3x1x1xf32, #tpu.memory_space<vmem>>, %arg9: memref<3x24x24xbf16, #tpu.memory_space<vmem>>, %arg10: memref<3x24x24xbf16, #tpu.memory_space<vmem>>) attributes {dimension_semantics = [#tpu.dimension_semantics<parallel>], iteration_bounds = array<i64: 2>, scalar_prefetch = 0 : i64, scratch_operands = 0 : i64, tpu.core_type = #tpu.core_type<tc>, window_params = [{transform_indices = @transform_0, window_bounds = array<i64: 3, 48, 48>}, {transform_indices = @transform_1, window_bounds = array<i64: 3, 48, 48>}, {pipeline_mode = #tpu.pipeline_mode<synchronous>, transform_indices = @transform_2, window_bounds = array<i64: 1, 48, 48>}, {pipeline_mode = #tpu.pipeline_mode<synchronous>, transform_indices = @transform_3, window_bounds = array<i64: 48, 48>}, {pipeline_mode = #tpu.pipeline_mode<synchronous>, transform_indices = @transform_4, window_bounds = array<i64: 24, 48>}, {pipeline_mode = #tpu.pipeline_mode<synchronous>, transform_indices = @transform_5, window_bounds = array<i64: 48, 24>}, {transform_indices = @transform_6, window_bounds = array<i64: 3, 1, 1>}, {transform_indices = @transform_7, window_bounds = array<i64: 3, 1, 1>}, {transform_indices = @transform_8, window_bounds = array<i64: 3, 24, 24>}, {transform_indices = @transform_9, window_bounds = array<i64: 3, 24, 24>}]} {
    %c0 = arith.constant 0 : index
    %c0_0 = arith.constant 0 : index
    %c0_1 = arith.constant 0 : index
    %0 = vector.load %arg1[%c0, %c0_0, %c0_1] : memref<3x48x48xf32, #tpu.memory_space<vmem>>, vector<3x48x48xf32>
    %1 = arith.truncf %0 : vector<3x48x48xf32> to vector<3x48x48xbf16>
    %c0_2 = arith.constant 0 : index
    %c0_3 = arith.constant 0 : index
    %c0_4 = arith.constant 0 : index
    %2 = vector.load %arg2[%c0_2, %c0_3, %c0_4] : memref<3x48x48xf32, #tpu.memory_space<vmem>>, vector<3x48x48xf32>
    %3 = arith.truncf %2 : vector<3x48x48xf32> to vector<3x48x48xbf16>
    %c0_5 = arith.constant 0 : index
    %c0_6 = arith.constant 0 : index
    %4 = vector.load %arg4[%c0_5, %c0_6] : memref<48x48xbf16, #tpu.memory_space<vmem>>, vector<48x48xbf16>
    %5 = vector.shape_cast %1 : vector<3x48x48xbf16> to vector<144x48xbf16>
    %cst = arith.constant dense<0.000000e+00> : vector<144x48xf32>
    %6 = tpu.matmul %5, %4, %cst {dimension_numbers = #tpu.dot_dimension_numbers<[1], [0], [0], [1], [0, 0, 1, 1], [], []>} : vector<144x48xbf16>, vector<48x48xbf16>, vector<144x48xf32> -> vector<144x48xf32>
    %7 = vector.shape_cast %6 : vector<144x48xf32> to vector<3x48x48xf32>
    %8 = arith.truncf %7 : vector<3x48x48xf32> to vector<3x48x48xbf16>
    %9 = vector.shape_cast %3 : vector<3x48x48xbf16> to vector<144x48xbf16>
    %cst_7 = arith.constant dense<0.000000e+00> : vector<144x48xf32>
    %10 = tpu.matmul %9, %4, %cst_7 {dimension_numbers = #tpu.dot_dimension_numbers<[1], [0], [0], [1], [0, 0, 1, 1], [], []>} : vector<144x48xbf16>, vector<48x48xbf16>, vector<144x48xf32> -> vector<144x48xf32>
    %11 = vector.shape_cast %10 : vector<144x48xf32> to vector<3x48x48xf32>
    %12 = arith.truncf %11 : vector<3x48x48xf32> to vector<3x48x48xbf16>
    %13 = arith.mulf %1, %1 : vector<3x48x48xbf16>
    %14 = vector.shape_cast %13 : vector<3x48x48xbf16> to vector<144x48xbf16>
    %cst_8 = arith.constant dense<0.000000e+00> : vector<144x48xf32>
    %15 = tpu.matmul %14, %4, %cst_8 {dimension_numbers = #tpu.dot_dimension_numbers<[1], [0], [0], [1], [0, 0, 1, 1], [], []>} : vector<144x48xbf16>, vector<48x48xbf16>, vector<144x48xf32> -> vector<144x48xf32>
    %16 = vector.shape_cast %15 : vector<144x48xf32> to vector<3x48x48xf32>
    %17 = arith.truncf %16 : vector<3x48x48xf32> to vector<3x48x48xbf16>
    %18 = arith.mulf %3, %3 : vector<3x48x48xbf16>
    %19 = vector.shape_cast %18 : vector<3x48x48xbf16> to vector<144x48xbf16>
    %cst_9 = arith.constant dense<0.000000e+00> : vector<144x48xf32>
    %20 = tpu.matmul %19, %4, %cst_9 {dimension_numbers = #tpu.dot_dimension_numbers<[1], [0], [0], [1], [0, 0, 1, 1], [], []>} : vector<144x48xbf16>, vector<48x48xbf16>, vector<144x48xf32> -> vector<144x48xf32>
    %21 = vector.shape_cast %20 : vector<144x48xf32> to vector<3x48x48xf32>
    %22 = arith.truncf %21 : vector<3x48x48xf32> to vector<3x48x48xbf16>
    %23 = arith.mulf %1, %3 : vector<3x48x48xbf16>
    %24 = vector.shape_cast %23 : vector<3x48x48xbf16> to vector<144x48xbf16>
    %cst_10 = arith.constant dense<0.000000e+00> : vector<144x48xf32>
    %25 = tpu.matmul %24, %4, %cst_10 {dimension_numbers = #tpu.dot_dimension_numbers<[1], [0], [0], [1], [0, 0, 1, 1], [], []>} : vector<144x48xbf16>, vector<48x48xbf16>, vector<144x48xf32> -> vector<144x48xf32>
    %26 = vector.shape_cast %25 : vector<144x48xf32> to vector<3x48x48xf32>
    %27 = arith.truncf %26 : vector<3x48x48xf32> to vector<3x48x48xbf16>
    %cst_11 = arith.constant 0.000000e+00 : f32
    %28 = vector.broadcast %cst_11 : f32 to vector<3x1x1xf32>
    %c0_12 = arith.constant 0 : index
    %c0_13 = arith.constant 0 : index
    %c0_14 = arith.constant 0 : index
    %29 = vector.load %arg3[%c0_12, %c0_13, %c0_14] : memref<1x48x48xbf16, #tpu.memory_space<vmem>>, vector<1x48x48xbf16>
    %30 = vector.shape_cast %29 : vector<1x48x48xbf16> to vector<48x48xbf16>
    %31 = vector.shape_cast %30 : vector<48x48xbf16> to vector<1x48x48xbf16>
    %32 = vector.broadcast %31 : vector<1x48x48xbf16> to vector<3x48x48xbf16>
    %cst_15 = arith.constant dense<0.000000e+00> : vector<3x48x48xf32>
    %33 = tpu.matmul %32, %8, %cst_15 {dimension_numbers = #tpu.dot_dimension_numbers<[2], [1], [1], [2], [0, 0, 0, 1, 1, 2], [0], [0]>} : vector<3x48x48xbf16>, vector<3x48x48xbf16>, vector<3x48x48xf32> -> vector<3x48x48xf32>
    %cst_16 = arith.constant dense<0.000000e+00> : vector<3x48x48xf32>
    %34 = tpu.matmul %32, %12, %cst_16 {dimension_numbers = #tpu.dot_dimension_numbers<[2], [1], [1], [2], [0, 0, 0, 1, 1, 2], [0], [0]>} : vector<3x48x48xbf16>, vector<3x48x48xbf16>, vector<3x48x48xf32> -> vector<3x48x48xf32>
    %cst_17 = arith.constant dense<0.000000e+00> : vector<3x48x48xf32>
    %35 = tpu.matmul %32, %17, %cst_17 {dimension_numbers = #tpu.dot_dimension_numbers<[2], [1], [1], [2], [0, 0, 0, 1, 1, 2], [0], [0]>} : vector<3x48x48xbf16>, vector<3x48x48xbf16>, vector<3x48x48xf32> -> vector<3x48x48xf32>
    %cst_18 = arith.constant dense<0.000000e+00> : vector<3x48x48xf32>
    %36 = tpu.matmul %32, %22, %cst_18 {dimension_numbers = #tpu.dot_dimension_numbers<[2], [1], [1], [2], [0, 0, 0, 1, 1, 2], [0], [0]>} : vector<3x48x48xbf16>, vector<3x48x48xbf16>, vector<3x48x48xf32> -> vector<3x48x48xf32>
    %cst_19 = arith.constant dense<0.000000e+00> : vector<3x48x48xf32>
    %37 = tpu.matmul %32, %27, %cst_19 {dimension_numbers = #tpu.dot_dimension_numbers<[2], [1], [1], [2], [0, 0, 0, 1, 1, 2], [0], [0]>} : vector<3x48x48xbf16>, vector<3x48x48xbf16>, vector<3x48x48xf32> -> vector<3x48x48xf32>
    %38 = arith.mulf %33, %33 : vector<3x48x48xf32>
    %39 = arith.mulf %34, %34 : vector<3x48x48xf32>
    %40 = arith.mulf %33, %34 : vector<3x48x48xf32>
    %41 = arith.subf %35, %38 : vector<3x48x48xf32>
    %42 = arith.subf %36, %39 : vector<3x48x48xf32>
    %43 = arith.subf %37, %40 : vector<3x48x48xf32>
    %cst_20 = arith.constant 2.000000e+00 : f32
    %44 = vector.broadcast %cst_20 : f32 to vector<3x48x48xf32>
    %45 = arith.mulf %44, %40 : vector<3x48x48xf32>
    %cst_21 = arith.constant 9.99999974E-5 : f32
    %46 = vector.broadcast %cst_21 : f32 to vector<3x48x48xf32>
    %47 = arith.addf %45, %46 : vector<3x48x48xf32>
    %48 = arith.addf %38, %39 : vector<3x48x48xf32>
    %cst_22 = arith.constant 9.99999974E-5 : f32
    %49 = vector.broadcast %cst_22 : f32 to vector<3x48x48xf32>
    %50 = arith.addf %48, %49 : vector<3x48x48xf32>
    %51 = tpu.reciprocal %50 {approx = true} : vector<3x48x48xf32> -> vector<3x48x48xf32>
    %52 = arith.mulf %47, %51 : vector<3x48x48xf32>
    %53 = arith.addf %41, %42 : vector<3x48x48xf32>
    %cst_23 = arith.constant 8.99999984E-4 : f32
    %54 = vector.broadcast %cst_23 : f32 to vector<3x48x48xf32>
    %55 = arith.addf %53, %54 : vector<3x48x48xf32>
    %56 = tpu.reciprocal %55 {approx = true} : vector<3x48x48xf32> -> vector<3x48x48xf32>
    %cst_24 = arith.constant 2.000000e+00 : f32
    %57 = vector.broadcast %cst_24 : f32 to vector<3x48x48xf32>
    %58 = arith.mulf %57, %43 : vector<3x48x48xf32>
    %cst_25 = arith.constant 8.99999984E-4 : f32
    %59 = vector.broadcast %cst_25 : f32 to vector<3x48x48xf32>
    %60 = arith.addf %58, %59 : vector<3x48x48xf32>
    %61 = arith.mulf %52, %60 : vector<3x48x48xf32>
    %62 = arith.mulf %61, %56 : vector<3x48x48xf32>
    %cst_26 = arith.constant 0.000000e+00 : f32
    %63 = vector.broadcast %cst_26 : f32 to vector<3x48x48xf32>
    %64 = arith.maximumf %41, %63 : vector<3x48x48xf32>
    %cst_27 = arith.constant 0.000000e+00 : f32
    %65 = vector.broadcast %cst_27 : f32 to vector<3x48x48xf32>
    %66 = arith.maximumf %42, %65 : vector<3x48x48xf32>
    %67 = arith.mulf %64, %66 : vector<3x48x48xf32>
    %68 = math.sqrt %67 : vector<3x48x48xf32>
    %cst_28 = arith.constant 2.000000e+00 : f32
    %69 = vector.broadcast %cst_28 : f32 to vector<3x48x48xf32>
    %70 = arith.mulf %69, %68 : vector<3x48x48xf32>
    %cst_29 = arith.constant 8.99999984E-4 : f32
    %71 = vector.broadcast %cst_29 : f32 to vector<3x48x48xf32>
    %72 = arith.addf %70, %71 : vector<3x48x48xf32>
    %73 = arith.mulf %72, %56 : vector<3x48x48xf32>
    %cst_30 = arith.constant dense<0.000000e+00> : vector<3x48xf32>
    %74 = vector.multi_reduction <add>, %62, %cst_30 [2] : vector<3x48x48xf32> to vector<3x48xf32>
    %75 = vector.shape_cast %74 : vector<3x48xf32> to vector<3x48x1xf32>
    %cst_31 = arith.constant dense<0.000000e+00> : vector<3x1xf32>
    %76 = vector.multi_reduction <add>, %75, %cst_31 [1] : vector<3x48x1xf32> to vector<3x1xf32>
    %77 = vector.shape_cast %76 : vector<3x1xf32> to vector<3x1x1xf32>
    %78 = arith.addf %28, %77 : vector<3x1x1xf32>
    %cst_32 = arith.constant dense<0.000000e+00> : vector<3x48xf32>
    %79 = vector.multi_reduction <add>, %73, %cst_32 [2] : vector<3x48x48xf32> to vector<3x48xf32>
    %80 = vector.shape_cast %79 : vector<3x48xf32> to vector<3x48x1xf32>
    %cst_33 = arith.constant dense<0.000000e+00> : vector<3x1xf32>
    %81 = vector.multi_reduction <add>, %80, %cst_33 [1] : vector<3x48x1xf32> to vector<3x1xf32>
    %82 = vector.shape_cast %81 : vector<3x1xf32> to vector<3x1x1xf32>
    %83 = arith.addf %28, %82 : vector<3x1x1xf32>
    %cst_34 = arith.constant 4.34027781E-4 : f32
    %84 = vector.broadcast %cst_34 : f32 to vector<3x1x1xf32>
    %85 = arith.mulf %78, %84 : vector<3x1x1xf32>
    %c0_35 = arith.constant 0 : index
    %c0_36 = arith.constant 0 : index
    %c0_37 = arith.constant 0 : index
    %86 = vector.load %arg7[%c0_35, %c0_36, %c0_37] : memref<3x1x1xf32, #tpu.memory_space<vmem>>, vector<3x1x1xf32>
    tpu.vector_store %arg7[%c0_35, %c0_36, %c0_37], %85 {strides = array<i32>} : memref<3x1x1xf32, #tpu.memory_space<vmem>>, vector<3x1x1xf32>,
    %cst_38 = arith.constant 4.34027781E-4 : f32
    %87 = vector.broadcast %cst_38 : f32 to vector<3x1x1xf32>
    %88 = arith.mulf %83, %87 : vector<3x1x1xf32>
    %c0_39 = arith.constant 0 : index
    %c0_40 = arith.constant 0 : index
    %c0_41 = arith.constant 0 : index
    %89 = vector.load %arg8[%c0_39, %c0_40, %c0_41] : memref<3x1x1xf32, #tpu.memory_space<vmem>>, vector<3x1x1xf32>
    tpu.vector_store %arg8[%c0_39, %c0_40, %c0_41], %88 {strides = array<i32>} : memref<3x1x1xf32, #tpu.memory_space<vmem>>, vector<3x1x1xf32>,
    %c0_42 = arith.constant 0 : index
    %c0_43 = arith.constant 0 : index
    %90 = vector.load %arg6[%c0_42, %c0_43] : memref<48x24xbf16, #tpu.memory_space<vmem>>, vector<48x24xbf16>
    %c0_44 = arith.constant 0 : index
    %c0_45 = arith.constant 0 : index
    %91 = vector.load %arg5[%c0_44, %c0_45] : memref<24x48xbf16, #tpu.memory_space<vmem>>, vector<24x48xbf16>
    %92 = vector.shape_cast %91 : vector<24x48xbf16> to vector<1x24x48xbf16>
    %93 = vector.broadcast %92 : vector<1x24x48xbf16> to vector<3x24x48xbf16>
    %94 = vector.shape_cast %1 : vector<3x48x48xbf16> to vector<144x48xbf16>
    %cst_46 = arith.constant dense<0.000000e+00> : vector<144x24xf32>
    %95 = tpu.matmul %94, %90, %cst_46 {dimension_numbers = #tpu.dot_dimension_numbers<[1], [0], [0], [1], [0, 0, 1, 1], [], []>} : vector<144x48xbf16>, vector<48x24xbf16>, vector<144x24xf32> -> vector<144x24xf32>
    %96 = vector.shape_cast %95 : vector<144x24xf32> to vector<3x48x24xf32>
    %97 = arith.truncf %96 : vector<3x48x24xf32> to vector<3x48x24xbf16>
    %cst_47 = arith.constant dense<0.000000e+00> : vector<3x24x24xf32>
    %98 = tpu.matmul %93, %97, %cst_47 {dimension_numbers = #tpu.dot_dimension_numbers<[2], [1], [1], [2], [0, 0, 0, 1, 1, 2], [0], [0]>} : vector<3x24x48xbf16>, vector<3x48x24xbf16>, vector<3x24x24xf32> -> vector<3x24x24xf32>
    %99 = arith.truncf %98 : vector<3x24x24xf32> to vector<3x24x24xbf16>
    %c0_48 = arith.constant 0 : index
    %c0_49 = arith.constant 0 : index
    %c0_50 = arith.constant 0 : index
    %100 = vector.load %arg9[%c0_48, %c0_49, %c0_50] : memref<3x24x24xbf16, #tpu.memory_space<vmem>>, vector<3x24x24xbf16>
    tpu.vector_store %arg9[%c0_48, %c0_49, %c0_50], %99 {strides = array<i32>} : memref<3x24x24xbf16, #tpu.memory_space<vmem>>, vector<3x24x24xbf16>,
    %101 = vector.shape_cast %3 : vector<3x48x48xbf16> to vector<144x48xbf16>
    %cst_51 = arith.constant dense<0.000000e+00> : vector<144x24xf32>
    %102 = tpu.matmul %101, %90, %cst_51 {dimension_numbers = #tpu.dot_dimension_numbers<[1], [0], [0], [1], [0, 0, 1, 1], [], []>} : vector<144x48xbf16>, vector<48x24xbf16>, vector<144x24xf32> -> vector<144x24xf32>
    %103 = vector.shape_cast %102 : vector<144x24xf32> to vector<3x48x24xf32>
    %104 = arith.truncf %103 : vector<3x48x24xf32> to vector<3x48x24xbf16>
    %cst_52 = arith.constant dense<0.000000e+00> : vector<3x24x24xf32>
    %105 = tpu.matmul %93, %104, %cst_52 {dimension_numbers = #tpu.dot_dimension_numbers<[2], [1], [1], [2], [0, 0, 0, 1, 1, 2], [0], [0]>} : vector<3x24x48xbf16>, vector<3x48x24xbf16>, vector<3x24x24xf32> -> vector<3x24x24xf32>
    %106 = arith.truncf %105 : vector<3x24x24xf32> to vector<3x24x24xbf16>
    %c0_53 = arith.constant 0 : index
    %c0_54 = arith.constant 0 : index
    %c0_55 = arith.constant 0 : index
    %107 = vector.load %arg10[%c0_53, %c0_54, %c0_55] : memref<3x24x24xbf16, #tpu.memory_space<vmem>>, vector<3x24x24xbf16>
    tpu.vector_store %arg10[%c0_53, %c0_54, %c0_55], %106 {strides = array<i32>} : memref<3x24x24xbf16, #tpu.memory_space<vmem>>, vector<3x24x24xbf16>,
    return
  }
  func.func @transform_0(%arg0: i32) -> (i32, i32, i32) {
    %c0_i32 = arith.constant 0 : i32
    %c0_i32_0 = arith.constant 0 : i32
    %c0_i32_1 = arith.constant 0 : i32
    return %arg0, %c0_i32, %c0_i32_0 : i32, i32, i32
  }
  func.func @transform_1(%arg0: i32) -> (i32, i32, i32) {
    %c0_i32 = arith.constant 0 : i32
    %c0_i32_0 = arith.constant 0 : i32
    %c0_i32_1 = arith.constant 0 : i32
    return %arg0, %c0_i32, %c0_i32_0 : i32, i32, i32
  }
  func.func @transform_2(%arg0: i32) -> (i32, i32, i32) {
    %c0_i32 = arith.constant 0 : i32
    %c0_i32_0 = arith.constant 0 : i32
    %c0_i32_1 = arith.constant 0 : i32
    %c0_i32_2 = arith.constant 0 : i32
    return %c0_i32, %c0_i32_0, %c0_i32_1 : i32, i32, i32
  }
  func.func @transform_3(%arg0: i32) -> (i32, i32) {
    %c0_i32 = arith.constant 0 : i32
    %c0_i32_0 = arith.constant 0 : i32
    %c0_i32_1 = arith.constant 0 : i32
    return %c0_i32, %c0_i32_0 : i32, i32
  }
  func.func @transform_4(%arg0: i32) -> (i32, i32) {
    %c0_i32 = arith.constant 0 : i32
    %c0_i32_0 = arith.constant 0 : i32
    %c0_i32_1 = arith.constant 0 : i32
    return %c0_i32, %c0_i32_0 : i32, i32
  }
  func.func @transform_5(%arg0: i32) -> (i32, i32) {
    %c0_i32 = arith.constant 0 : i32
    %c0_i32_0 = arith.constant 0 : i32
    %c0_i32_1 = arith.constant 0 : i32
    return %c0_i32, %c0_i32_0 : i32, i32
  }
  func.func @transform_6(%arg0: i32) -> (i32, i32, i32) {
    %c0_i32 = arith.constant 0 : i32
    %c0_i32_0 = arith.constant 0 : i32
    %c0_i32_1 = arith.constant 0 : i32
    return %arg0, %c0_i32, %c0_i32_0 : i32, i32, i32
  }
  func.func @transform_7(%arg0: i32) -> (i32, i32, i32) {
    %c0_i32 = arith.constant 0 : i32
    %c0_i32_0 = arith.constant 0 : i32
    %c0_i32_1 = arith.constant 0 : i32
    return %arg0, %c0_i32, %c0_i32_0 : i32, i32, i32
  }
  func.func @transform_8(%arg0: i32) -> (i32, i32, i32) {
    %c0_i32 = arith.constant 0 : i32
    %c0_i32_0 = arith.constant 0 : i32
    %c0_i32_1 = arith.constant 0 : i32
    return %arg0, %c0_i32, %c0_i32_0 : i32, i32, i32
  }
  func.func @transform_9(%arg0: i32) -> (i32, i32, i32) {
    %c0_i32 = arith.constant 0 : i32
    %c0_i32_0 = arith.constant 0 : i32
    %c0_i32_1 = arith.constant 0 : i32
    return %arg0, %c0_i32, %c0_i32_0 : i32, i32, i32
  }
}

</mosaic_0001>

<bundles_post_ra>
// kernel: tpu_custom_call.1
= control target key start
LH: loop header
LB: loop body
LE: loop exit
PB: predicated region body
PF: predicated region fallthrough
CT: control target
= control target key end

     0   :  { %s7172_s0 = inlined_call_operand.hbm [shape: f32[6,48,48], index: 0, kind: input, shape index: {}]   ;;  %s7173_s1 = inlined_call_operand.hbm [shape: f32[6,48,48], index: 1, kind: input, shape index: {}]   ;;  %s7174_s2 = inlined_call_operand.vmem [shape: bf16[1,48,48], index: 2, kind: input, shape index: {}]   ;;  %s7175_s3 = inlined_call_operand.hbm [shape: bf16[48,48], index: 3, kind: input, shape index: {}]   ;;  %s7176_s4 = inlined_call_operand.vmem [shape: bf16[24,48], index: 4, kind: input, shape index: {}]   ;;  %s7177_s5 = inlined_call_operand.vmem [shape: bf16[48,24], index: 5, kind: input, shape index: {}]   ;;  %s7178_s6 = inlined_call_operand.vmem [shape: f32[6,1,1], index: 6, kind: output, shape index: {0}]   ;;  %s7179_s7 = inlined_call_operand.vmem [shape: f32[6,1,1], index: 7, kind: output, shape index: {1}]   ;;  %s7180_s8 = inlined_call_operand.hbm [shape: bf16[6,24,24], index: 8, kind: output, shape index: {2}]   ;;  %s7181_s9 = inlined_call_operand.hbm [shape: bf16[6,24,24], index: 9, kind: output, shape index: {3}]  }
   0x1   :  { %7219 = sst [smem:[#allocation57_spill]] %s7172_s0 }
   0x2   :  { %7220 = sst [smem:[#allocation58_spill]] %s7175_s3 }
   0x3   :  { %15 = vsyncpa [#allocation3], 0 }
   0x4   :  { %17 = vsyncpa [#allocation3 + $0x1], 0 }
   0x5   :  { %18 = vsyncpa [#allocation6], 0 }
   0x6   :  { %20 = vsyncpa [#allocation6 + $0x1], 0 }
   0x7   :  { %21 = vsyncpa [#allocation4], 0 }
   0x8   :  { %23 = vsyncpa [#allocation4 + $0x1], 0 }
   0x9   :  { %24 = vsyncpa [#allocation10], 0 }
   0xa   :  { %26 = vsyncpa [#allocation10 + $0x1], 0  ;;  %s5270_s30 = smov 0   ;;  %s5272_s10 = smov 0  }
   0xb   :  { %s5274_s11 = smov 0   ;;  %s5276_s12 = smov 0  }
   0xc LB: > { %7221 = sst [smem:[#allocation16_spill]] %s5201_s11  ;;  %s5291_s13 = sadd.s32 4294967295, %s5205_s12   ;;  %s5205_s12 = sphi %s5276_s12, %s7330_s12   ;;  %s5201_s11 = sphi %s5274_s11, %s7332_s11   ;;  %s5197_s10 = sphi %s5272_s10, %s7334_s10   ;;  %s5193_s30 = sphi %s5270_s30, %s7333_s30  }
   0xd   : > { %s3794_s14 = sadd.s32 4294967294, %s5205_s12   ;;  %p52_p0 = scmp.ne.s32.totalorder %s5197_s10, %s5193_s30 }
   0xe   : > { %p7182_p1 = scmp.eq.s32.totalorder %s5291_s13, 0  ;;  %p244_p3 = scmp.eq.s32.totalorder %s3794_s14, 1 }
   0xf   : > { %p3795_p5 = scmp.ge.s32.totalorder %s5205_s12, 1  ;;  %p277_p7 = scmp.lt.s32.totalorder %s5205_s12, 3 }
  0x10   : > { %p5300_p4 = por %p7182_p1, %p52_p0  ;;  %p5305_p6 = por %p244_p3, %p52_p0 }
  0x11   : > { %p5310_p8 = pnand %p3795_p5, %p277_p7  ;;  %s5207_s18 = smov [#allocation7]  }
  0x12   : > { %s7222_s15 = scalar_select %p5300_p4, 1, 0 }
  0x13   : > { %s7223_s16 = scalar_select %p5305_p6, 1, 0 }
  0x14   : > { %s7225_s17 = scalar_select %p5310_p8, 1, 0 }
  0x15   : > { %7224 = sst [smem:[#allocation17_spill]] %s7223_s16  ;;  %s292_s19 = sshll.u32 %s5207_s18, 4  ;;  %s293_s19 = int_to_ptr.vmem [resolvable:$true] %s292_s19 }
  0x16   : > { %p4821_p9 = pneg %p5310_p8  ;;  %s5324_s21 = sadd.s32 1, %s5205_s12  }
  0x17   : > { %7227 = sst [smem:[#allocation18_spill]] %s5324_s21  ;;  %s36_s22 = ssub.s32 %s5205_s12, %s5324_s21 }
  0x18   : > { %p5319_p11 = pnand %p4821_p9, %p7182_p1  ;;  %s7228_s3 = sld [smem:[#allocation58_spill]] }
  0x1a   : > { %p5013_p13 = pneg %p5319_p11 }
  0x1e   : > { %s5011_s25 = scalar_lea.hbm %s7228_s3, 384 }
  0x1f   : > { %p5012_p12 = scmp.ne.s32.totalorder %s7228_s3, %s5011_s25  ;;  %p5018_p5 = scmp.lt.u32.totalorder %s5011_s25, %s7228_s3 }
  0x21   : > { %p5014_p0 = pnand %p5013_p13, %p5012_p12 }
  0x23   : > { %p5015_p3 = pneg %p5014_p0 }
  0x25   : > { %p5020_p7 = pnand %p5018_p5, %p5015_p3 }
  0x27   : > { %5023 = shalt.err (!%p5020_p7)
}
  0x28   : > { %s5024_s14 = scalar_lea.vmem %s293_s19, 384  ;;  %p5032_p2 = scmp.lt.s32.totalorder %s293_s19, %s293_s19 }
  0x29   : > { %p5025_p9 = scmp.ne.s32.totalorder %s293_s19, %s5024_s14  ;;  %p5033_p6 = scmp.lt.s32.totalorder %s5024_s14, %s5024_s14 }
  0x2b   : > { %p5027_p10 = pnand %p5025_p9, %p5013_p13  ;;  %p5034_p4 = por %p5033_p6, %p5032_p2 }
  0x2d   : > { %p5028_p1 = pneg %p5027_p10 }
  0x2f   : > { %p5035_p8 = pnand %p5034_p4, %p5028_p1 }
  0x31   : > { %5038 = shalt.err (!%p5035_p8)
}
  0x32   : > { %s5208_s18 = smov 64   ;;  %s5209_s23 = smov 4  }
  0x33   : > { %4824 = dma.hbm_to_vmem [thread:$0]  (!%p5319_p11), %s7228_s3, 384, %s293_s19, [#allocation6], %s5208_s18, %s5208_s18, %s5209_s23  }
  0x34   : > { %p37_p1 = scmp.eq.s32.totalorder %s36_s22, 0  ;;  %s39_s26 = sadd.s32 1, %s5201_s11 }
  0x35   : > { %p46_p2 = scmp.ne.s32.totalorder %s5201_s11, %s5197_s10  ;;  %p47_p4 = scmp.eq.s32.totalorder %s5205_s12, 0 }
  0x36   : > { %s5349_s27 = scalar_select %p37_p1, %s5201_s11, %s39_s26  }
  0x37   : > { %p48_p6 = por %p47_p4, %p46_p2  ;;  %p7230_p8 = scmp.eq.s32.totalorder %s5291_s13, 1 }
  0x38   : > { %7229 = sst [smem:[#allocation19_spill]] %s5349_s27  ;;  %p4840_p12 = scmp.lt.s32.totalorder %s5205_s12, 2 }
  0x39   : > { %p5353_p10 = por %p7230_p8, %p46_p2  ;;  %s312_s29 = sand.u32 1, %s5201_s11  }
  0x3a   : > { %s5359_s20 = smul.u32 144, %s312_s29  ;;  %p5362_p11 = pnand %p4840_p12, %p48_p6 }
  0x3b   : > { %s7185_s14 = smul.u32 2304, %s5205_s12  ;;  %s7233_s0 = sld [smem:[#allocation57_spill]] }
  0x3c   : > { %s316_s24 = scalar_lea.vmem [#allocation2], %s5359_s20  ;;  %s334_s26 = sand.u32 1, %s5205_s12  }
  0x3d   : > { %s324_s25 = sshll.u32 %s316_s24, 4  ;;  %s5377_s3 = scalar_lea.sflag [#allocation3], %s312_s29  ;;  %s5374_s25 = int_to_ptr.vmem [resolvable:$true] %s324_s25 }
  0x3e   : > { %p5041_p0 = pneg %p5362_p11 }
  0x41   : > { %s5371_s23 = scalar_lea.hbm %s7233_s0, %s7185_s14  ;;  %s5044_s14 = scalar_lea.hbm %s7233_s0, 4608 }
  0x42   : > { %s5039_s27 = scalar_lea.hbm %s5371_s23, 2304  ;;  %p5045_p7 = scmp.lt.u32.totalorder %s5371_s23, %s7233_s0 }
  0x43   : > { %p5040_p13 = scmp.ne.s32.totalorder %s5371_s23, %s5039_s27  ;;  %p5046_p9 = scmp.lt.u32.totalorder %s5044_s14, %s5039_s27 }
  0x44   : > { %p5048_p2 = scmp.lt.u32.totalorder %s5039_s27, %s5371_s23 }
  0x45   : > { %p5042_p3 = pnand %p5041_p0, %p5040_p13  ;;  %p5047_p1 = por %p5046_p9, %p5045_p7 }
  0x47   : > { %p5043_p5 = pneg %p5042_p3  ;;  %p5049_p4 = por %p5048_p2, %p5047_p1 }
  0x49   : > { %p5050_p6 = pnand %p5049_p4, %p5043_p5 }
  0x4b   : > { %5053 = shalt.err (!%p5050_p6)
}
  0x4c   : > { %s5054_s29 = scalar_lea.vmem %s5374_s25, 2304  ;;  %s5210_s24 = smov [#allocation2]  }
  0x4d   : > { %p5055_p8 = scmp.ne.s32.totalorder %s5374_s25, %s5054_s29  ;;  %s5059_s22 = sshll.u32 %s5210_s24, 4  ;;  %s5060_s22 = int_to_ptr.vmem [resolvable:$false] %s5059_s22 }
  0x4e   : > { %s5061_s11 = scalar_lea.vmem %s5060_s22, 4608  ;;  %p5062_p3 = scmp.lt.s32.totalorder %s5374_s25, %s5060_s22 }
  0x4f   : > { %p5057_p12 = pnand %p5055_p8, %p5041_p0  ;;  %p5063_p7 = scmp.lt.s32.totalorder %s5061_s11, %s5054_s29 }
  0x51   : > { %p5058_p13 = pneg %p5057_p12  ;;  %p5064_p9 = por %p5063_p7, %p5062_p3 }
  0x53   : > { %p5065_p1 = pnand %p5064_p9, %p5058_p13 }
  0x55   : > { %5068 = shalt.err (!%p5065_p1)
}
  0x56   : > { %s5211_s21 = smov 128   ;;  %s5212_s27 = smov 8  }
  0x57   : > { %4828 = dma.hbm_to_vmem [thread:$0]  (!%p5362_p11), %s5371_s23, 2304, %s5374_s25, %s5377_s3, %s5211_s21, %s5211_s21, %s5212_s27  }
  0x58   : > { %s7234_s14 = smul.u32 2304, %s5205_s12  ;;  %s338_s22 = scalar_lea.vmem [#allocation5], %s5359_s20 }
  0x59   : > { %s346_s11 = sshll.u32 %s338_s22, 4  ;;  %s5420_s0 = scalar_lea.sflag [#allocation6], %s334_s26  ;;  %s5416_s11 = int_to_ptr.vmem [resolvable:$true] %s346_s11 }
  0x5a   : > { %s5413_s24 = scalar_lea.hbm %s7173_s1, %s7234_s14  ;;  %s5074_s25 = scalar_lea.hbm %s7173_s1, 4608 }
  0x5b   : > { %s5069_s16 = scalar_lea.hbm %s5413_s24, 2304  ;;  %p5075_p6 = scmp.lt.u32.totalorder %s5413_s24, %s7173_s1 }
  0x5c   : > { %p5070_p5 = scmp.ne.s32.totalorder %s5413_s24, %s5069_s16  ;;  %p5076_p8 = scmp.lt.u32.totalorder %s5074_s25, %s5069_s16 }
  0x5d   : > { %p5078_p13 = scmp.lt.u32.totalorder %s5069_s16, %s5413_s24 }
  0x5e   : > { %p5072_p2 = pnand %p5070_p5, %p5041_p0  ;;  %p5077_p12 = por %p5076_p8, %p5075_p6 }
  0x60   : > { %p5073_p4 = pneg %p5072_p2  ;;  %p5079_p3 = por %p5078_p13, %p5077_p12 }
  0x62   : > { %p5080_p7 = pnand %p5079_p3, %p5073_p4 }
  0x64   : > { %5083 = shalt.err (!%p5080_p7)
}
  0x65   : > { %s5084_s20 = scalar_lea.vmem %s5416_s11, 2304  ;;  %s5213_s26 = smov [#allocation5]  }
  0x66   : > { %p5085_p9 = scmp.ne.s32.totalorder %s5416_s11, %s5084_s20  ;;  %s5089_s29 = sshll.u32 %s5213_s26, 4  ;;  %s5090_s29 = int_to_ptr.vmem [resolvable:$false] %s5089_s29 }
  0x67   : > { %s5091_s22 = scalar_lea.vmem %s5090_s29, 4608  ;;  %p5092_p2 = scmp.lt.s32.totalorder %s5416_s11, %s5090_s29 }
  0x68   : > { %p5087_p1 = pnand %p5085_p9, %p5041_p0  ;;  %p5093_p6 = scmp.lt.s32.totalorder %s5091_s22, %s5084_s20 }
  0x6a   : > { %p5088_p5 = pneg %p5087_p1  ;;  %p5094_p8 = por %p5093_p6, %p5092_p2 }
  0x6c   : > { %p5095_p12 = pnand %p5094_p8, %p5088_p5 }
  0x6e   : > { %5098 = shalt.err (!%p5095_p12)
}
  0x6f   : > { %4831 = dma.hbm_to_vmem [thread:$0]  (!%p5362_p11), %s5413_s24, 2304, %s5416_s11, %s5420_s0, %s5211_s21, %s5211_s21, %s5212_s27  }
  0x70   : > { %p7235_p0 = scmp.ne.s32.totalorder %s7225_s17, 0 }
  0x72   : > { %358 = sbr.rel (%p7235_p0) target bundleno = 1384 (0x568), region = 44 }
  0x79   : > { %s5452_s16 = sand.u32 1, %s5197_s10   ;;  %p7236_p4 = scmp.ne.s32.totalorder %s7222_s15, 0 }
  0x7a   : > { %s4805_s3 = smul.u32 144, %s5452_s16  ;;  %s361_s23 = scalar_lea.sflag [#allocation3], %s5452_s16 }
  0x7c   : > { %s5456_s25 = scalar_lea.vmem [#allocation2], %s4805_s3 }
  0x7d   : > { %5172 = dma.done.wait (%p7236_p4), %s361_s23, 2304  }
  0x7e   : > { %5174 = vsyncadd (%p7236_p4), %s361_s23, 4294964992  ;;  %s369_s0 = sand.u32 1, %s5291_s13   ;;  %s5463_s19 = scalar_lea.vmem [#allocation5], %s4805_s3 }
  0x7f   : > { %s370_s17 = scalar_lea.sflag [#allocation6], %s369_s0 }
  0x80   : > { %5176 = dma.done.wait (%p7236_p4), %s370_s17, 2304  }
  0x81   : > { %5178 = vsyncadd (%p7236_p4), %s370_s17, 4294964992  ;;  %p7237_p11 = scmp.eq.s32.totalorder %s5291_s13, 0 }
  0x83   : > { %5180 = dma.done.wait (%p7237_p11), [#allocation6], 384   ;;  %p7238_p13 = pmov %p7237_p11 }
  0x84   : > { %v7190_v0 = vmov 0.0   ;;  %vm5215_vm0 = vmmov 0   ;;  %v5479_v1 = vld [vmem:[#allocation7] sm:$0xff]   ;;  %v5482_v2 = vld [vmem:[#allocation7 + $0x8] sm:$0xff]   ;;  %v5487_v3 = vld [vmem:[#allocation7 + $0x10] sm:$0xff]   ;;  %vm523_vm1 = vcmask 392192  }
  0x85   : > { %5182 = vsyncadd (%p7238_p13), [#allocation6], 4294966912  ;;  %4177 = vmatprep.subr.bf16.mxu0 %v7190_v0  ;;  %4183 = vmatprep.mubr.msk.bf16.mxu0 %vm5215_vm0, %v7190_v0  ;;  %v445_v4 = vld [vmem:[%s5456_s25] sm:$0xff]  ;;  %v446_v5 = vld [vmem:[%s5456_s25 + $0x8] sm:$0xff]  ;;  %s432_s20 = smul.u32 3, %s5291_s13  ;;  %s3573_s11 = scalar_lea.sflag [#allocation4], %s5452_s16 }
  0x86   : > { %4219 = vmatprep.subr.bf16.mxu1 %v7190_v0  ;;  %4225 = vmatprep.mubr.msk.bf16.mxu1 %vm5215_vm0, %v7190_v0  ;;  %v472_v6 = vld [vmem:[%s5463_s19] sm:$0xff]  ;;  %v473_v7 = vld [vmem:[%s5463_s19 + $0x8] sm:$0xff]  ;;  %v5497_v8 = vpack.c.bf16 %v446_v5, %v445_v4  ;;  %v447_v10 = vld [vmem:[%s5456_s25 + $0x10] sm:$0xff]  ;;  %s4806_s0 = smul.u32 36, %s5452_s16  ;;  %s5216_s18 = smov [#allocation8]  }
  0x87   : > { %4178 = vmatpush3.bf16.msra.mxu0 %v5479_v1  ;;  %4220 = vmatpush3.bf16.msra.mxu1 %v5479_v1  ;;  %v5499_v9 = vpack.c.bf16 %v473_v7, %v472_v6  ;;  %v448_v11 = vld [vmem:[%s5456_s25 + $0x18] sm:$0xff]  ;;  %v474_v12 = vld [vmem:[%s5463_s19 + $0x10] sm:$0xff]  ;;  %v449_v16 = vld [vmem:[%s5456_s25 + $0x20] sm:$0xff]  ;;  %p433_p3 = scmp.lt.s32.totalorder %s432_s20, 5 }
  0x88   : > { %4179 = vmatprep.subr.bf16.mxu0 %v7190_v0  ;;  %4221 = vmatprep.subr.bf16.mxu1 %v7190_v0  ;;  %v475_v13 = vld [vmem:[%s5463_s19 + $0x18] sm:$0xff]  ;;  %v5521_v14 = vpack.c.bf16 %v448_v11, %v447_v10  ;;  %v450_v17 = vld [vmem:[%s5456_s25 + $0x28] sm:$0xff]  ;;  %v476_v18 = vld [vmem:[%s5463_s19 + $0x20] sm:$0xff]  ;;  %v806_v58 = vmul.bf16 %v5497_v8, %v5497_v8  ;;  %s7039_s17 = scalar_lea.vmem [#allocation8], %s4806_s0 }
  0x89   : > { %7239 = vst [vmem:[#allocation20_spill] sm:$0xff] %v5499_v9  ;;  %v5523_v15 = vpack.c.bf16 %v475_v13, %v474_v12  ;;  %v477_v19 = vld [vmem:[%s5463_s19 + $0x28] sm:$0xff]  ;;  %v5545_v20 = vpack.c.bf16 %v450_v17, %v449_v16  ;;  %v451_v22 = vld [vmem:[%s5456_s25 + $0x30] sm:$0xff]  ;;  %v452_v23 = vld [vmem:[%s5456_s25 + $0x38] sm:$0xff]  ;;  %v956_v59 = vmul.bf16 %v5499_v9, %v5499_v9  ;;  %v1106_v17 = vmul.bf16 %v5499_v9, %v5497_v8  ;;  %s7336_s20 = smov (!%p433_p3, %s432_s20), 5  ;;  %s3600_s15 = sshll.u32 %s7039_s17, 4  ;;  %s7078_s15 = int_to_ptr.vmem [resolvable:$true] %s3600_s15 }
  0x8a   : > { %v5547_v21 = vpack.c.bf16 %v477_v19, %v476_v18  ;;  %v478_v24 = vld [vmem:[%s5463_s19 + $0x30] sm:$0xff]  ;;  %v479_v25 = vld [vmem:[%s5463_s19 + $0x38] sm:$0xff]  ;;  %v5561_v26 = vpack.c.bf16 %v452_v23, %v451_v22  ;;  %v453_v28 = vld [vmem:[%s5456_s25 + $0x40] sm:$0xff]  ;;  %v807_v60 = vmul.bf16 %v5521_v14, %v5521_v14  ;;  %s7016_s22 = scalar_lea.vmem %s7178_s6, %s7336_s20  ;;  %s5099_s14 = scalar_lea.vmem %s7078_s15, 576 }
  0x8b   : > { %4180 = vmatpush3.bf16.msra.mxu0 %v5482_v2  ;;  %4222 = vmatpush3.bf16.msra.mxu1 %v5482_v2  ;;  %7240 = vst [vmem:[#allocation21_spill] sm:$0xff] %v5523_v15  ;;  %v5563_v27 = vpack.c.bf16 %v479_v25, %v478_v24  ;;  %v454_v29 = vld [vmem:[%s5456_s25 + $0x48] sm:$0xff]  ;;  %v480_v30 = vld [vmem:[%s5463_s19 + $0x40] sm:$0xff]  ;;  %v455_v34 = vld [vmem:[%s5456_s25 + $0x50] sm:$0xff]  ;;  %v957_v61 = vmul.bf16 %v5523_v15, %v5523_v15  ;;  %p5100_p7 = scmp.ne.s32.totalorder %s7078_s15, %s5099_s14 }
  0x8c   : > { %4181 = vmatprep.subr.bf16.mxu0 %v7190_v0  ;;  %4223 = vmatprep.subr.bf16.mxu1 %v7190_v0  ;;  %7241 = vst [vmem:[#allocation22_spill] sm:$0xff] %v5547_v21  ;;  %v481_v31 = vld [vmem:[%s5463_s19 + $0x48] sm:$0xff]  ;;  %v5577_v32 = vpack.c.bf16 %v454_v29, %v453_v28  ;;  %v456_v35 = vld [vmem:[%s5456_s25 + $0x58] sm:$0xff]  ;;  %v482_v36 = vld [vmem:[%s5463_s19 + $0x50] sm:$0xff]  ;;  %v808_v62 = vmul.bf16 %v5545_v20, %v5545_v20 }
  0x8d   : > { %7242 = vst [vmem:[#allocation23_spill] sm:$0xff] %v5563_v27  ;;  %v5579_v33 = vpack.c.bf16 %v481_v31, %v480_v30  ;;  %v483_v37 = vld [vmem:[%s5463_s19 + $0x58] sm:$0xff]  ;;  %v5593_v38 = vpack.c.bf16 %v456_v35, %v455_v34  ;;  %v457_v40 = vld [vmem:[%s5456_s25 + $0x60] sm:$0xff]  ;;  %v458_v41 = vld [vmem:[%s5456_s25 + $0x68] sm:$0xff]  ;;  %v958_v63 = vmul.bf16 %v5547_v21, %v5547_v21  ;;  %v1107_v18 = vmul.bf16 %v5523_v15, %v5521_v14  ;;  %p5101_p9 = pnand %p5100_p7, %p5353_p10 }
  0x8e   : > { %v5595_v39 = vpack.c.bf16 %v483_v37, %v482_v36  ;;  %v484_v42 = vld [vmem:[%s5463_s19 + $0x60] sm:$0xff]  ;;  %v485_v43 = vld [vmem:[%s5463_s19 + $0x68] sm:$0xff]  ;;  %v5609_v44 = vpack.c.bf16 %v458_v41, %v457_v40  ;;  %v459_v46 = vld [vmem:[%s5456_s25 + $0x70] sm:$0xff]  ;;  %v1108_v19 = vmul.bf16 %v5547_v21, %v5545_v20  ;;  %v1109_v22 = vmul.bf16 %v5563_v27, %v5561_v26 }
  0x8f   : > { %4182 = vmatpush3.bf16.msra.mxu0 %v5487_v3  ;;  %4224 = vmatpush3.bf16.msra.mxu1 %v5487_v3  ;;  %7243 = vst [vmem:[#allocation24_spill] sm:$0xff] %v5579_v33  ;;  %v5611_v45 = vpack.c.bf16 %v485_v43, %v484_v42  ;;  %v460_v47 = vld [vmem:[%s5456_s25 + $0x78] sm:$0xff]  ;;  %v486_v48 = vld [vmem:[%s5463_s19 + $0x70] sm:$0xff]  ;;  %v461_v52 = vld [vmem:[%s5456_s25 + $0x80] sm:$0xff]  ;;  %v960_v4 = vmul.bf16 %v5579_v33, %v5579_v33  ;;  %p5102_p1 = pneg %p5101_p9 }
  0x90   : > { %4261 = vmatprep.subr.bf16.mxu0 %v7190_v0  ;;  %4303 = vmatprep.subr.bf16.mxu1 %v7190_v0  ;;  %7244 = vst [vmem:[#allocation25_spill] sm:$0xff] %v5595_v39  ;;  %v487_v49 = vld [vmem:[%s5463_s19 + $0x78] sm:$0xff]  ;;  %v5625_v50 = vpack.c.bf16 %v460_v47, %v459_v46  ;;  %v462_v53 = vld [vmem:[%s5456_s25 + $0x88] sm:$0xff]  ;;  %v488_v54 = vld [vmem:[%s5463_s19 + $0x80] sm:$0xff]  ;;  %v811_v5 = vmul.bf16 %v5593_v38, %v5593_v38  ;;  %s440_s25 = scalar_lea.vmem %s7179_s7, %s7336_s20  ;;  %s5103_s20 = sshll.u32 %s5216_s18, 4  ;;  %s5104_s20 = int_to_ptr.vmem [resolvable:$false] %s5103_s20 }
  0x91   : > { %7245 = vst [vmem:[#allocation26_spill] sm:$0xff] %v5611_v45  ;;  %v5627_v51 = vpack.c.bf16 %v487_v49, %v486_v48  ;;  %v489_v55 = vld [vmem:[%s5463_s19 + $0x88] sm:$0xff]  ;;  %v5641_v56 = vpack.c.bf16 %v462_v53, %v461_v52  ;;  %v961_v6 = vmul.bf16 %v5595_v39, %v5595_v39  ;;  %v812_v7 = vmul.bf16 %v5609_v44, %v5609_v44  ;;  %s4844_s19 = smul.u32 576, %s5291_s13  ;;  %s5105_s26 = scalar_lea.vmem %s5104_s20, 1152 }
  0x92   : > { %4184 = vmatmul.mubr.msk.bf16.vlgmr.msra.gmra.mrb[0].mxu0 %vm523_vm1, %v5497_v8  ;;  %4226 = vmatmul.mubr.msk.bf16.vlgmr.msra.gmra.mrb[0].mxu1 %vm523_vm1, %v5499_v9  ;;  %v5643_v57 = vpack.c.bf16 %v489_v55, %v488_v54  ;;  %v962_v10 = vmul.bf16 %v5611_v45, %v5611_v45  ;;  %v813_v11 = vmul.bf16 %v5625_v50, %v5625_v50  ;;  %p5106_p5 = scmp.lt.s32.totalorder %s7078_s15, %s5104_s20  ;;  %p5107_p2 = scmp.lt.s32.totalorder %s5105_s26, %s5099_s14 }
  0x93   : > { %4187 = vmatprep.mubr.msk.bf16.mxu0 %vm5215_vm0, %v7190_v0  ;;  %4229 = vmatprep.mubr.msk.bf16.mxu1 %vm5215_vm0, %v7190_v0  ;;  %7246 = vst [vmem:[#allocation27_spill] sm:$0xff] %v5627_v51  ;;  %v963_v12 = vmul.bf16 %v5627_v51, %v5627_v51  ;;  %v814_v13 = vmul.bf16 %v5641_v56, %v5641_v56  ;;  %s7076_s24 = scalar_lea.hbm %s7180_s8, %s4844_s19 }
  0x94   : > { %4262 = vmatpush3.bf16.msra.mxu0 %v5479_v1  ;;  %4304 = vmatpush3.bf16.msra.mxu1 %v5479_v1  ;;  %7247 = vst [vmem:[#allocation28_spill] sm:$0xff] %v5643_v57  ;;  %v964_v16 = vmul.bf16 %v5643_v57, %v5643_v57  ;;  %v1110_v23 = vmul.bf16 %v5579_v33, %v5577_v32  ;;  %p5108_p6 = por %p5107_p2, %p5106_p5 }
  0x95   : > { %4263 = vmatprep.subr.bf16.mxu0 %v7190_v0  ;;  %4305 = vmatprep.subr.bf16.mxu1 %v7190_v0  ;;  %v1111_v24 = vmul.bf16 %v5595_v39, %v5593_v38  ;;  %v1112_v25 = vmul.bf16 %v5611_v45, %v5609_v44  ;;  %v1113_v28 = vmul.bf16 %v5627_v51, %v5625_v50 }
  0x96   : > { %v1114_v29 = vmul.bf16 %v5643_v57, %v5641_v56  ;;  %p5109_p8 = pnand %p5108_p6, %p5102_p1 }
  0x98   : > { %4264 = vmatpush3.bf16.msra.mxu0 %v5482_v2  ;;  %4306 = vmatpush3.bf16.msra.mxu1 %v5482_v2 }
  0x99   : > { %4265 = vmatprep.subr.bf16.mxu0 %v7190_v0  ;;  %4307 = vmatprep.subr.bf16.mxu1 %v7190_v0 }
  0x9a   : > { %4188 = vmatmul.mubr.msk.bf16.gmra.mrb[4].mxu0 %vm523_vm1, %v5521_v14  ;;  %4230 = vmatmul.mubr.msk.bf16.gmra.mrb[4].mxu1 %vm523_vm1, %v5523_v15 }
  0x9b   : > { %4191 = vmatprep.mubr.msk.bf16.mxu0 %vm5215_vm0, %v7190_v0  ;;  %4233 = vmatprep.mubr.msk.bf16.mxu1 %vm5215_vm0, %v7190_v0 }
  0x9c   : > { %4266 = vmatpush3.bf16.msra.mxu0 %v5487_v3  ;;  %4308 = vmatpush3.bf16.msra.mxu1 %v5487_v3 }
  0x9d   : > { %4345 = vmatprep.subr.bf16.mxu0 %v7190_v0  ;;  %4387 = vmatprep.subr.bf16.mxu1 %v7190_v0 }
  0xa2   : > { %4192 = vmatmul.mubr.msk.bf16.gmra.mrb[8].mxu0 %vm523_vm1, %v5545_v20  ;;  %4234 = vmatmul.mubr.msk.bf16.gmra.mrb[8].mxu1 %vm523_vm1, %v5547_v21 }
  0xa3   : > { %4195 = vmatprep.mubr.msk.bf16.mxu0 %vm5215_vm0, %v7190_v0  ;;  %4237 = vmatprep.mubr.msk.bf16.mxu1 %vm5215_vm0, %v7190_v0 }
  0xaa   : > { %4196 = vmatmul.mubr.msk.bf16.gmra.mrb[12].mxu0 %vm523_vm1, %v5561_v26  ;;  %4238 = vmatmul.mubr.msk.bf16.gmra.mrb[12].mxu1 %vm523_vm1, %v5563_v27 }
  0xab   : > { %4199 = vmatprep.mubr.msk.bf16.mxu0 %vm5215_vm0, %v7190_v0  ;;  %4241 = vmatprep.mubr.msk.bf16.mxu1 %vm5215_vm0, %v7190_v0 }
  0xb2   : > { %4200 = vmatmul.mubr.msk.bf16.gmra.mrb[16].mxu0 %vm523_vm1, %v5577_v32  ;;  %4242 = vmatmul.mubr.msk.bf16.gmra.mrb[16].mxu1 %vm523_vm1, %v5579_v33 }
  0xb3   : > { %4203 = vmatprep.mubr.msk.bf16.mxu0 %vm5215_vm0, %v7190_v0  ;;  %4245 = vmatprep.mubr.msk.bf16.mxu1 %vm5215_vm0, %v7190_v0 }
  0xba   : > { %4204 = vmatmul.mubr.msk.bf16.gmra.mrb[20].mxu0 %vm523_vm1, %v5593_v38  ;;  %4246 = vmatmul.mubr.msk.bf16.gmra.mrb[20].mxu1 %vm523_vm1, %v5595_v39 }
  0xbb   : > { %4207 = vmatprep.mubr.msk.bf16.mxu0 %vm5215_vm0, %v7190_v0  ;;  %4249 = vmatprep.mubr.msk.bf16.mxu1 %vm5215_vm0, %v7190_v0 }
  0xc2   : > { %4208 = vmatmul.mubr.msk.bf16.gmra.mrb[24].mxu0 %vm523_vm1, %v5609_v44  ;;  %4250 = vmatmul.mubr.msk.bf16.gmra.mrb[24].mxu1 %vm523_vm1, %v5611_v45 }
  0xc3   : > { %4211 = vmatprep.mubr.msk.bf16.mxu0 %vm5215_vm0, %v7190_v0  ;;  %4253 = vmatprep.mubr.msk.bf16.mxu1 %vm5215_vm0, %v7190_v0 }
  0xca   : > { %4212 = vmatmul.mubr.msk.bf16.gmra.mrb[28].mxu0 %vm523_vm1, %v5625_v50  ;;  %4254 = vmatmul.mubr.msk.bf16.gmra.mrb[28].mxu1 %vm523_vm1, %v5627_v51 }
  0xcb   : > { %4215 = vmatprep.mubr.msk.bf16.mxu0 %vm5215_vm0, %v7190_v0  ;;  %4257 = vmatprep.mubr.msk.bf16.mxu1 %vm5215_vm0, %v7190_v0 }
  0xd2   : > { %4216 = vmatmul.mubr.msk.bf16.gmra.mrb[32].mxu0 %vm523_vm1, %v5641_v56  ;;  %4258 = vmatmul.mubr.msk.bf16.gmra.mrb[32].mxu1 %vm523_vm1, %v5643_v57 }
  0xd3   : > { %4267 = vmatprep.mubr.msk.bf16.mxu0 %vm5215_vm0, %v7190_v0  ;;  %4309 = vmatprep.mubr.msk.bf16.mxu1 %vm5215_vm0, %v7190_v0 }
  0xda   : > { %4268 = vmatmul.mubr.msk.bf16.vlgmr.msra.gmra.mrb[36].mxu0 %vm523_vm1, %v806_v58  ;;  %4310 = vmatmul.mubr.msk.bf16.vlgmr.msra.gmra.mrb[36].mxu1 %vm523_vm1, %v956_v59 }
  0xdb   : > { %4271 = vmatprep.mubr.msk.bf16.mxu0 %vm5215_vm0, %v7190_v0  ;;  %4313 = vmatprep.mubr.msk.bf16.mxu1 %vm5215_vm0, %v7190_v0 }
  0xdc   : > { %4346 = vmatpush3.bf16.msra.mxu0 %v5479_v1  ;;  %v809_v1 = vmul.bf16 %v5561_v26, %v5561_v26 }
  0xdd   : > { %4347 = vmatprep.subr.bf16.mxu0 %v7190_v0 }
  0xe0   : > { %4348 = vmatpush3.bf16.msra.mxu0 %v5482_v2  ;;  %v959_v2 = vmul.bf16 %v5563_v27, %v5563_v27 }
  0xe1   : > { %4349 = vmatprep.subr.bf16.mxu0 %v7190_v0 }
  0xe2   : > { %4272 = vmatmul.mubr.msk.bf16.gmra.mrb[40].mxu0 %vm523_vm1, %v807_v60  ;;  %4314 = vmatmul.mubr.msk.bf16.gmra.mrb[40].mxu1 %vm523_vm1, %v957_v61 }
  0xe3   : > { %4275 = vmatprep.mubr.msk.bf16.mxu0 %vm5215_vm0, %v7190_v0  ;;  %4317 = vmatprep.mubr.msk.bf16.mxu1 %vm5215_vm0, %v7190_v0 }
  0xe4   : > { %4350 = vmatpush3.bf16.msra.mxu0 %v5487_v3  ;;  %v810_v3 = vmul.bf16 %v5577_v32, %v5577_v32 }
  0xe5   : > { %4441 = vmatprep.subr.bf16.mxu0 %v7190_v0 }
  0xea   : > { %4276 = vmatmul.mubr.msk.bf16.gmra.mrb[44].mxu0 %vm523_vm1, %v808_v62  ;;  %4318 = vmatmul.mubr.msk.bf16.gmra.mrb[44].mxu1 %vm523_vm1, %v958_v63 }
  0xeb   : > { %4279 = vmatprep.mubr.msk.bf16.mxu0 %vm5215_vm0, %v7190_v0  ;;  %4321 = vmatprep.mubr.msk.bf16.mxu1 %vm5215_vm0, %v7190_v0 }
  0xf2   : > { %4280 = vmatmul.mubr.msk.bf16.gmra.mrb[48].mxu0 %vm523_vm1, %v809_v1  ;;  %4322 = vmatmul.mubr.msk.bf16.gmra.mrb[48].mxu1 %vm523_vm1, %v959_v2 }
  0xf3   : > { %4283 = vmatprep.mubr.msk.bf16.mxu0 %vm5215_vm0, %v7190_v0  ;;  %4325 = vmatprep.mubr.msk.bf16.mxu1 %vm5215_vm0, %v7190_v0 }
  0xfa   : > { %4284 = vmatmul.mubr.msk.bf16.gmra.mrb[52].mxu0 %vm523_vm1, %v810_v3  ;;  %4326 = vmatmul.mubr.msk.bf16.gmra.mrb[52].mxu1 %vm523_vm1, %v960_v4 }
  0xfb   : > { %4287 = vmatprep.mubr.msk.bf16.mxu0 %vm5215_vm0, %v7190_v0  ;;  %4329 = vmatprep.mubr.msk.bf16.mxu1 %vm5215_vm0, %v7190_v0 }
 0x102   : > { %4288 = vmatmul.mubr.msk.bf16.gmra.mrb[56].mxu0 %vm523_vm1, %v811_v5  ;;  %4330 = vmatmul.mubr.msk.bf16.gmra.mrb[56].mxu1 %vm523_vm1, %v961_v6 }
 0x103   : > { %4291 = vmatprep.mubr.msk.bf16.mxu0 %vm5215_vm0, %v7190_v0  ;;  %4333 = vmatprep.mubr.msk.bf16.mxu1 %vm5215_vm0, %v7190_v0 }
 0x10a   : > { %4292 = vmatmul.mubr.msk.bf16.gmra.mrb[60].mxu0 %vm523_vm1, %v812_v7  ;;  %4334 = vmatmul.mubr.msk.bf16.gmra.mrb[60].mxu1 %vm523_vm1, %v962_v10  ;;  %v5801_v7 = vld [vmem:[%s7174_s2] sm:$0xff]  }
 0x10b   : > { %4295 = vmatprep.mubr.msk.bf16.mxu0 %vm5215_vm0, %v7190_v0  ;;  %4337 = vmatprep.mubr.msk.bf16.mxu1 %vm5215_vm0, %v7190_v0 }
 0x112   : > { %4296 = vmatmul.mubr.msk.bf16.gmra.mrb[64].mxu0 %vm523_vm1, %v813_v11  ;;  %4338 = vmatmul.mubr.msk.bf16.gmra.mrb[64].mxu1 %vm523_vm1, %v963_v12 }
 0x113   : > { %4299 = vmatprep.mubr.msk.bf16.mxu0 %vm5215_vm0, %v7190_v0  ;;  %4341 = vmatprep.mubr.msk.bf16.mxu1 %vm5215_vm0, %v7190_v0 }
 0x11a   : > { %4300 = vmatmul.mubr.msk.bf16.gmra.mrb[68].mxu0 %vm523_vm1, %v814_v13  ;;  %4342 = vmatmul.mubr.msk.bf16.gmra.mrb[68].mxu1 %vm523_vm1, %v964_v16 }
 0x11b   : > { %4351 = vmatprep.mubr.msk.bf16.mxu0 %vm5215_vm0, %v7190_v0  ;;  %4393 = vmatprep.mubr.msk.bf16.mxu1 %vm5215_vm0, %v7190_v0 }
 0x122   : > { %4352 = vmatmul.mubr.msk.bf16.vlgmr.msra.gmra.mrb[72].mxu0 %vm523_vm1, %v1106_v17 }
 0x123   : > { %4355 = vmatprep.mubr.msk.bf16.mxu0 %vm5215_vm0, %v7190_v0 }
 0x12a   : > { %4356 = vmatmul.mubr.msk.bf16.gmra.mrb[76].mxu0 %vm523_vm1, %v1107_v18 }
 0x12b   : > { %4359 = vmatprep.mubr.msk.bf16.mxu0 %vm5215_vm0, %v7190_v0 }
 0x132   : > { %4360 = vmatmul.mubr.msk.bf16.gmra.mrb[80].mxu0 %vm523_vm1, %v1108_v19 }
 0x133   : > { %4363 = vmatprep.mubr.msk.bf16.mxu0 %vm5215_vm0, %v7190_v0 }
 0x13a   : > { %4364 = vmatmul.mubr.msk.bf16.gmra.mrb[84].mxu0 %vm523_vm1, %v1109_v22 }
 0x13b   : > { %4367 = vmatprep.mubr.msk.bf16.mxu0 %vm5215_vm0, %v7190_v0 }
 0x142   : > { %4368 = vmatmul.mubr.msk.bf16.gmra.mrb[88].mxu0 %vm523_vm1, %v1110_v23 }
 0x143   : > { %4371 = vmatprep.mubr.msk.bf16.mxu0 %vm5215_vm0, %v7190_v0 }
 0x14a   : > { %4372 = vmatmul.mubr.msk.bf16.gmra.mrb[92].mxu0 %vm523_vm1, %v1111_v24  ;;  %v5822_v24 = vld [vmem:[%s7174_s2 + $0x8] sm:$0xff]  }
 0x14b   : > { %4375 = vmatprep.mubr.msk.bf16.mxu0 %vm5215_vm0, %v7190_v0 }
 0x152   : > { %4376 = vmatmul.mubr.msk.bf16.gmra.mrb[96].mxu0 %vm523_vm1, %v1112_v25 }
 0x153   : > { %4379 = vmatprep.mubr.msk.bf16.mxu0 %vm5215_vm0, %v7190_v0 }
 0x15a   : > { %4380 = vmatmul.mubr.msk.bf16.gmra.mrb[100].mxu0 %vm523_vm1, %v1113_v28 }
 0x15b   : > { %4383 = vmatprep.mubr.msk.bf16.mxu0 %vm5215_vm0, %v7190_v0 }
 0x162   : > { %4384 = vmatmul.mubr.msk.bf16.gmra.mrb[104].mxu0 %vm523_vm1, %v1114_v29 }
 0x163   : > { %4447 = vmatprep.mubr.msk.bf16.mxu0 %vm5215_vm0, %v7190_v0 }
 0x165   : > { %v585_v30 = vpop.f32.mrb[0].mxu0  ;;  %v726_v31 = vpop.f32.mrb[0].mxu1 }
 0x166   : > { %v4185_v34 = vpop.f32.mrb[1].mxu0  ;;  %v4227_v35 = vpop.f32.mrb[1].mxu1 }
 0x167   : > { %v588_v36 = vpop.f32.mrb[2].mxu0  ;;  %v729_v37 = vpop.f32.mrb[2].mxu1 }
 0x168   : > { %v656_v40 = vpack.c.bf16 %v588_v36, %v585_v30  ;;  %v4186_v41 = vpop.f32.mrb[3].mxu0  ;;  %v797_v42 = vpack.c.bf16 %v729_v37, %v726_v31  ;;  %v4228_v43 = vpop.f32.mrb[3].mxu1 }
 0x169   : > { %v5842_v41 = vld [vmem:[%s7174_s2 + $0x10] sm:$0xff]  }
 0x16a   : > { %4388 = vmatpush3.bf16.msra.mxu1 %v656_v40  ;;  %4442 = vmatpush3.bf16.msra.mxu0 %v797_v42 }
 0x16b   : > { %4389 = vmatprep.subr.bf16.mxu1 %v7190_v0  ;;  %4443 = vmatprep.subr.bf16.mxu0 %v7190_v0 }
 0x16d   : > { %v593_v46 = vpop.f32.mrb[4].mxu0  ;;  %v734_v47 = vpop.f32.mrb[4].mxu1 }
 0x16e   : > { %v4189_v48 = vpop.f32.mrb[5].mxu0  ;;  %v4231_v49 = vpop.f32.mrb[5].mxu1 }
 0x16f   : > { %v596_v52 = vpop.f32.mrb[6].mxu0  ;;  %v737_v53 = vpop.f32.mrb[6].mxu1 }
 0x170   : > { %v657_v54 = vpack.c.bf16 %v596_v52, %v593_v46  ;;  %v4190_v55 = vpop.f32.mrb[7].mxu0  ;;  %v798_v58 = vpack.c.bf16 %v737_v53, %v734_v47  ;;  %v4232_v59 = vpop.f32.mrb[7].mxu1 }
 0x172   : > { %4390 = vmatpush3.bf16.msra.mxu1 %v657_v54  ;;  %4444 = vmatpush3.bf16.msra.mxu0 %v798_v58 }
 0x173   : > { %4391 = vmatprep.subr.bf16.mxu1 %v7190_v0  ;;  %4445 = vmatprep.subr.bf16.mxu0 %v7190_v0 }
 0x175   : > { %v601_v60 = vpop.f32.mrb[8].mxu0  ;;  %v742_v61 = vpop.f32.mrb[8].mxu1 }
 0x176   : > { %v4193_v62 = vpop.f32.mrb[9].mxu0  ;;  %v4235_v63 = vpop.f32.mrb[9].mxu1 }
 0x177   : > { %v604_v1 = vpop.f32.mrb[10].mxu0  ;;  %v745_v2 = vpop.f32.mrb[10].mxu1 }
 0x178   : > { %v658_v3 = vpack.c.bf16 %v604_v1, %v601_v60  ;;  %v4194_v4 = vpop.f32.mrb[11].mxu0  ;;  %v799_v5 = vpack.c.bf16 %v745_v2, %v742_v61  ;;  %v4236_v6 = vpop.f32.mrb[11].mxu1 }
 0x17a   : > { %4392 = vmatpush3.bf16.msra.mxu1 %v658_v3  ;;  %4446 = vmatpush3.bf16.msra.mxu0 %v799_v5 }
 0x17b   : > { %4405 = vmatprep.subr.bf16.mxu1 %v7190_v0  ;;  %4477 = vmatprep.subr.bf16.mxu0 %v7190_v0 }
 0x17d   : > { %v609_v10 = vpop.f32.mrb[12].mxu0  ;;  %4394 = vmatmul.mubr.msk.bf16.vlgmr.msra.gmra.mrb[72].mxu1 %vm523_vm1, %v5801_v7  ;;  %v5807_v11 = vpop.f32.mrb[12].mxu1  ;;  %4448 = vmatmul.mubr.msk.bf16.vlgmr.msra.gmra.mrb[108].mxu0 %vm523_vm1, %v5801_v7 }
 0x17e   : > { %v4197_v12 = vpop.f32.mrb[13].mxu0  ;;  %4397 = vmatprep.mubr.msk.bf16.mxu1 %vm5215_vm0, %v7190_v0  ;;  %v4239_v13 = vpop.f32.mrb[13].mxu1  ;;  %4451 = vmatprep.mubr.msk.bf16.mxu0 %vm5215_vm0, %v7190_v0 }
 0x17f   : > { %v612_v16 = vpop.f32.mrb[14].mxu0  ;;  %v5815_v17 = vpop.f32.mrb[14].mxu1 }
 0x180   : > { %v659_v18 = vpack.c.bf16 %v612_v16, %v609_v10  ;;  %v4198_v19 = vpop.f32.mrb[15].mxu0  ;;  %v800_v22 = vpack.c.bf16 %v5815_v17, %v5807_v11  ;;  %v4240_v23 = vpop.f32.mrb[15].mxu1 }
 0x182   : > { %4406 = vmatpush3.bf16.msra.mxu1 %v659_v18 }
 0x183   : > { %4407 = vmatprep.subr.bf16.mxu1 %v7190_v0 }
 0x185   : > { %v617_v25 = vpop.f32.mrb[16].mxu0  ;;  %4398 = vmatmul.mubr.msk.bf16.gmra.mrb[76].mxu1 %vm523_vm1, %v5822_v24  ;;  %v5827_v28 = vpop.f32.mrb[16].mxu1  ;;  %4452 = vmatmul.mubr.msk.bf16.gmra.mrb[112].mxu0 %vm523_vm1, %v5822_v24 }
 0x186   : > { %v4201_v29 = vpop.f32.mrb[17].mxu0  ;;  %4401 = vmatprep.mubr.msk.bf16.mxu1 %vm5215_vm0, %v7190_v0  ;;  %v4243_v30 = vpop.f32.mrb[17].mxu1  ;;  %4455 = vmatprep.mubr.msk.bf16.mxu0 %vm5215_vm0, %v7190_v0 }
 0x187   : > { %v620_v31 = vpop.f32.mrb[18].mxu0  ;;  %v5835_v34 = vpop.f32.mrb[18].mxu1 }
 0x188   : > { %v660_v35 = vpack.c.bf16 %v620_v31, %v617_v25  ;;  %v4202_v36 = vpop.f32.mrb[19].mxu0  ;;  %v801_v37 = vpack.c.bf16 %v5835_v34, %v5827_v28  ;;  %v4244_v40 = vpop.f32.mrb[19].mxu1 }
 0x18a   : > { %4408 = vmatpush3.bf16.msra.mxu1 %v660_v35 }
 0x18b   : > { %4409 = vmatprep.subr.bf16.mxu1 %v7190_v0 }
 0x18d   : > { %v625_v42 = vpop.f32.mrb[20].mxu0  ;;  %4402 = vmatmul.mubr.msk.bf16.gmra.mrb[80].mxu1 %vm523_vm1, %v5842_v41  ;;  %v5847_v43 = vpop.f32.mrb[20].mxu1  ;;  %4456 = vmatmul.mubr.msk.bf16.gmra.mrb[116].mxu0 %vm523_vm1, %v5842_v41 }
 0x18e   : > { %v4205_v46 = vpop.f32.mrb[21].mxu0  ;;  %4411 = vmatprep.mubr.msk.bf16.mxu1 %vm5215_vm0, %v7190_v0  ;;  %v4247_v47 = vpop.f32.mrb[21].mxu1  ;;  %4483 = vmatprep.mubr.msk.bf16.mxu0 %vm5215_vm0, %v7190_v0 }
 0x18f   : > { %v628_v48 = vpop.f32.mrb[22].mxu0  ;;  %v5855_v49 = vpop.f32.mrb[22].mxu1 }
 0x190   : > { %v661_v52 = vpack.c.bf16 %v628_v48, %v625_v42  ;;  %v4206_v53 = vpop.f32.mrb[23].mxu0  ;;  %v802_v54 = vpack.c.bf16 %v5855_v49, %v5847_v43  ;;  %v4248_v55 = vpop.f32.mrb[23].mxu1 }
 0x192   : > { %4410 = vmatpush3.bf16.msra.mxu1 %v661_v52 }
 0x193   : > { %4423 = vmatprep.subr.bf16.mxu1 %v7190_v0 }
 0x195   : > { %v633_v58 = vpop.f32.mrb[24].mxu0  ;;  %4412 = vmatmul.mubr.msk.bf16.vlgmr.msra.gmra.mrb[84].mxu1 %vm523_vm1, %v5801_v7  ;;  %v774_v59 = vpop.f32.mrb[24].mxu1 }
 0x196   : > { %v4209_v60 = vpop.f32.mrb[25].mxu0  ;;  %4415 = vmatprep.mubr.msk.bf16.mxu1 %vm5215_vm0, %v7190_v0  ;;  %v4251_v61 = vpop.f32.mrb[25].mxu1 }
 0x197   : > { %v636_v62 = vpop.f32.mrb[26].mxu0  ;;  %v777_v63 = vpop.f32.mrb[26].mxu1 }
 0x198   : > { %v662_v1 = vpack.c.bf16 %v636_v62, %v633_v58  ;;  %v4210_v2 = vpop.f32.mrb[27].mxu0  ;;  %v803_v3 = vpack.c.bf16 %v777_v63, %v774_v59  ;;  %v4252_v4 = vpop.f32.mrb[27].mxu1 }
 0x19a   : > { %4424 = vmatpush3.bf16.msra.mxu1 %v662_v1  ;;  %4478 = vmatpush3.bf16.msra.mxu0 %v803_v3 }
 0x19b   : > { %4425 = vmatprep.subr.bf16.mxu1 %v7190_v0  ;;  %4479 = vmatprep.subr.bf16.mxu0 %v7190_v0 }
 0x19d   : > { %v641_v5 = vpop.f32.mrb[28].mxu0  ;;  %4416 = vmatmul.mubr.msk.bf16.gmra.mrb[88].mxu1 %vm523_vm1, %v5822_v24  ;;  %v782_v6 = vpop.f32.mrb[28].mxu1 }
 0x19e   : > { %v4213_v10 = vpop.f32.mrb[29].mxu0  ;;  %4419 = vmatprep.mubr.msk.bf16.mxu1 %vm5215_vm0, %v7190_v0  ;;  %v4255_v12 = vpop.f32.mrb[29].mxu1 }
 0x19f   : > { %v644_v13 = vpop.f32.mrb[30].mxu0  ;;  %v785_v16 = vpop.f32.mrb[30].mxu1 }
 0x1a0   : > { %v663_v18 = vpack.c.bf16 %v644_v13, %v641_v5  ;;  %v4214_v19 = vpop.f32.mrb[31].mxu0  ;;  %v804_v23 = vpack.c.bf16 %v785_v16, %v782_v6  ;;  %v4256_v25 = vpop.f32.mrb[31].mxu1 }
 0x1a2   : > { %4426 = vmatpush3.bf16.msra.mxu1 %v663_v18  ;;  %4480 = vmatpush3.bf16.msra.mxu0 %v804_v23 }
 0x1a3   : > { %4427 = vmatprep.subr.bf16.mxu1 %v7190_v0  ;;  %4481 = vmatprep.subr.bf16.mxu0 %v7190_v0 }
 0x1a5   : > { %v649_v29 = vpop.f32.mrb[32].mxu0  ;;  %4420 = vmatmul.mubr.msk.bf16.gmra.mrb[92].mxu1 %vm523_vm1, %v5842_v41  ;;  %v790_v30 = vpop.f32.mrb[32].mxu1 }
 0x1a6   : > { %v4217_v31 = vpop.f32.mrb[33].mxu0  ;;  %4429 = vmatprep.mubr.msk.bf16.mxu1 %vm5215_vm0, %v7190_v0  ;;  %v4259_v35 = vpop.f32.mrb[33].mxu1 }
 0x1a7   : > { %v652_v36 = vpop.f32.mrb[34].mxu0  ;;  %v793_v40 = vpop.f32.mrb[34].mxu1 }
 0x1a8   : > { %v664_v42 = vpack.c.bf16 %v652_v36, %v649_v29  ;;  %v4218_v46 = vpop.f32.mrb[35].mxu0  ;;  %v805_v47 = vpack.c.bf16 %v793_v40, %v790_v30  ;;  %v4260_v48 = vpop.f32.mrb[35].mxu1 }
 0x1aa   : > { %4428 = vmatpush3.bf16.msra.mxu1 %v664_v42  ;;  %4482 = vmatpush3.bf16.msra.mxu0 %v805_v47 }
 0x1ab   : > { %4459 = vmatprep.subr.bf16.mxu1 %v7190_v0  ;;  %4513 = vmatprep.subr.bf16.mxu0 %v7190_v0 }
 0x1ad   : > { %v876_v52 = vpop.f32.mrb[36].mxu0  ;;  %4430 = vmatmul.mubr.msk.bf16.vlgmr.msra.gmra.mrb[96].mxu1 %vm523_vm1, %v5801_v7  ;;  %4484 = vmatmul.mubr.msk.bf16.vlgmr.msra.gmra.mrb[120].mxu0 %vm523_vm1, %v5801_v7  ;;  %v5882_v53 = vpop.f32.mrb[36].mxu1 }
 0x1ae   : > { %v4269_v55 = vpop.f32.mrb[37].mxu0  ;;  %4460 = vmatpush3.bf16.msra.mxu1 %v800_v22  ;;  %4433 = vmatprep.mubr.msk.bf16.mxu1 %vm5215_vm0, %v7190_v0  ;;  %v4311_v58 = vpop.f32.mrb[37].mxu1 }
 0x1af   : > { %v879_v59 = vpop.f32.mrb[38].mxu0  ;;  %4461 = vmatprep.subr.bf16.mxu1 %v7190_v0  ;;  %4487 = vmatprep.mubr.msk.bf16.mxu0 %vm5215_vm0, %v7190_v0  ;;  %v5892_v60 = vpop.f32.mrb[38].mxu1 }
 0x1b0   : > { %v947_v61 = vpack.c.bf16 %v879_v59, %v876_v52  ;;  %v4270_v62 = vpop.f32.mrb[39].mxu0  ;;  %v1097_v63 = vpack.c.bf16 %v5892_v60, %v5882_v53  ;;  %v4312_v1 = vpop.f32.mrb[39].mxu1 }
 0x1b2   : > { %4462 = vmatpush3.bf16.msra.mxu1 %v801_v37 }
 0x1b3   : > { %4463 = vmatprep.subr.bf16.mxu1 %v7190_v0 }
 0x1b5   : > { %v884_v11 = vpop.f32.mrb[40].mxu0  ;;  %4434 = vmatmul.mubr.msk.bf16.gmra.mrb[100].mxu1 %vm523_vm1, %v5822_v24  ;;  %4488 = vmatmul.mubr.msk.bf16.gmra.mrb[124].mxu0 %vm523_vm1, %v5822_v24  ;;  %v5904_v17 = vpop.f32.mrb[40].mxu1 }
 0x1b6   : > { %v4273_v22 = vpop.f32.mrb[41].mxu0  ;;  %4464 = vmatpush3.bf16.msra.mxu1 %v802_v54  ;;  %4437 = vmatprep.mubr.msk.bf16.mxu1 %vm5215_vm0, %v7190_v0  ;;  %v4315_v28 = vpop.f32.mrb[41].mxu1 }
 0x1b7   : > { %v887_v34 = vpop.f32.mrb[42].mxu0  ;;  %4495 = vmatprep.subr.bf16.mxu1 %v7190_v0  ;;  %4491 = vmatprep.mubr.msk.bf16.mxu0 %vm5215_vm0, %v7190_v0  ;;  %v5914_v37 = vpop.f32.mrb[42].mxu1 }
 0x1b8   : > { %v948_v2 = vpack.c.bf16 %v887_v34, %v884_v11  ;;  %v4274_v3 = vpop.f32.mrb[43].mxu0  ;;  %v1098_v4 = vpack.c.bf16 %v5914_v37, %v5904_v17  ;;  %v4316_v5 = vpop.f32.mrb[43].mxu1 }
 0x1bd   : > { %v892_v43 = vpop.f32.mrb[44].mxu0  ;;  %4438 = vmatmul.mubr.msk.bf16.gmra.mrb[104].mxu1 %vm523_vm1, %v5842_v41  ;;  %4492 = vmatmul.mubr.msk.bf16.gmra.mrb[128].mxu0 %vm523_vm1, %v5842_v41  ;;  %v5922_v49 = vpop.f32.mrb[44].mxu1 }
 0x1be   : > { %v4277_v54 = vpop.f32.mrb[45].mxu0  ;;  %4465 = vmatprep.mubr.msk.bf16.mxu1 %vm5215_vm0, %v7190_v0  ;;  %v4319_v6 = vpop.f32.mrb[45].mxu1  ;;  %4519 = vmatprep.mubr.msk.bf16.mxu0 %vm5215_vm0, %v7190_v0 }
 0x1bf   : > { %v895_v10 = vpop.f32.mrb[46].mxu0  ;;  %v5928_v12 = vpop.f32.mrb[46].mxu1 }
 0x1c0   : > { %v949_v13 = vpack.c.bf16 %v895_v10, %v892_v43  ;;  %v4278_v16 = vpop.f32.mrb[47].mxu0  ;;  %v1099_v18 = vpack.c.bf16 %v5928_v12, %v5922_v49  ;;  %v4320_v19 = vpop.f32.mrb[47].mxu1 }
 0x1c5   : > { %v900_v23 = vpop.f32.mrb[48].mxu0  ;;  %4466 = vmatmul.mubr.msk.bf16.vlgmr.msra.gmra.mrb[108].mxu1 %vm523_vm1, %v5801_v7  ;;  %v5934_v25 = vpop.f32.mrb[48].mxu1 }
 0x1c6   : > { %4496 = vmatpush3.bf16.msra.mxu1 %v947_v61  ;;  %v4281_v29 = vpop.f32.mrb[49].mxu0  ;;  %4469 = vmatprep.mubr.msk.bf16.mxu1 %vm5215_vm0, %v7190_v0  ;;  %v4323_v30 = vpop.f32.mrb[49].mxu1 }
 0x1c7   : > { %v903_v31 = vpop.f32.mrb[50].mxu0  ;;  %4497 = vmatprep.subr.bf16.mxu1 %v7190_v0  ;;  %v5939_v35 = vpop.f32.mrb[50].mxu1 }
 0x1c8   : > { %v950_v36 = vpack.c.bf16 %v903_v31, %v900_v23  ;;  %v4282_v40 = vpop.f32.mrb[51].mxu0  ;;  %v1100_v42 = vpack.c.bf16 %v5939_v35, %v5934_v25  ;;  %v4324_v46 = vpop.f32.mrb[51].mxu1 }
 0x1ca   : > { %4498 = vmatpush3.bf16.msra.mxu1 %v948_v2  ;;  %4514 = vmatpush3.bf16.msra.mxu0 %v950_v36 }
 0x1cb   : > { %4499 = vmatprep.subr.bf16.mxu1 %v7190_v0  ;;  %4515 = vmatprep.subr.bf16.mxu0 %v7190_v0 }
 0x1cd   : > { %v908_v47 = vpop.f32.mrb[52].mxu0  ;;  %4470 = vmatmul.mubr.msk.bf16.gmra.mrb[112].mxu1 %vm523_vm1, %v5822_v24  ;;  %v5947_v48 = vpop.f32.mrb[52].mxu1 }
 0x1ce   : > { %4500 = vmatpush3.bf16.msra.mxu1 %v949_v13  ;;  %v4285_v52 = vpop.f32.mrb[53].mxu0  ;;  %4473 = vmatprep.mubr.msk.bf16.mxu1 %vm5215_vm0, %v7190_v0  ;;  %v4327_v55 = vpop.f32.mrb[53].mxu1 }
 0x1cf   : > { %v911_v58 = vpop.f32.mrb[54].mxu0  ;;  %4531 = vmatprep.subr.bf16.mxu1 %v7190_v0  ;;  %v5952_v59 = vpop.f32.mrb[54].mxu1 }
 0x1d0   : > { %v951_v61 = vpack.c.bf16 %v911_v58, %v908_v47  ;;  %v4286_v62 = vpop.f32.mrb[55].mxu0  ;;  %v1101_v1 = vpack.c.bf16 %v5952_v59, %v5947_v48  ;;  %v4328_v11 = vpop.f32.mrb[55].mxu1 }
 0x1d2   : > { %4516 = vmatpush3.bf16.msra.mxu0 %v951_v61 }
 0x1d3   : > { %4517 = vmatprep.subr.bf16.mxu0 %v7190_v0 }
 0x1d5   : > { %v916_v22 = vpop.f32.mrb[56].mxu0  ;;  %4474 = vmatmul.mubr.msk.bf16.gmra.mrb[116].mxu1 %vm523_vm1, %v5842_v41  ;;  %v5959_v28 = vpop.f32.mrb[56].mxu1 }
 0x1d6   : > { %v4289_v34 = vpop.f32.mrb[57].mxu0  ;;  %4501 = vmatprep.mubr.msk.bf16.mxu1 %vm5215_vm0, %v7190_v0  ;;  %v4331_v2 = vpop.f32.mrb[57].mxu1 }
 0x1d7   : > { %v919_v3 = vpop.f32.mrb[58].mxu0  ;;  %v5963_v5 = vpop.f32.mrb[58].mxu1 }
 0x1d8   : > { %v952_v43 = vpack.c.bf16 %v919_v3, %v916_v22  ;;  %v4290_v54 = vpop.f32.mrb[59].mxu0  ;;  %v1102_v6 = vpack.c.bf16 %v5963_v5, %v5959_v28  ;;  %v4332_v10 = vpop.f32.mrb[59].mxu1 }
 0x1da   : > { %4518 = vmatpush3.bf16.msra.mxu0 %v952_v43 }
 0x1db   : > { %4549 = vmatprep.subr.bf16.mxu0 %v7190_v0 }
 0x1dd   : > { %v924_v13 = vpop.f32.mrb[60].mxu0  ;;  %4502 = vmatmul.mubr.msk.bf16.vlgmr.msra.gmra.mrb[120].mxu1 %vm523_vm1, %v5801_v7  ;;  %4520 = vmatmul.mubr.msk.bf16.vlgmr.msra.gmra.mrb[132].mxu0 %vm523_vm1, %v5801_v7  ;;  %v1074_v16 = vpop.f32.mrb[60].mxu1 }
 0x1de   : > { %v4293_v19 = vpop.f32.mrb[61].mxu0  ;;  %4550 = vmatpush3.bf16.msra.mxu0 %v1097_v63  ;;  %4505 = vmatprep.mubr.msk.bf16.mxu1 %vm5215_vm0, %v7190_v0  ;;  %v4335_v23 = vpop.f32.mrb[61].mxu1 }
 0x1df   : > { %v927_v29 = vpop.f32.mrb[62].mxu0  ;;  %4551 = vmatprep.subr.bf16.mxu0 %v7190_v0  ;;  %4523 = vmatprep.mubr.msk.bf16.mxu0 %vm5215_vm0, %v7190_v0  ;;  %v1077_v30 = vpop.f32.mrb[62].mxu1 }
 0x1e0   : > { %v953_v31 = vpack.c.bf16 %v927_v29, %v924_v13  ;;  %v4294_v36 = vpop.f32.mrb[63].mxu0  ;;  %v1103_v40 = vpack.c.bf16 %v1077_v30, %v1074_v16  ;;  %v4336_v46 = vpop.f32.mrb[63].mxu1 }
 0x1e2   : > { %4532 = vmatpush3.bf16.msra.mxu1 %v953_v31  ;;  %4552 = vmatpush3.bf16.msra.mxu0 %v1098_v4 }
 0x1e3   : > { %4553 = vmatprep.subr.bf16.mxu0 %v7190_v0  ;;  %4533 = vmatprep.subr.bf16.mxu1 %v7190_v0 }
 0x1e5   : > { %v932_v53 = vpop.f32.mrb[64].mxu0  ;;  %4506 = vmatmul.mubr.msk.bf16.gmra.mrb[124].mxu1 %vm523_vm1, %v5822_v24  ;;  %4524 = vmatmul.mubr.msk.bf16.gmra.mrb[136].mxu0 %vm523_vm1, %v5822_v24  ;;  %v1082_v60 = vpop.f32.mrb[64].mxu1 }
 0x1e6   : > { %v4297_v63 = vpop.f32.mrb[65].mxu0  ;;  %4554 = vmatpush3.bf16.msra.mxu0 %v1099_v18  ;;  %4509 = vmatprep.mubr.msk.bf16.mxu1 %vm5215_vm0, %v7190_v0  ;;  %v4339_v17 = vpop.f32.mrb[65].mxu1 }
 0x1e7   : > { %v935_v37 = vpop.f32.mrb[66].mxu0  ;;  %4527 = vmatprep.mubr.msk.bf16.mxu0 %vm5215_vm0, %v7190_v0  ;;  %4585 = vmatprep.subr.bf16.mxu0 %v7190_v0  ;;  %v1085_v4 = vpop.f32.mrb[66].mxu1 }
 0x1e8   : > { %v954_v47 = vpack.c.bf16 %v935_v37, %v932_v53  ;;  %v4298_v52 = vpop.f32.mrb[67].mxu0  ;;  %v1104_v55 = vpack.c.bf16 %v1085_v4, %v1082_v60  ;;  %v4340_v58 = vpop.f32.mrb[67].mxu1 }
 0x1ea   : > { %4534 = vmatpush3.bf16.msra.mxu1 %v954_v47 }
 0x1eb   : > { %4535 = vmatprep.subr.bf16.mxu1 %v7190_v0 }
 0x1ed   : > { %v940_v49 = vpop.f32.mrb[68].mxu0  ;;  %4510 = vmatmul.mubr.msk.bf16.gmra.mrb[128].mxu1 %vm523_vm1, %v5842_v41  ;;  %4528 = vmatmul.mubr.msk.bf16.gmra.mrb[140].mxu0 %vm523_vm1, %v5842_v41  ;;  %v1090_v12 = vpop.f32.mrb[68].mxu1 }
 0x1ee   : > { %v4301_v18 = vpop.f32.mrb[69].mxu0  ;;  %4537 = vmatprep.mubr.msk.bf16.mxu1 %vm5215_vm0, %v7190_v0  ;;  %4555 = vmatprep.mubr.msk.bf16.mxu0 %vm5215_vm0, %v7190_v0  ;;  %v4343_v61 = vpop.f32.mrb[69].mxu1 }
 0x1ef   : > { %v943_v62 = vpop.f32.mrb[70].mxu0  ;;  %v1093_v11 = vpop.f32.mrb[70].mxu1  ;;  %v4895_v18 = vld [vmem:[%s7177_s5 + $0x8] sm:$0xff]  }
 0x1f0   : > { %v955_v22 = vpack.c.bf16 %v943_v62, %v940_v49  ;;  %v4302_v34 = vpop.f32.mrb[71].mxu0  ;;  %v1105_v2 = vpack.c.bf16 %v1093_v11, %v1090_v12  ;;  %v4344_v3 = vpop.f32.mrb[71].mxu1  ;;  %v4896_v11 = vld [vmem:[%s7177_s5 + $0x10] sm:$0xff]  }
 0x1f2   : > { %4536 = vmatpush3.bf16.msra.mxu1 %v955_v22 }
 0x1f3   : > { %4567 = vmatprep.subr.bf16.mxu1 %v7190_v0 }
 0x1f5   : > { %v1176_v43 = vpop.f32.mrb[72].mxu0  ;;  %4538 = vmatmul.mubr.msk.bf16.vlgmr.msra.gmra.mrb[132].mxu1 %vm523_vm1, %v5801_v7  ;;  %4556 = vmatmul.mubr.msk.bf16.vlgmr.msra.gmra.mrb[144].mxu0 %vm523_vm1, %v5801_v7 }
 0x1f6   : > { %v4353_v54 = vpop.f32.mrb[73].mxu0  ;;  %4568 = vmatpush3.bf16.msra.mxu1 %v1100_v42  ;;  %4586 = vmatpush3.bf16.msra.mxu0 %v1103_v40 }
 0x1f7   : > { %v1179_v10 = vpop.f32.mrb[74].mxu0  ;;  %4569 = vmatprep.subr.bf16.mxu1 %v7190_v0  ;;  %4541 = vmatprep.mubr.msk.bf16.mxu1 %vm5215_vm0, %v7190_v0 }
 0x1f8   : > { %v1247_v13 = vpack.c.bf16 %v1179_v10, %v1176_v43  ;;  %v4354_v16 = vpop.f32.mrb[75].mxu0  ;;  %4559 = vmatprep.mubr.msk.bf16.mxu0 %vm5215_vm0, %v7190_v0  ;;  %4587 = vmatprep.subr.bf16.mxu0 %v7190_v0 }
 0x1fa   : > { %4570 = vmatpush3.bf16.msra.mxu1 %v1101_v1  ;;  %4588 = vmatpush3.bf16.msra.mxu0 %v1104_v55  ;;  %v4894_v55 = vld [vmem:[%s7177_s5] sm:$0xff]  }
 0x1fb   : > { %4571 = vmatprep.subr.bf16.mxu1 %v7190_v0  ;;  %4589 = vmatprep.subr.bf16.mxu0 %v7190_v0 }
 0x1fd   : > { %v1184_v25 = vpop.f32.mrb[76].mxu0  ;;  %4542 = vmatmul.mubr.msk.bf16.gmra.mrb[136].mxu1 %vm523_vm1, %v5822_v24  ;;  %4560 = vmatmul.mubr.msk.bf16.gmra.mrb[148].mxu0 %vm523_vm1, %v5822_v24 }
 0x1fe   : > { %v4357_v35 = vpop.f32.mrb[77].mxu0  ;;  %4572 = vmatpush3.bf16.msra.mxu1 %v1102_v6  ;;  %4545 = vmatprep.mubr.msk.bf16.mxu1 %vm5215_vm0, %v7190_v0 }
 0x1ff   : > { %v1187_v42 = vpop.f32.mrb[78].mxu0  ;;  %4563 = vmatprep.mubr.msk.bf16.mxu0 %vm5215_vm0, %v7190_v0  ;;  %4590 = vmatpush3.bf16.msra.mxu0 %v1105_v2 }
 0x200   : > { %v1248_v48 = vpack.c.bf16 %v1187_v42, %v1184_v25  ;;  %v4358_v59 = vpop.f32.mrb[79].mxu0  ;;  %4603 = vmatprep.subr.bf16.mxu1 %v7190_v0  ;;  %4621 = vmatprep.subr.bf16.mxu0 %v7190_v0 }
 0x205   : > { %v1192_v1 = vpop.f32.mrb[80].mxu0  ;;  %4546 = vmatmul.mubr.msk.bf16.gmra.mrb[140].mxu1 %vm523_vm1, %v5842_v41  ;;  %4564 = vmatmul.mubr.msk.bf16.gmra.mrb[152].mxu0 %vm523_vm1, %v5842_v41 }
 0x206   : > { %v4361_v28 = vpop.f32.mrb[81].mxu0  ;;  %4573 = vmatprep.mubr.msk.bf16.mxu1 %vm5215_vm0, %v7190_v0  ;;  %4591 = vmatprep.mubr.msk.bf16.mxu0 %vm5215_vm0, %v7190_v0 }
 0x207   : > { %v1195_v5 = vpop.f32.mrb[82].mxu0 }
 0x208   : > { %v1249_v6 = vpack.c.bf16 %v1195_v5, %v1192_v1  ;;  %v4362_v19 = vpop.f32.mrb[83].mxu0 }
 0x20d   : > { %v1200_v23 = vpop.f32.mrb[84].mxu0  ;;  %4574 = vmatmul.mubr.msk.bf16.vlgmr.msra.gmra.mrb[144].mxu1 %vm523_vm1, %v5801_v7  ;;  %4592 = vmatmul.mubr.msk.bf16.vlgmr.msra.gmra.mrb[156].mxu0 %vm523_vm1, %v5801_v7 }
 0x20e   : > { %4604 = vmatpush3.bf16.msra.mxu1 %v1247_v13  ;;  %v4365_v29 = vpop.f32.mrb[85].mxu0  ;;  %4577 = vmatprep.mubr.msk.bf16.mxu1 %vm5215_vm0, %v7190_v0 }
 0x20f   : > { %v1203_v30 = vpop.f32.mrb[86].mxu0  ;;  %4605 = vmatprep.subr.bf16.mxu1 %v7190_v0  ;;  %4595 = vmatprep.mubr.msk.bf16.mxu0 %vm5215_vm0, %v7190_v0 }
 0x210   : > { %v1250_v31 = vpack.c.bf16 %v1203_v30, %v1200_v23  ;;  %v4366_v36 = vpop.f32.mrb[87].mxu0 }
 0x212   : > { %4606 = vmatpush3.bf16.msra.mxu1 %v1248_v48  ;;  %4622 = vmatpush3.bf16.msra.mxu0 %v1250_v31 }
 0x213   : > { %4607 = vmatprep.subr.bf16.mxu1 %v7190_v0  ;;  %4623 = vmatprep.subr.bf16.mxu0 %v7190_v0 }
 0x215   : > { %v1208_v40 = vpop.f32.mrb[88].mxu0  ;;  %4578 = vmatmul.mubr.msk.bf16.gmra.mrb[148].mxu1 %vm523_vm1, %v5822_v24  ;;  %4596 = vmatmul.mubr.msk.bf16.gmra.mrb[160].mxu0 %vm523_vm1, %v5822_v24 }
 0x216   : > { %4608 = vmatpush3.bf16.msra.mxu1 %v1249_v6  ;;  %v4369_v46 = vpop.f32.mrb[89].mxu0  ;;  %4581 = vmatprep.mubr.msk.bf16.mxu1 %vm5215_vm0, %v7190_v0 }
 0x217   : > { %v1211_v53 = vpop.f32.mrb[90].mxu0  ;;  %4599 = vmatprep.mubr.msk.bf16.mxu0 %vm5215_vm0, %v7190_v0  ;;  %4639 = vmatprep.subr.bf16.mxu1 %v7190_v0 }
 0x218   : > { %v1251_v60 = vpack.c.bf16 %v1211_v53, %v1208_v40  ;;  %v4370_v63 = vpop.f32.mrb[91].mxu0 }
 0x21a   : > { %4624 = vmatpush3.bf16.msra.mxu0 %v1251_v60 }
 0x21b   : > { %4625 = vmatprep.subr.bf16.mxu0 %v7190_v0 }
 0x21d   : > { %v1216_v17 = vpop.f32.mrb[92].mxu0  ;;  %4582 = vmatmul.mubr.msk.bf16.gmra.mrb[152].mxu1 %vm523_vm1, %v5842_v41  ;;  %4600 = vmatmul.mubr.msk.bf16.gmra.mrb[164].mxu0 %vm523_vm1, %v5842_v41 }
 0x21e   : > { %v4373_v37 = vpop.f32.mrb[93].mxu0  ;;  %4609 = vmatprep.mubr.msk.bf16.mxu1 %vm5215_vm0, %v7190_v0  ;;  %4627 = vmatprep.mubr.msk.bf16.mxu0 %vm5215_vm0, %v7190_v0 }
 0x21f   : > { %v1219_v4 = vpop.f32.mrb[94].mxu0 }
 0x220   : > { %v1252_v47 = vpack.c.bf16 %v1219_v4, %v1216_v17  ;;  %v4374_v52 = vpop.f32.mrb[95].mxu0 }
 0x222   : > { %4626 = vmatpush3.bf16.msra.mxu0 %v1252_v47 }
 0x223   : > { %4657 = vmatprep.subr.bf16.mxu0 %v7190_v0 }
 0x225   : > { %4610 = vmatmul.mubr.msk.bf16.vlgmr.msra.gmra.mrb[156].mxu1 %vm523_vm1, %v5801_v7  ;;  %4628 = vmatmul.mubr.msk.bf16.vlgmr.msra.gmra.mrb[168].mxu0 %vm523_vm1, %v5801_v7  ;;  %v1224_v58 = vpop.f32.mrb[96].mxu0 }
 0x226   : > { %4613 = vmatprep.mubr.msk.bf16.mxu1 %vm5215_vm0, %v7190_v0  ;;  %4631 = vmatprep.mubr.msk.bf16.mxu0 %vm5215_vm0, %v7190_v0  ;;  %v4377_v49 = vpop.f32.mrb[97].mxu0 }
 0x227   : > { %v1227_v12 = vpop.f32.mrb[98].mxu0  ;;  %4658 = vmatpush3.bf16.msra.mxu0 %v4894_v55 }
 0x228   : > { %v1253_v61 = vpack.c.bf16 %v1227_v12, %v1224_v58  ;;  %v4378_v62 = vpop.f32.mrb[99].mxu0  ;;  %4659 = vmatprep.subr.bf16.mxu0 %v7190_v0 }
 0x22a   : > { %4640 = vmatpush3.bf16.msra.mxu1 %v1253_v61 }
 0x22b   : > { %4641 = vmatprep.subr.bf16.mxu1 %v7190_v0  ;;  %4660 = vmatpush3.bf16.msra.mxu0 %v4895_v18 }
 0x22c   : > { %4661 = vmatprep.subr.bf16.mxu0 %v7190_v0 }
 0x22d   : > { %4614 = vmatmul.mubr.msk.bf16.gmra.mrb[160].mxu1 %vm523_vm1, %v5822_v24  ;;  %4632 = vmatmul.mubr.msk.bf16.gmra.mrb[172].mxu0 %vm523_vm1, %v5822_v24  ;;  %v1232_v22 = vpop.f32.mrb[100].mxu0 }
 0x22e   : > { %v4381_v34 = vpop.f32.mrb[101].mxu0  ;;  %4617 = vmatprep.mubr.msk.bf16.mxu1 %vm5215_vm0, %v7190_v0  ;;  %4635 = vmatprep.mubr.msk.bf16.mxu0 %vm5215_vm0, %v7190_v0 }
 0x22f   : > { %v1235_v2 = vpop.f32.mrb[102].mxu0  ;;  %4662 = vmatpush3.bf16.msra.mxu0 %v4896_v11 }
 0x230   : > { %v1254_v3 = vpack.c.bf16 %v1235_v2, %v1232_v22  ;;  %v4382_v43 = vpop.f32.mrb[103].mxu0 }
 0x232   : > { %4642 = vmatpush3.bf16.msra.mxu1 %v1254_v3 }
 0x233   : > { %4643 = vmatprep.subr.bf16.mxu1 %v7190_v0 }
 0x235   : > { %v1240_v54 = vpop.f32.mrb[104].mxu0  ;;  %4618 = vmatmul.mubr.msk.bf16.gmra.mrb[164].mxu1 %vm523_vm1, %v5842_v41  ;;  %4636 = vmatmul.mubr.msk.bf16.gmra.mrb[176].mxu0 %vm523_vm1, %v5842_v41 }
 0x236   : > { %v4385_v10 = vpop.f32.mrb[105].mxu0  ;;  %4645 = vmatprep.mubr.msk.bf16.mxu1 %vm5215_vm0, %v7190_v0  ;;  %4663 = vmatprep.mubr.msk.bf16.mxu0 %vm5215_vm0, %v7190_v0 }
 0x237   : > { %v1243_v13 = vpop.f32.mrb[106].mxu0 }
 0x238   : > { %v1255_v16 = vpack.c.bf16 %v1243_v13, %v1240_v54  ;;  %v4386_v25 = vpop.f32.mrb[107].mxu0 }
 0x23a   : > { %4644 = vmatpush3.bf16.msra.mxu1 %v1255_v16 }
 0x23d   : > { %4646 = vmatmul.mubr.msk.bf16.vlgmr.msra.gmra.mrb[168].mxu1 %vm523_vm1, %v5801_v7  ;;  %4664 = vmatmul.mubr.msk.bf16.vlgmr.msra.gmra.mrb[180].mxu0 %vm523_vm1, %v5497_v8 }
 0x23e   : > { %4649 = vmatprep.mubr.msk.bf16.mxu1 %vm5215_vm0, %v7190_v0  ;;  %4667 = vmatprep.mubr.msk.bf16.mxu0 %vm5215_vm0, %v7190_v0 }
 0x245   : > { %4650 = vmatmul.mubr.msk.bf16.gmra.mrb[172].mxu1 %vm523_vm1, %v5822_v24  ;;  %4668 = vmatmul.mubr.msk.bf16.gmra.mrb[184].mxu0 %vm523_vm1, %v5521_v14 }
 0x246   : > { %4653 = vmatprep.mubr.msk.bf16.mxu1 %vm5215_vm0, %v7190_v0  ;;  %4671 = vmatprep.mubr.msk.bf16.mxu0 %vm5215_vm0, %v7190_v0 }
 0x24d   : > { %4654 = vmatmul.mubr.msk.bf16.gmra.mrb[176].mxu1 %vm523_vm1, %v5842_v41  ;;  %4672 = vmatmul.mubr.msk.bf16.gmra.mrb[188].mxu0 %vm523_vm1, %v5545_v20 }
 0x24e   : > { %4675 = vmatprep.mubr.msk.bf16.mxu0 %vm5215_vm0, %v7190_v0 }
 0x250   : > { %v1320_v8 = vpop.f32.mrb[72].mxu1  ;;  %v1491_v7 = vpop.f32.mrb[108].mxu0 }
 0x251   : > { %v6135_v24 = vmul.f32 %v1320_v8, %v1320_v8  ;;  %v6137_v14 = vmul.f32 %v1491_v7, %v1491_v7  ;;  %v6139_v35 = vmul.f32 %v1491_v7, %v1320_v8  ;;  %v4395_v42 = vpop.f32.mrb[73].mxu1  ;;  %v4449_v48 = vpop.f32.mrb[109].mxu0 }
 0x252   : > { %v1323_v59 = vpop.f32.mrb[74].mxu1  ;;  %v1494_v1 = vpop.f32.mrb[110].mxu0 }
 0x253   : > { %v2285_v41 = vadd.f32 %v6137_v14, %v6135_v24  ;;  %v6143_v28 = vmul.f32 %v1323_v59, %v1323_v59  ;;  %v6145_v20 = vmul.f32 %v1494_v1, %v1494_v1  ;;  %v4396_v5 = vpop.f32.mrb[75].mxu1  ;;  %v4450_v6 = vpop.f32.mrb[111].mxu0  ;;  %v6147_v19 = vmul.f32 %v1494_v1, %v1323_v59 }
 0x254   : > { %v2249_v63 = vmul.f32 2.0, %v6139_v35 }
 0x255   : > { %4676 = vmatmul.mubr.msk.bf16.gmra.mrb[192].mxu0 %vm523_vm1, %v5561_v26  ;;  %v2303_v23 = vadd.f32 0.0001, %v2285_v41  ;;  %v2286_v29 = vadd.f32 %v6145_v20, %v6143_v28  ;;  %v2250_v49 = vmul.f32 2.0, %v6147_v19 }
 0x256   : > { %4679 = vmatprep.mubr.msk.bf16.mxu0 %vm5215_vm0, %v7190_v0  ;;  %v2267_v62 = vadd.f32 0.0001, %v2249_v63 }
 0x257   : > { %4899 = vrcp.f32 %v2303_v23  ;;  %v2304_v30 = vadd.f32 0.0001, %v2286_v29  ;;  %v2268_v22 = vadd.f32 0.0001, %v2250_v49 }
 0x258   : > { %v1328_v31 = vpop.f32.mrb[76].mxu1  ;;  %v1499_v36 = vpop.f32.mrb[112].mxu0 }
 0x259   : > { %4901 = vrcp.f32 %v2304_v30  ;;  %v6155_v40 = vmul.f32 %v1328_v31, %v1328_v31  ;;  %v4399_v46 = vpop.f32.mrb[77].mxu1  ;;  %v6157_v53 = vmul.f32 %v1499_v36, %v1499_v36  ;;  %v6159_v60 = vmul.f32 %v1499_v36, %v1328_v31  ;;  %v4453_v26 = vpop.f32.mrb[113].mxu0 }
 0x25a   : > { %v1331_v17 = vpop.f32.mrb[78].mxu1  ;;  %v1502_v37 = vpop.f32.mrb[114].mxu0 }
 0x25b   : > { %7248 = vst [vmem:[#allocation29_spill] sm:$0xff] %v6159_v60  ;;  %v6162_v4 = vmul.f32 %v1331_v17, %v1331_v17  ;;  %v4400_v47 = vpop.f32.mrb[79].mxu1  ;;  %v2287_v52 = vadd.f32 %v6157_v53, %v6155_v40  ;;  %v6166_v55 = vmul.f32 %v1502_v37, %v1502_v37  ;;  %v4454_v58 = vpop.f32.mrb[115].mxu0  ;;  %v6169_v12 = vmul.f32 %v1502_v37, %v1331_v17 }
 0x25c   : > { %v2251_v16 = vmul.f32 2.0, %v6159_v60 }
 0x25d   : > { %7249 = vst [vmem:[#allocation30_spill] sm:$0xff] %v6169_v12  ;;  %4680 = vmatmul.mubr.msk.bf16.gmra.mrb[196].mxu0 %vm523_vm1, %v5577_v32  ;;  %v2305_v18 = vadd.f32 0.0001, %v2287_v52  ;;  %v2288_v61 = vadd.f32 %v6166_v55, %v6162_v4  ;;  %v2252_v6 = vmul.f32 2.0, %v6169_v12 }
 0x25e   : > { %4683 = vmatprep.mubr.msk.bf16.mxu0 %vm5215_vm0, %v7190_v0  ;;  %v2269_v36 = vadd.f32 0.0001, %v2251_v16 }
 0x25f   : > { %4903 = vrcp.f32 %v2305_v18  ;;  %v2306_v11 = vadd.f32 0.0001, %v2288_v61  ;;  %v2270_v26 = vadd.f32 0.0001, %v2252_v6 }
 0x260   : > { %v1336_v34 = vpop.f32.mrb[80].mxu1  ;;  %v1507_v2 = vpop.f32.mrb[116].mxu0 }
 0x261   : > { %v4900_v3 = vpop.eup %4899  ;;  %v6177_v43 = vmul.f32 %v1336_v34, %v1336_v34  ;;  %v4403_v54 = vpop.f32.mrb[81].mxu1  ;;  %4905 = vrcp.f32 %v2306_v11  ;;  %v6179_v10 = vmul.f32 %v1507_v2, %v1507_v2  ;;  %v6181_v32 = vmul.f32 %v1507_v2, %v1336_v34 }
 0x262   : > { %v4457_v13 = vpop.f32.mrb[117].mxu0  ;;  %v1339_v25 = vpop.f32.mrb[82].mxu1  ;;  %v6184_v7 = vmul.f32 %v4900_v3, %v2267_v62 }
 0x263   : > { %7250 = vst [vmem:[#allocation31_spill] sm:$0xff] %v6181_v32  ;;  %v1510_v8 = vpop.f32.mrb[118].mxu0  ;;  %v4902_v42 = vpop.eup %4901  ;;  %v6186_v48 = vmul.f32 %v1339_v25, %v1339_v25  ;;  %v2289_v1 = vadd.f32 %v6179_v10, %v6177_v43 }
 0x264   : > { %v4404_v59 = vpop.f32.mrb[83].mxu1  ;;  %v6190_v41 = vmul.f32 %v1510_v8, %v1510_v8  ;;  %v4458_v5 = vpop.f32.mrb[119].mxu0  ;;  %v6193_v23 = vmul.f32 %v1510_v8, %v1339_v25  ;;  %v6195_v29 = vmul.f32 %v4902_v42, %v2268_v22 }
 0x265   : > { %4684 = vmatmul.mubr.msk.bf16.gmra.mrb[200].mxu0 %vm523_vm1, %v5593_v38  ;;  %v2307_v30 = vadd.f32 0.0001, %v2289_v1  ;;  %v2253_v38 = vmul.f32 2.0, %v6181_v32 }
 0x266   : > { %7251 = vst [vmem:[#allocation32_spill] sm:$0xff] %v6193_v23  ;;  %v2290_v31 = vadd.f32 %v6190_v41, %v6186_v48  ;;  %4687 = vmatprep.mubr.msk.bf16.mxu0 %vm5215_vm0, %v7190_v0  ;;  %v2254_v18 = vmul.f32 2.0, %v6193_v23 }
 0x267   : > { %4907 = vrcp.f32 %v2307_v30  ;;  %v2271_v62 = vadd.f32 0.0001, %v2253_v38 }
 0x268   : > { %v2308_v46 = vadd.f32 0.0001, %v2290_v31  ;;  %v6203_v63 = vpop.f32.mrb[84].mxu1  ;;  %v2272_v22 = vadd.f32 0.0001, %v2254_v18 }
 0x269   : > { %v4904_v17 = vpop.eup %4903  ;;  %v4413_v37 = vpop.f32.mrb[85].mxu1 }
 0x26a   : > { %4909 = vrcp.f32 %v2308_v46  ;;  %v6205_v47 = vpop.f32.mrb[86].mxu1  ;;  %v6208_v52 = vmul.f32 %v4904_v17, %v2269_v36 }
 0x26b   : > { %v4906_v58 = vpop.eup %4905  ;;  %v4414_v49 = vpop.f32.mrb[87].mxu1 }
 0x26c   : > { %7252 = vst [vmem:[#allocation33_spill] sm:$0xff] %v6208_v52  ;;  %v6211_v61 = vmul.f32 %v4906_v58, %v2270_v26 }
 0x26d   : > { %4688 = vmatmul.mubr.msk.bf16.gmra.mrb[204].mxu0 %vm523_vm1, %v5609_v44 }
 0x26e   : > { %7253 = vst [vmem:[#allocation34_spill] sm:$0xff] %v6211_v61  ;;  %4691 = vmatprep.mubr.msk.bf16.mxu0 %vm5215_vm0, %v7190_v0 }
 0x270   : > { %v6217_v11 = vpop.f32.mrb[88].mxu1 }
 0x271   : > { %v4908_v34 = vpop.eup %4907  ;;  %v4417_v2 = vpop.f32.mrb[89].mxu1 }
 0x272   : > { %v6219_v3 = vpop.f32.mrb[90].mxu1  ;;  %v6221_v54 = vmul.f32 %v4908_v34, %v2271_v62 }
 0x273   : > { %v4418_v16 = vpop.f32.mrb[91].mxu1 }
 0x274   : > { %7254 = vst [vmem:[#allocation35_spill] sm:$0xff] %v6221_v54  ;;  %v4910_v13 = vpop.eup %4909 }
 0x275   : > { %v6223_v25 = vmul.f32 %v4910_v13, %v2272_v22  ;;  %4692 = vmatmul.mubr.msk.bf16.gmra.mrb[208].mxu0 %vm523_vm1, %v5625_v50 }
 0x276   : > { %4695 = vmatprep.mubr.msk.bf16.mxu0 %vm5215_vm0, %v7190_v0 }
 0x277   : > { %7255 = vst [vmem:[#allocation36_spill] sm:$0xff] %v6223_v25 }
 0x278   : > { %v6229_v44 = vpop.f32.mrb[92].mxu1 }
 0x279   : > { %v4421_v8 = vpop.f32.mrb[93].mxu1  ;;  %v2151_v23 = vmul.f32 %v6229_v44, %v6229_v44 }
 0x27a   : > { %v6231_v42 = vpop.f32.mrb[94].mxu1 }
 0x27b   : > { %v4422_v59 = vpop.f32.mrb[95].mxu1 }
 0x27d   : > { %4696 = vmatmul.mubr.msk.bf16.gmra.mrb[212].mxu0 %vm523_vm1, %v5641_v56 }
 0x280   : > { %v1434_v1 = vpop.f32.mrb[96].mxu1  ;;  %v1605_v5 = vpop.f32.mrb[120].mxu0 }
 0x281   : > { %v6235_v6 = vmul.f32 %v1434_v1, %v1434_v1  ;;  %v6237_v30 = vmul.f32 %v1605_v5, %v1605_v5  ;;  %v6239_v31 = vmul.f32 %v1605_v5, %v1434_v1  ;;  %v4431_v50 = vpop.f32.mrb[97].mxu1  ;;  %v4485_v36 = vpop.f32.mrb[121].mxu0 }
 0x282   : > { %v1437_v46 = vpop.f32.mrb[98].mxu1  ;;  %v1608_v26 = vpop.f32.mrb[122].mxu0 }
 0x283   : > { %7256 = vst [vmem:[#allocation37_spill] sm:$0xff] %v6239_v31  ;;  %v2297_v17 = vadd.f32 %v6237_v30, %v6235_v6  ;;  %v6243_v37 = vmul.f32 %v1437_v46, %v1437_v46  ;;  %v6245_v38 = vmul.f32 %v1608_v26, %v1608_v26  ;;  %v4432_v56 = vpop.f32.mrb[99].mxu1  ;;  %v4486_v58 = vpop.f32.mrb[123].mxu0  ;;  %v6247_v49 = vmul.f32 %v1608_v26, %v1437_v46 }
 0x284   : > { %v2261_v5 = vmul.f32 2.0, %v6239_v31  ;;  %v6321_v31 = vmul.f32 %v6217_v11, %v6217_v11 }
 0x285   : > { %7257 = vst [vmem:[#allocation38_spill] sm:$0xff] %v6247_v49  ;;  %v2315_v18 = vadd.f32 0.0001, %v2297_v17  ;;  %v2298_v62 = vadd.f32 %v6245_v38, %v6243_v37 }
 0x287   : > { %4911 = vrcp.f32 %v2315_v18  ;;  %v2316_v22 = vadd.f32 0.0001, %v2298_v62  ;;  %v2262_v18 = vmul.f32 2.0, %v6247_v49 }
 0x288   : > { %v1442_v34 = vpop.f32.mrb[100].mxu1  ;;  %v1613_v2 = vpop.f32.mrb[124].mxu0 }
 0x289   : > { %4913 = vrcp.f32 %v2316_v22  ;;  %v6251_v13 = vmul.f32 %v1442_v34, %v1442_v34  ;;  %v6253_v16 = vmul.f32 %v1613_v2, %v1613_v2  ;;  %v6255_v8 = vmul.f32 %v1613_v2, %v1442_v34  ;;  %v4435_v59 = vpop.f32.mrb[101].mxu1  ;;  %v4489_v1 = vpop.f32.mrb[125].mxu0 }
 0x28a   : > { %v1445_v50 = vpop.f32.mrb[102].mxu1  ;;  %v1616_v36 = vpop.f32.mrb[126].mxu0  ;;  %v2279_v2 = vadd.f32 0.0001, %v2261_v5  ;;  %v2280_v1 = vadd.f32 0.0001, %v2262_v18 }
 0x28b   : > { %7258 = vst [vmem:[#allocation39_spill] sm:$0xff] %v6255_v8  ;;  %v2299_v46 = vadd.f32 %v6253_v16, %v6251_v13  ;;  %v6260_v26 = vmul.f32 %v1445_v50, %v1445_v50  ;;  %v6262_v17 = vmul.f32 %v1616_v36, %v1616_v36  ;;  %v4436_v56 = vpop.f32.mrb[103].mxu1  ;;  %v4490_v58 = vpop.f32.mrb[127].mxu0  ;;  %v6265_v62 = vmul.f32 %v1616_v36, %v1445_v50 }
 0x28d   : > { %7259 = vst [vmem:[#allocation40_spill] sm:$0xff] %v6265_v62  ;;  %v2317_v22 = vadd.f32 0.0001, %v2299_v46  ;;  %v2300_v34 = vadd.f32 %v6262_v17, %v6260_v26  ;;  %v2263_v46 = vmul.f32 2.0, %v6255_v8 }
 0x28f   : > { %4915 = vrcp.f32 %v2317_v22  ;;  %v2318_v59 = vadd.f32 0.0001, %v2300_v34 }
 0x290   : > { %v1450_v0 = vpop.f32.mrb[104].mxu1  ;;  %v1621_v57 = vpop.f32.mrb[128].mxu0 }
 0x291   : > { %v4912_v51 = vpop.eup %4911  ;;  %4917 = vrcp.f32 %v2318_v59  ;;  %v6269_v45 = vmul.f32 %v1450_v0, %v1450_v0  ;;  %v6271_v56 = vmul.f32 %v1621_v57, %v1621_v57  ;;  %v6273_v58 = vmul.f32 %v1621_v57, %v1450_v0  ;;  %v4439_v50 = vpop.f32.mrb[105].mxu1 }
 0x292   : > { %v4493_v36 = vpop.f32.mrb[129].mxu0  ;;  %v1453_v39 = vpop.f32.mrb[106].mxu1  ;;  %v6276_v5 = vmul.f32 %v4912_v51, %v2279_v2  ;;  %v2264_v0 = vmul.f32 2.0, %v6265_v62  ;;  %v2281_v2 = vadd.f32 0.0001, %v2263_v46 }
 0x293   : > { %7260 = vst [vmem:[#allocation41_spill] sm:$0xff] %v6273_v58  ;;  %v1624_v33 = vpop.f32.mrb[130].mxu0  ;;  %v4914_v22 = vpop.eup %4913  ;;  %v2301_v18 = vadd.f32 %v6271_v56, %v6269_v45  ;;  %v6280_v34 = vmul.f32 %v1453_v39, %v1453_v39 }
 0x294   : > { %7261 = vst [vmem:[#allocation42_spill] sm:$0xff] %v6276_v5  ;;  %v6282_v59 = vmul.f32 %v1624_v33, %v1624_v33  ;;  %v4494_v27 = vpop.f32.mrb[131].mxu0  ;;  %v4440_v21 = vpop.f32.mrb[107].mxu1  ;;  %v6285_v57 = vmul.f32 %v1624_v33, %v1453_v39  ;;  %v6287_v50 = vmul.f32 %v4914_v22, %v2280_v1  ;;  %v2282_v9 = vadd.f32 0.0001, %v2264_v0 }
 0x295   : > { %v2319_v36 = vadd.f32 0.0001, %v2301_v18  ;;  %v6293_v27 = vmul.f32 %v6203_v63, %v6203_v63  ;;  %v2265_v1 = vmul.f32 2.0, %v6273_v58  ;;  %v6305_v0 = vmul.f32 %v6205_v47, %v6205_v47 }
 0x296   : > { %7262 = vst [vmem:[#allocation43_spill] sm:$0xff] %v6285_v57  ;;  %7263 = vst [vmem:[#allocation44_spill] sm:$0xff] %v6287_v50  ;;  %v2302_v51 = vadd.f32 %v6282_v59, %v6280_v34 }
 0x297   : > { %4919 = vrcp.f32 %v2319_v36  ;;  %v2283_v58 = vadd.f32 0.0001, %v2265_v1 }
 0x298   : > { %v2320_v15 = vadd.f32 0.0001, %v2302_v51  ;;  %v1548_v8 = vpop.f32.mrb[108].mxu1 }
 0x299   : > { %v4916_v5 = vpop.eup %4915  ;;  %v6295_v21 = vmul.f32 %v1548_v8, %v1548_v8  ;;  %v6298_v33 = vmul.f32 %v1548_v8, %v6203_v63  ;;  %v4467_v39 = vpop.f32.mrb[109].mxu1  ;;  %v2266_v8 = vmul.f32 2.0, %v6285_v57 }
 0x29a   : > { %4921 = vrcp.f32 %v2320_v15  ;;  %v1551_v22 = vpop.f32.mrb[110].mxu1  ;;  %v6301_v46 = vmul.f32 %v4916_v5, %v2281_v2 }
 0x29b   : > { %v4918_v18 = vpop.eup %4917  ;;  %v2291_v36 = vadd.f32 %v6295_v21, %v6293_v27  ;;  %v6309_v15 = vmul.f32 %v1551_v22, %v1551_v22  ;;  %v6312_v51 = vmul.f32 %v1551_v22, %v6205_v47  ;;  %v4468_v63 = vpop.f32.mrb[111].mxu1  ;;  %v2284_v62 = vadd.f32 0.0001, %v2266_v8 }
 0x29c   : > { %7264 = vst [vmem:[#allocation45_spill] sm:$0xff] %v6301_v46  ;;  %v6315_v39 = vmul.f32 %v4918_v18, %v2282_v9  ;;  %v2255_v18 = vmul.f32 2.0, %v6298_v33  ;;  %v6333_v8 = vmul.f32 %v6219_v3, %v6219_v3 }
 0x29d   : > { %v2309_v5 = vadd.f32 0.0001, %v2291_v36  ;;  %v2292_v2 = vadd.f32 %v6309_v15, %v6305_v0 }
 0x29e   : > { %7265 = vst [vmem:[#allocation46_spill] sm:$0xff] %v6315_v39 }
 0x29f   : > { %4923 = vrcp.f32 %v2309_v5  ;;  %v2310_v46 = vadd.f32 0.0001, %v2292_v2 }
 0x2a0   : > { %v1556_v50 = vpop.f32.mrb[112].mxu1 }
 0x2a1   : > { %v4920_v49 = vpop.eup %4919  ;;  %4925 = vrcp.f32 %v2310_v46  ;;  %v6323_v47 = vmul.f32 %v1556_v50, %v1556_v50  ;;  %v6326_v9 = vmul.f32 %v1556_v50, %v6217_v11  ;;  %v4471_v22 = vpop.f32.mrb[113].mxu1  ;;  %v2256_v50 = vmul.f32 2.0, %v6312_v51 }
 0x2a2   : > { %v1559_v36 = vpop.f32.mrb[114].mxu1  ;;  %v6329_v1 = vmul.f32 %v4920_v49, %v2283_v58 }
 0x2a3   : > { %7266 = vst [vmem:[#allocation47_spill] sm:$0xff] %v6326_v9  ;;  %v2293_v5 = vadd.f32 %v6323_v47, %v6321_v31  ;;  %v6337_v46 = vmul.f32 %v1559_v36, %v1559_v36  ;;  %v6340_v2 = vmul.f32 %v1559_v36, %v6219_v3  ;;  %v4472_v11 = vpop.f32.mrb[115].mxu1  ;;  %v2274_v39 = vadd.f32 0.0001, %v2256_v50 }
 0x2a4   : > { %7267 = vst [vmem:[#allocation48_spill] sm:$0xff] %v6329_v1  ;;  %v4922_v63 = vpop.eup %4921  ;;  %v2273_v1 = vadd.f32 0.0001, %v2255_v18  ;;  %v2152_v50 = vmul.f32 %v6231_v42, %v6231_v42 }
 0x2a5   : > { %7268 = vst [vmem:[#allocation49_spill] sm:$0xff] %v6340_v2  ;;  %v6343_v22 = vmul.f32 %v4922_v63, %v2284_v62  ;;  %v2311_v49 = vadd.f32 0.0001, %v2293_v5  ;;  %v2294_v58 = vadd.f32 %v6337_v46, %v6333_v8  ;;  %v2257_v63 = vmul.f32 2.0, %v6326_v9 }
 0x2a7   : > { %7269 = vst [vmem:[#allocation50_spill] sm:$0xff] %v6343_v22  ;;  %4927 = vrcp.f32 %v2311_v49  ;;  %v2312_v57 = vadd.f32 0.0001, %v2294_v58 }
 0x2a8   : > { %v1564_v25 = vpop.f32.mrb[116].mxu1 }
 0x2a9   : > { %v4924_v54 = vpop.eup %4923  ;;  %4929 = vrcp.f32 %v2312_v57  ;;  %v6349_v3 = vmul.f32 %v1564_v25, %v1564_v25  ;;  %v6352_v36 = vmul.f32 %v1564_v25, %v6229_v44  ;;  %v4475_v62 = vpop.f32.mrb[117].mxu1  ;;  %v2258_v25 = vmul.f32 2.0, %v6340_v2 }
 0x2aa   : > { %v1567_v5 = vpop.f32.mrb[118].mxu1  ;;  %v6355_v11 = vmul.f32 %v4924_v54, %v2273_v1  ;;  %v2275_v1 = vadd.f32 0.0001, %v2257_v63 }
 0x2ab   : > { %7270 = vst [vmem:[#allocation51_spill] sm:$0xff] %v6352_v36  ;;  %v4926_v18 = vpop.eup %4925  ;;  %v2295_v49 = vadd.f32 %v6349_v3, %v2151_v23  ;;  %v6360_v58 = vmul.f32 %v1567_v5, %v1567_v5  ;;  %v6363_v57 = vmul.f32 %v1567_v5, %v6231_v42  ;;  %v4476_v22 = vpop.f32.mrb[119].mxu1  ;;  %v2276_v52 = vadd.f32 0.0001, %v2258_v25 }
 0x2ac   : > { %v6366_v44 = vmul.f32 %v4926_v18, %v2274_v39  ;;  %v2259_v18 = vmul.f32 2.0, %v6352_v36 }
 0x2ad   : > { %v2313_v62 = vadd.f32 0.0001, %v2295_v49  ;;  %v2296_v54 = vadd.f32 %v6360_v58, %v2152_v50 }
 0x2af   : > { %4931 = vrcp.f32 %v2313_v62  ;;  %v2314_v32 = vadd.f32 0.0001, %v2296_v54 }
 0x2b0   : > { %v1719_v61 = vpop.f32.mrb[132].mxu0  ;;  %v1662_v12 = vpop.f32.mrb[120].mxu1 }
 0x2b1   : > { %v4928_v9 = vpop.eup %4927  ;;  %v6370_v60 = vsub.f32 %v1719_v61, %v6293_v27  ;;  %v4521_v42 = vpop.f32.mrb[133].mxu0  ;;  %4933 = vrcp.f32 %v2314_v32  ;;  %v6373_v22 = vsub.f32 %v1662_v12, %v6135_v24  ;;  %v2260_v32 = vmul.f32 2.0, %v6363_v57 }
 0x2b2   : > { %v4503_v39 = vpop.f32.mrb[121].mxu1  ;;  %v1722_v5 = vpop.f32.mrb[134].mxu0  ;;  %v6376_v63 = vmul.f32 %v4928_v9, %v2275_v1  ;;  %v2277_v24 = vadd.f32 0.0001, %v2259_v18 }
 0x2b3   : > { %v1665_v49 = vpop.f32.mrb[122].mxu1  ;;  %v4930_v62 = vpop.eup %4929  ;;  %v6379_v25 = vsub.f32 %v1722_v5, %v6305_v0  ;;  %v2278_v39 = vadd.f32 0.0001, %v2260_v32 }
 0x2b4   : > { %v4522_v54 = vpop.f32.mrb[135].mxu0  ;;  %v2196_v61 = vsub.f32 %v1665_v49, %v6143_v28  ;;  %v4504_v27 = vpop.f32.mrb[123].mxu1  ;;  %v6383_v42 = vmul.f32 %v4930_v62, %v2276_v52 }
 0x2b8   : > { %v1727_v12 = vpop.f32.mrb[136].mxu0  ;;  %v1670_v2 = vpop.f32.mrb[124].mxu1 }
 0x2b9   : > { %v4932_v36 = vpop.eup %4931  ;;  %v6386_v9 = vsub.f32 %v1727_v12, %v6321_v31  ;;  %v4525_v1 = vpop.f32.mrb[137].mxu0  ;;  %v6389_v0 = vsub.f32 %v1670_v2, %v6155_v40 }
 0x2ba   : > { %v4507_v5 = vpop.f32.mrb[125].mxu1  ;;  %v1730_v54 = vpop.f32.mrb[138].mxu0  ;;  %v6391_v49 = vmul.f32 %v4932_v36, %v2277_v24 }
 0x2bb   : > { %v1673_v28 = vpop.f32.mrb[126].mxu1  ;;  %v4934_v27 = vpop.eup %4933  ;;  %v6394_v52 = vsub.f32 %v1730_v54, %v6333_v8  ;;  %v4897_v8 = vld [vmem:[%s7176_s4] sm:$0xff]  }
 0x2bc   : > { %7271 = vst [vmem:[#allocation52_spill] sm:$0xff] %v6391_v49  ;;  %v4526_v18 = vpop.f32.mrb[139].mxu0  ;;  %v6397_v62 = vsub.f32 %v1673_v28, %v6162_v4  ;;  %v4508_v32 = vpop.f32.mrb[127].mxu1  ;;  %v6399_v31 = vmul.f32 %v4934_v27, %v2278_v39  ;;  %4705 = vmatprep.mubr.msk.bf16.mxu1 %vm523_vm1, %v4897_v8  ;;  %4777 = vmatprep.mubr.msk.bf16.mxu0 %vm523_vm1, %v4897_v8 }
 0x2bd   : > { %v2483_v18 = vmax.f32 %v6373_v22, 0.0 }
 0x2be   : > { %7272 = vst [vmem:[#allocation53_spill] sm:$0xff] %v6399_v31 }
 0x2c0   : > { %v1735_v12 = vpop.f32.mrb[140].mxu0  ;;  %v1678_v1 = vpop.f32.mrb[128].mxu1 }
 0x2c1   : > { %v6401_v40 = vsub.f32 %v1735_v12, %v2151_v23  ;;  %v4529_v2 = vpop.f32.mrb[141].mxu0  ;;  %v6404_v5 = vsub.f32 %v1678_v1, %v6177_v43  ;;  %v4511_v36 = vpop.f32.mrb[129].mxu1 }
 0x2c2   : > { %v1738_v24 = vpop.f32.mrb[142].mxu0  ;;  %v1681_v54 = vpop.f32.mrb[130].mxu1 }
 0x2c3   : > { %v6409_v4 = vsub.f32 %v1738_v24, %v2152_v50  ;;  %v4530_v28 = vpop.f32.mrb[143].mxu0  ;;  %v6412_v39 = vsub.f32 %v1681_v54, %v6186_v48  ;;  %v4512_v27 = vpop.f32.mrb[131].mxu1  ;;  %v2484_v54 = vmax.f32 %v2196_v61, 0.0 }
 0x2c8   : > { %v1833_v43 = vpop.f32.mrb[144].mxu0  ;;  %v1776_v23 = vpop.f32.mrb[132].mxu1 }
 0x2c9   : > { %v2213_v32 = vsub.f32 %v1833_v43, %v6137_v14  ;;  %v4557_v12 = vpop.f32.mrb[145].mxu0  ;;  %v6419_v1 = vsub.f32 %v1776_v23, %v6235_v6  ;;  %v4539_v50 = vpop.f32.mrb[133].mxu1 }
 0x2ca   : > { %v1836_v2 = vpop.f32.mrb[146].mxu0  ;;  %v1779_v36 = vpop.f32.mrb[134].mxu1 }
 0x2cb   : > { %v2357_v48 = vadd.f32 %v2213_v32, %v6373_v22  ;;  %v2501_v24 = vmax.f32 %v2213_v32, 0.0  ;;  %v2214_v28 = vsub.f32 %v1836_v2, %v6145_v20  ;;  %v4558_v8 = vpop.f32.mrb[147].mxu0  ;;  %v4540_v27 = vpop.f32.mrb[135].mxu1  ;;  %v6424_v31 = vsub.f32 %v1779_v36, %v6243_v37 }
 0x2cc   : > { %v2489_v22 = vmax.f32 %v6370_v60, 0.0  ;;  %v2485_v32 = vmax.f32 %v6389_v0, 0.0  ;;  %v2486_v36 = vmax.f32 %v6397_v62, 0.0  ;;  %v2487_v2 = vmax.f32 %v6404_v5, 0.0 }
 0x2cd   : > { %v6426_v49 = vmul.f32 %v2501_v24, %v2483_v18  ;;  %v2358_v14 = vadd.f32 %v2214_v28, %v2196_v61  ;;  %v2502_v43 = vmax.f32 %v2214_v28, 0.0  ;;  %v2375_v28 = vadd.f32 0.0009, %v2357_v48 }
 0x2cf   : > { %v6428_v6 = vmul.f32 %v2502_v43, %v2484_v54  ;;  %4935 = vrsqrt.f32 %v6426_v49  ;;  %vm2539_vm2 = vcmp.eq.f32.partialorder %v6426_v49, inf  ;;  %vm2541_vm3 = vcmp.eq.f32.partialorder %v6426_v49, 0.0 }
 0x2d0   : > { %v1841_v23 = vpop.f32.mrb[148].mxu0  ;;  %v1784_v12 = vpop.f32.mrb[136].mxu1 }
 0x2d1   : > { %v2215_v20 = vsub.f32 %v1841_v23, %v6157_v53  ;;  %v4561_v50 = vpop.f32.mrb[149].mxu0  ;;  %v6435_v37 = vsub.f32 %v1784_v12, %v6251_v13  ;;  %v4543_v18 = vpop.f32.mrb[137].mxu1  ;;  %4937 = vrsqrt.f32 %v6428_v6  ;;  %vm2546_vm4 = vcmp.eq.f32.partialorder %v6428_v6, inf }
 0x2d2   : > { %v1844_v24 = vpop.f32.mrb[150].mxu0  ;;  %v1787_v54 = vpop.f32.mrb[138].mxu1  ;;  %v2376_v50 = vadd.f32 0.0009, %v2358_v14  ;;  %4939 = vrcp.f32 %v2375_v28  ;;  %vm2548_vm5 = vcmp.eq.f32.partialorder %v6428_v6, 0.0 }
 0x2d3   : > { %v2359_v8 = vadd.f32 %v2215_v20, %v6389_v0  ;;  %v2503_v27 = vmax.f32 %v2215_v20, 0.0  ;;  %v2216_v53 = vsub.f32 %v1844_v24, %v6166_v55  ;;  %v4562_v43 = vpop.f32.mrb[151].mxu0  ;;  %v4544_v13 = vpop.f32.mrb[139].mxu1  ;;  %v6446_v18 = vsub.f32 %v1787_v54, %v6260_v26 }
 0x2d4   : > { %v2488_v55 = vmax.f32 %v6412_v39, 0.0  ;;  %4941 = vrcp.f32 %v2376_v50 }
 0x2d5   : > { %v6449_v61 = vmul.f32 %v2503_v27, %v2485_v32  ;;  %v2360_v48 = vadd.f32 %v2216_v53, %v6397_v62  ;;  %v2504_v0 = vmax.f32 %v2216_v53, 0.0  ;;  %v2377_v14 = vadd.f32 0.0009, %v2359_v8 }
 0x2d6   : > { %v2542_v62 = vand.u32 2147483648, %v6426_v49 }
 0x2d7   : > { %v6456_v13 = vmul.f32 %v2504_v0, %v2486_v36  ;;  %v2549_v36 = vand.u32 2147483648, %v6428_v6  ;;  %4943 = vrsqrt.f32 %v6449_v61  ;;  %v2378_v50 = vadd.f32 0.0009, %v2360_v48 }
 0x2d8   : > { %v1849_v26 = vpop.f32.mrb[152].mxu0  ;;  %v1792_v32 = vpop.f32.mrb[140].mxu1  ;;  %4945 = vrcp.f32 %v2377_v14  ;;  %v2556_v20 = vand.u32 2147483648, %v6449_v61  ;;  %vm2553_vm6 = vcmp.eq.f32.partialorder %v6449_v61, inf  ;;  %vm2555_vm7 = vcmp.eq.f32.partialorder %v6449_v61, 0.0 }
 0x2d9   : > { %v2217_v54 = vsub.f32 %v1849_v26, %v6179_v10  ;;  %v4565_v27 = vpop.f32.mrb[153].mxu0  ;;  %v6464_v53 = vsub.f32 %v1792_v32, %v6269_v45  ;;  %v4547_v28 = vpop.f32.mrb[141].mxu1  ;;  %4947 = vrsqrt.f32 %v6456_v13  ;;  %vm2560_vm8 = vcmp.eq.f32.partialorder %v6456_v13, inf }
 0x2da   : > { %v4936_v8 = vpop.eup %4935  ;;  %v1852_v12 = vpop.f32.mrb[154].mxu0  ;;  %4949 = vrcp.f32 %v2378_v50  ;;  %vm2562_vm9 = vcmp.eq.f32.partialorder %v6456_v13, 0.0 }
 0x2db   : > { %v1795_v23 = vpop.f32.mrb[142].mxu1  ;;  %v2361_v10 = vadd.f32 %v2217_v54, %v6404_v5  ;;  %v2505_v45 = vmax.f32 %v2217_v54, 0.0  ;;  %v2218_v26 = vsub.f32 %v1852_v12, %v6190_v41  ;;  %v4566_v32 = vpop.f32.mrb[155].mxu0  ;;  %v2538_v48 = vmul.f32 %v4936_v8, %v6426_v49 }
 0x2dc   : > { %v4548_v27 = vpop.f32.mrb[143].mxu1  ;;  %v4938_v28 = vpop.eup %4937  ;;  %v6475_v43 = vsub.f32 %v1795_v23, %v6280_v34  ;;  %v2563_v34 = vand.u32 2147483648, %v6456_v13 }
 0x2dd   : > { %v2379_v0 = vadd.f32 0.0009, %v2361_v10  ;;  %v6479_v24 = vmul.f32 %v2505_v45, %v2487_v2  ;;  %v2362_v5 = vadd.f32 %v2218_v26, %v6412_v39  ;;  %v2506_v14 = vmax.f32 %v2218_v26, 0.0  ;;  %v6496_v26 = vpop.eup %4939 }
 0x2de   : > { %v2540_v41 = vsel %vm2539_vm2, %v6426_v49, %v2538_v48  ;;  %v2545_v12 = vmul.f32 %v4938_v28, %v6428_v6  ;;  %v2499_v39 = vmax.f32 %v6464_v53, 0.0  ;;  %v6503_v27 = vpop.eup %4941  ;;  %v2500_v28 = vmax.f32 %v6475_v43, 0.0 }
 0x2df   : > { %4951 = vrcp.f32 %v2379_v0  ;;  %v2380_v23 = vadd.f32 0.0009, %v2362_v5  ;;  %v6487_v54 = vmul.f32 %v2506_v14, %v2488_v55  ;;  %v2543_v2 = vsel %vm2541_vm3, %v2542_v62, %v2540_v41 }
 0x2e0   : > { %4953 = vrsqrt.f32 %v6479_v24  ;;  %v1890_v8 = vpop.f32.mrb[144].mxu1  ;;  %v1947_v50 = vpop.f32.mrb[156].mxu0  ;;  %v2663_v10 = vmul.f32 2.0, %v2543_v2  ;;  %v2547_v45 = vsel %vm2546_vm4, %v6428_v6, %v2545_v12  ;;  %vm2567_vm10 = vcmp.eq.f32.partialorder %v6479_v24, inf }
 0x2e1   : > { %7273 = vst [vmem:[#allocation54_spill] sm:$0xff] %v6487_v54  ;;  %4955 = vrcp.f32 %v2380_v23  ;;  %v2219_v55 = vsub.f32 %v1890_v8, %v6295_v21  ;;  %v2225_v0 = vsub.f32 %v1947_v50, %v6237_v30  ;;  %v4575_v49 = vpop.f32.mrb[145].mxu1  ;;  %v4593_v62 = vpop.f32.mrb[157].mxu0  ;;  %v2550_v32 = vsel %vm2548_vm5, %v2549_v36, %v2547_v45 }
 0x2e2   : > { %4957 = vrsqrt.f32 %v6487_v54  ;;  %v1893_v48 = vpop.f32.mrb[146].mxu1  ;;  %v1950_v5 = vpop.f32.mrb[158].mxu0  ;;  %v2681_v14 = vadd.f32 0.0009, %v2663_v10  ;;  %v2664_v41 = vmul.f32 2.0, %v2550_v32  ;;  %vm2569_vm11 = vcmp.eq.f32.partialorder %v6479_v24, 0.0 }
 0x2e3   : > { %v2363_v21 = vadd.f32 %v2219_v55, %v6370_v60  ;;  %v2507_v30 = vmax.f32 %v2219_v55, 0.0  ;;  %v2369_v12 = vadd.f32 %v2225_v0, %v6419_v1  ;;  %v2513_v23 = vmax.f32 %v2225_v0, 0.0  ;;  %v4594_v6 = vpop.f32.mrb[159].mxu0  ;;  %v4576_v36 = vpop.f32.mrb[147].mxu1  ;;  %v7286_v54 = vld [vmem:[#allocation47_spill] sm:$0xff] }
 0x2e4   : > { %v4944_v2 = vpop.eup %4943  ;;  %v2220_v8 = vsub.f32 %v1893_v48, %v6309_v15  ;;  %v2226_v50 = vsub.f32 %v1950_v5, %v6245_v38  ;;  %v2699_v45 = vmul.f32 %v6496_v26, %v2681_v14  ;;  %v2682_v49 = vadd.f32 0.0009, %v2664_v41 }
 0x2e5   : > { %v6512_v62 = vpop.eup %4945  ;;  %v2381_v10 = vadd.f32 0.0009, %v2363_v21  ;;  %v6516_v32 = vmul.f32 %v2507_v30, %v2489_v22  ;;  %v2387_v55 = vadd.f32 0.0009, %v2369_v12  ;;  %v7274_v0 = vmax.f32 %v6419_v1, 0.0 }
 0x2e6   : > { %v4948_v36 = vpop.eup %4947  ;;  %v2364_v15 = vadd.f32 %v2220_v8, %v6379_v25  ;;  %v2508_v48 = vmax.f32 %v2220_v8, 0.0  ;;  %v2370_v38 = vadd.f32 %v2226_v50, %v6424_v31  ;;  %v2514_v5 = vmax.f32 %v2226_v50, 0.0 }
 0x2e7   : > { %v6520_v6 = vmul.f32 %v2513_v23, %v7274_v0  ;;  %4959 = vrcp.f32 %v2381_v10  ;;  %v2807_v14 = vsel %vm523_vm1, %v2699_v45, 0.0  ;;  %v2700_v41 = vmul.f32 %v6503_v27, %v2682_v49  ;;  %v6529_v1 = vpop.eup %4949 }
 0x2e8   : > { %v2552_v60 = vmul.f32 %v4944_v2, %v6449_v61  ;;  %4961 = vrsqrt.f32 %v6516_v32  ;;  %v2382_v22 = vadd.f32 0.0009, %v2364_v15  ;;  %v7275_v21 = vmax.f32 %v6379_v25, 0.0  ;;  %2808 = vadd.xlane.f32.xlu0 %v2807_v14  ;;  %v1898_v23 = vpop.f32.mrb[148].mxu1  ;;  %v1955_v8 = vpop.f32.mrb[160].mxu0 }
 0x2e9   : > { %v2388_v12 = vadd.f32 0.0009, %v2370_v38  ;;  %v6536_v50 = vpop.eup %4951  ;;  %4963 = vrcp.f32 %v2387_v55  ;;  %v7276_v2 = vmax.f32 %v6424_v31, 0.0  ;;  %v2810_v49 = vsel %vm523_vm1, %v2700_v41, 0.0  ;;  %v4579_v0 = vpop.f32.mrb[149].mxu1 }
 0x2ea   : > { %v6534_v30 = vmul.f32 %v2508_v48, %v7275_v21  ;;  %v2221_v10 = vsub.f32 %v1898_v23, %v6323_v47  ;;  %v4597_v15 = vpop.f32.mrb[161].mxu0  ;;  %v6545_v25 = vpop.eup %4953  ;;  %4965 = vrsqrt.f32 %v6520_v6  ;;  %2811 = vadd.xlane.f32.xlu1 %v2810_v49  ;;  %v2227_v48 = vsub.f32 %v1955_v8, %v6253_v16 }
 0x2eb   : > { %v6540_v45 = vmul.f32 %v2514_v5, %v7276_v2  ;;  %v1901_v55 = vpop.f32.mrb[150].mxu1  ;;  %v1958_v38 = vpop.f32.mrb[162].mxu0  ;;  %v2554_v31 = vsel %vm2553_vm6, %v6449_v61, %v2552_v60  ;;  %v2559_v5 = vmul.f32 %v4948_v36, %v6456_v13  ;;  %4967 = vrcp.f32 %v2382_v22 }
 0x2ec   : > { %v6553_v47 = vpop.eup %4955  ;;  %v2365_v14 = vadd.f32 %v2221_v10, %v6386_v9  ;;  %v2509_v41 = vmax.f32 %v2221_v10, 0.0  ;;  %v2222_v21 = vsub.f32 %v1901_v55, %v6337_v46  ;;  %v4598_v23 = vpop.f32.mrb[163].mxu0  ;;  %4969 = vrsqrt.f32 %v6534_v30 }
 0x2ed   : > { %7277 = vst [vmem:[#allocation55_spill] sm:$0xff] %v6553_v47  ;;  %v4580_v2 = vpop.f32.mrb[151].mxu1  ;;  %v6557_v49 = vpop.eup %4957  ;;  %v2371_v16 = vadd.f32 %v2227_v48, %v6435_v37  ;;  %v2515_v8 = vmax.f32 %v2227_v48, 0.0  ;;  %v2228_v60 = vsub.f32 %v1958_v38, %v6262_v17  ;;  %4971 = vrcp.f32 %v2388_v12 }
 0x2ee   : > { %7278 = vst [vmem:[#allocation56_spill] sm:$0xff] %v6557_v49  ;;  %v2383_v36 = vadd.f32 0.0009, %v2365_v14  ;;  %v7279_v22 = vmax.f32 %v6386_v9, 0.0  ;;  %v2366_v10 = vadd.f32 %v2222_v21, %v6394_v52  ;;  %4973 = vrsqrt.f32 %v6540_v45 }
 0x2ef   : > { %v2389_v46 = vadd.f32 0.0009, %v2371_v16  ;;  %v7280_v15 = vmax.f32 %v6435_v37, 0.0  ;;  %v2510_v23 = vmax.f32 %v2222_v21, 0.0  ;;  %v2372_v17 = vadd.f32 %v2228_v60, %v6446_v18 }
 0x2f0   : > { %v6564_v0 = vmul.f32 %v2509_v41, %v7279_v22  ;;  %4975 = vrcp.f32 %v2383_v36  ;;  %v2384_v48 = vadd.f32 0.0009, %v2366_v10  ;;  %v2516_v12 = vmax.f32 %v2228_v60, 0.0  ;;  %v1906_v37 = vpop.f32.mrb[152].mxu1  ;;  %v1963_v41 = vpop.f32.mrb[164].mxu0 }
 0x2f1   : > { %v6570_v55 = vmul.f32 %v2515_v8, %v7280_v15  ;;  %v7281_v9 = vmax.f32 %v6394_v52, 0.0  ;;  %v2557_v14 = vsel %vm2555_vm7, %v2556_v20, %v2554_v31  ;;  %v2561_v21 = vsel %vm2560_vm8, %v6456_v13, %v2559_v5  ;;  %v6585_v2 = vpop.eup %4959  ;;  %v4583_v36 = vpop.f32.mrb[153].mxu1 }
 0x2f2   : > { %4977 = vrsqrt.f32 %v6564_v0  ;;  %v2390_v16 = vadd.f32 0.0009, %v2372_v17  ;;  %v7282_v8 = vmax.f32 %v6446_v18, 0.0  ;;  %v2665_v60 = vmul.f32 2.0, %v2557_v14  ;;  %v4601_v22 = vpop.f32.mrb[165].mxu0  ;;  %v6591_v10 = vpop.eup %4961 }
 0x2f3   : > { %v6576_v38 = vmul.f32 %v2510_v23, %v7281_v9  ;;  %4979 = vrcp.f32 %v2389_v46  ;;  %v2223_v61 = vsub.f32 %v1906_v37, %v6349_v3  ;;  %v2229_v20 = vsub.f32 %v1963_v41, %v6271_v56  ;;  %v1909_v5 = vpop.f32.mrb[154].mxu1  ;;  %v1966_v18 = vpop.f32.mrb[166].mxu0 }
 0x2f4   : > { %v6589_v52 = vmul.f32 %v2516_v12, %v7282_v8  ;;  %4981 = vrsqrt.f32 %v6570_v55  ;;  %v2564_v31 = vsel %vm2562_vm9, %v2563_v34, %v2561_v21  ;;  %v6600_v46 = vpop.eup %4963  ;;  %v2683_v15 = vadd.f32 0.0009, %v2665_v60  ;;  %v4602_v12 = vpop.f32.mrb[167].mxu0 }
 0x2f5   : > { %4983 = vrcp.f32 %v2384_v48  ;;  %v2666_v23 = vmul.f32 2.0, %v2564_v31  ;;  %v2224_v17 = vsub.f32 %v1909_v5, %v6360_v58  ;;  %v4584_v9 = vpop.f32.mrb[155].mxu1  ;;  %v6603_v14 = vpop.eup %4965  ;;  %v2367_v56 = vadd.f32 %v2223_v61, %v6401_v40 }
 0x2f6   : > { %4985 = vrsqrt.f32 %v6576_v38  ;;  %v2511_v3 = vmax.f32 %v2223_v61, 0.0  ;;  %v2373_v13 = vadd.f32 %v2229_v20, %v6464_v53  ;;  %v6608_v34 = vpop.eup %4967  ;;  %v2701_v48 = vmul.f32 %v6512_v62, %v2683_v15 }
 0x2f7   : > { %4987 = vrcp.f32 %v2390_v16  ;;  %v2517_v37 = vmax.f32 %v2229_v20, 0.0  ;;  %v2684_v41 = vadd.f32 0.0009, %v2666_v23  ;;  %v6611_v21 = vpop.eup %4969  ;;  %v2385_v58 = vadd.f32 0.0009, %v2367_v56 }
 0x2f8   : > { %4989 = vrsqrt.f32 %v6589_v52  ;;  %v7283_v8 = vmax.f32 %v6401_v40, 0.0  ;;  %v2391_v36 = vadd.f32 0.0009, %v2373_v13  ;;  %v6618_v22 = vpop.eup %4971  ;;  %v2813_v61 = vsel %vm523_vm1, %v2701_v48, 0.0  ;;  %v2004_v12 = vpop.f32.mrb[156].mxu1 }
 0x2f9   : > { %v6623_v16 = vmul.f32 %v2517_v37, %v2499_v39  ;;  %v2702_v20 = vmul.f32 %v6529_v1, %v2684_v41  ;;  %v2368_v31 = vadd.f32 %v2224_v17, %v6409_v4  ;;  %v6627_v5 = vpop.eup %4973  ;;  %2814 = vadd.xlane.f32.xlu1 %v2813_v61  ;;  %4991 = vrcp.f32 %v2385_v58  ;;  %v2061_v9 = vpop.f32.mrb[168].mxu0 }
 0x2fa   : > { %v6616_v60 = vmul.f32 %v2511_v3, %v7283_v8  ;;  %v2512_v40 = vmax.f32 %v2224_v17, 0.0  ;;  %v2230_v15 = vsub.f32 %v1966_v18, %v6282_v59  ;;  %v2566_v23 = vmul.f32 %v6545_v25, %v6479_v24  ;;  %v6632_v56 = vpop.eup %4975  ;;  %v4611_v39 = vpop.f32.mrb[157].mxu1 }
 0x2fb   : > { %v2816_v53 = vsel %vm523_vm1, %v2702_v20, 0.0  ;;  %v4629_v3 = vpop.f32.mrb[169].mxu0  ;;  %v7284_v59 = vmax.f32 %v6409_v4, 0.0  ;;  %v2570_v48 = vand.u32 2147483648, %v6479_v24  ;;  %v2007_v37 = vpop.f32.mrb[158].mxu1  ;;  %v2231_v20 = vsub.f32 %v2004_v12, %v6139_v35 }
 0x2fc   : > { %4993 = vrsqrt.f32 %v6616_v60  ;;  %v6638_v17 = vpop.eup %4977  ;;  %v2374_v25 = vadd.f32 %v2230_v15, %v6475_v43  ;;  %v2518_v13 = vmax.f32 %v2230_v15, 0.0  ;;  %v2064_v41 = vpop.f32.mrb[170].mxu0  ;;  %v2386_v8 = vadd.f32 0.0009, %v2368_v31 }
 0x2fd   : > { %v6642_v18 = vmul.f32 %v2512_v40, %v7284_v59  ;;  %v6646_v58 = vpop.eup %4979  ;;  %v2568_v61 = vsel %vm2567_vm10, %v6479_v24, %v2566_v23  ;;  %v2237_v39 = vsub.f32 %v2061_v9, %v6298_v33  ;;  %v4630_v3 = vpop.f32.mrb[171].mxu0  ;;  %4995 = vrcp.f32 %v2391_v36  ;;  %2817 = vadd.xlane.f32.xlu1 %v2816_v53 }
 0x2fe   : > { %v4612_v4 = vpop.f32.mrb[159].mxu1  ;;  %v6651_v40 = vpop.eup %4981  ;;  %v6655_v15 = vmul.f32 %v2518_v13, %v2500_v28  ;;  %v2571_v59 = vsel %vm2569_vm11, %v2570_v48, %v2568_v61  ;;  %4997 = vrsqrt.f32 %v6623_v16  ;;  %v2411_v23 = vmul.f32 2.0, %v2231_v20 }
 0x2ff   : > { %v6659_v31 = vpop.eup %4983  ;;  %v2667_v35 = vmul.f32 2.0, %v2571_v59  ;;  %v2417_v33 = vmul.f32 2.0, %v2237_v39  ;;  %v6664_v9 = vadd.f32 0.0009, %v2374_v25  ;;  %v2232_v36 = vsub.f32 %v2007_v37, %v6147_v19 }
 0x300   : > { %v6662_v12 = vpop.eup %4985  ;;  %v2238_v43 = vsub.f32 %v2064_v41, %v6312_v51  ;;  %v2580_v28 = vmul.f32 %v6591_v10, %v6516_v32  ;;  %4999 = vrcp.f32 %v2386_v8  ;;  %v2429_v13 = vadd.f32 0.0009, %v2411_v23  ;;  %v2012_v19 = vpop.f32.mrb[160].mxu1 }
 0x301   : > { %v6670_v24 = vpop.eup %4987  ;;  %v2685_v53 = vadd.f32 0.0009, %v2667_v35  ;;  %v2435_v48 = vadd.f32 0.0009, %v2417_v33  ;;  %v2412_v20 = vmul.f32 2.0, %v2232_v36  ;;  %vm2581_vm12 = vcmp.eq.f32.partialorder %v6516_v32, inf }
 0x302   : > { %v6672_v61 = vpop.eup %4989  ;;  %v2418_v39 = vmul.f32 2.0, %v2238_v43  ;;  %vm2583_vm13 = vcmp.eq.f32.partialorder %v6516_v32, 0.0  ;;  %v2069_v25 = vpop.f32.mrb[172].mxu0  ;;  %v6678_v10 = vmul.f32 %v2429_v13, %v6184_v7  ;;  %v2582_v41 = vsel %vm2581_vm12, %v6516_v32, %v2580_v28 }
 0x303   : > { %v2703_v51 = vmul.f32 %v6536_v50, %v2685_v53  ;;  %v6681_v37 = vmul.f32 %v2435_v48, %v6355_v11  ;;  %v4615_v8 = vpop.f32.mrb[161].mxu1  ;;  %v4633_v3 = vpop.f32.mrb[173].mxu0  ;;  %v2430_v59 = vadd.f32 0.0009, %v2412_v20  ;;  %v2584_v23 = vand.u32 2147483648, %v6516_v32 }
 0x304   : > { %v6684_v4 = vpop.eup %4991  ;;  %v2436_v35 = vadd.f32 0.0009, %v2418_v39  ;;  %v2587_v33 = vmul.f32 %v6611_v21, %v6534_v30  ;;  %v2015_v36 = vpop.f32.mrb[162].mxu1  ;;  %vm2588_vm14 = vcmp.eq.f32.partialorder %v6534_v30, inf  ;;  %vm2590_vm15 = vcmp.eq.f32.partialorder %v6534_v30, 0.0  ;;  %v7285_v3 = vld [vmem:[#allocation29_spill] sm:$0xff] }
 0x305   : > { %v2819_v7 = vsel %vm523_vm1, %v2703_v51, 0.0  ;;  %v2591_v11 = vand.u32 2147483648, %v6534_v30  ;;  %v2072_v28 = vpop.f32.mrb[174].mxu0  ;;  %v4616_v53 = vpop.f32.mrb[163].mxu1  ;;  %v6696_v13 = vmul.f32 %v2430_v59, %v6195_v29  ;;  %v2585_v21 = vsel %vm2583_vm13, %v2584_v23, %v2582_v41  ;;  %v7289_v23 = vld [vmem:[#allocation49_spill] sm:$0xff] }
 0x306   : > { %v6689_v43 = vpop.eup %4993  ;;  %2820 = vadd.xlane.f32.xlu1 %v2819_v7  ;;  %v6699_v48 = vmul.f32 %v2436_v35, %v6366_v44  ;;  %v2589_v20 = vsel %vm2588_vm14, %v6534_v30, %v2587_v33  ;;  %v4634_v39 = vpop.f32.mrb[175].mxu0  ;;  %v2669_v51 = vmul.f32 2.0, %v2585_v21  ;;  %v2233_v49 = vsub.f32 %v2012_v19, %v7285_v3 }
 0x307   : > { %v2592_v8 = vsel %vm2590_vm15, %v2591_v11, %v2589_v20  ;;  %v2239_v47 = vsub.f32 %v2069_v25, %v7286_v54  ;;  %v6706_v53 = vpop.eup %4995  ;;  %v2622_v29 = vmul.f32 %v6603_v14, %v6520_v6  ;;  %vm2623_vm2 = vcmp.eq.f32.partialorder %v6520_v6, inf  ;;  %v7288_v25 = vld [vmem:[#allocation30_spill] sm:$0xff] }
 0x308   : > { %7287 = vst [vmem:[#allocation29_spill] sm:$0xff] %v6706_v53  ;;  %v2670_v7 = vmul.f32 2.0, %v2592_v8  ;;  %vm2625_vm3 = vcmp.eq.f32.partialorder %v6520_v6, 0.0  ;;  %v6712_v44 = vpop.eup %4997  ;;  %v2687_v32 = vadd.f32 0.0009, %v2669_v51  ;;  %v2413_v30 = vmul.f32 2.0, %v2233_v49 }
 0x309   : > { %v2419_v41 = vmul.f32 2.0, %v2239_v47  ;;  %v2626_v59 = vand.u32 2147483648, %v6520_v6  ;;  %v2624_v54 = vsel %vm2623_vm2, %v6520_v6, %v2622_v29  ;;  %v2234_v35 = vsub.f32 %v2015_v36, %v7288_v25  ;;  %v2020_v11 = vpop.f32.mrb[164].mxu1  ;;  %v2077_v14 = vpop.f32.mrb[176].mxu0  ;;  %v7291_v53 = vld [vmem:[#allocation33_spill] sm:$0xff] }
 0x30a   : > { %v2688_v19 = vadd.f32 0.0009, %v2670_v7  ;;  %v2240_v33 = vsub.f32 %v2072_v28, %v7289_v23  ;;  %v6718_v21 = vpop.eup %4999  ;;  %v2705_v20 = vmul.f32 %v6585_v2, %v2687_v32  ;;  %v2431_v39 = vadd.f32 0.0009, %v2413_v30  ;;  %v4619_v49 = vpop.f32.mrb[165].mxu1 }
 0x30b   : > { %7290 = vst [vmem:[#allocation47_spill] sm:$0xff] %v6718_v21  ;;  %v2437_v8 = vadd.f32 0.0009, %v2419_v41  ;;  %v2627_v47 = vsel %vm2625_vm3, %v2626_v59, %v2624_v54  ;;  %v4637_v51 = vpop.f32.mrb[177].mxu0  ;;  %v2414_v29 = vmul.f32 2.0, %v2234_v35  ;;  %v2023_v25 = vpop.f32.mrb[166].mxu1  ;;  %v2629_v6 = vmul.f32 %v6627_v5, %v6540_v45 }
 0x30c   : > { %v2706_v3 = vmul.f32 %v6608_v34, %v2688_v19  ;;  %v2675_v7 = vmul.f32 2.0, %v2627_v47  ;;  %v2420_v36 = vmul.f32 2.0, %v2240_v33  ;;  %v2080_v28 = vpop.f32.mrb[178].mxu0  ;;  %v2825_v23 = vsel %vm523_vm1, %v2705_v20, 0.0  ;;  %v4620_v41 = vpop.f32.mrb[167].mxu1  ;;  %v7292_v5 = vld [vmem:[#allocation34_spill] sm:$0xff] }
 0x30d   : > { %v6726_v21 = vmul.f32 %v2431_v39, %v7291_v53  ;;  %v6729_v32 = vmul.f32 %v2437_v8, %v6376_v63  ;;  %v4638_v30 = vpop.f32.mrb[179].mxu0  ;;  %2826 = vadd.xlane.f32.xlu0 %v2825_v23  ;;  %v2432_v54 = vadd.f32 0.0009, %v2414_v29  ;;  %vm2630_vm4 = vcmp.eq.f32.partialorder %v6540_v45, inf  ;;  %v7293_v51 = vld [vmem:[#allocation31_spill] sm:$0xff]  ;;  %v7295_v41 = vld [vmem:[#allocation32_spill] sm:$0xff] }
 0x30e   : > { %v2828_v59 = vsel %vm523_vm1, %v2706_v3, 0.0  ;;  %v2693_v19 = vadd.f32 0.0009, %v2675_v7  ;;  %v2438_v35 = vadd.f32 0.0009, %v2420_v36  ;;  %v2631_v53 = vsel %vm2630_vm4, %v6540_v45, %v2629_v6  ;;  %v7294_v7 = vld [vmem:[#allocation51_spill] sm:$0xff] }
 0x30f   : > { %2829 = vadd.xlane.f32.xlu1 %v2828_v59  ;;  %vm2632_vm5 = vcmp.eq.f32.partialorder %v6540_v45, 0.0  ;;  %v2633_v63 = vand.u32 2147483648, %v6540_v45  ;;  %v6740_v20 = vmul.f32 %v2432_v54, %v7292_v5  ;;  %v2465_v39 = vmul.f32 %v6496_v26, %v6678_v10 }
 0x310   : > { %v2711_v33 = vmul.f32 %v6600_v46, %v2693_v19  ;;  %v2471_v8 = vmul.f32 %v6585_v2, %v6681_v37  ;;  %v6747_v47 = vmul.f32 %v2438_v35, %v6383_v42  ;;  %v2235_v3 = vsub.f32 %v2020_v11, %v7293_v51  ;;  %v2118_v6 = vpop.f32.mrb[168].mxu1  ;;  %v6754_v26 = vpop.f32.mrb[180].mxu0 }
 0x311   : > { %v2634_v49 = vsel %vm2632_vm5, %v2633_v63, %v2631_v53  ;;  %v2241_v29 = vsub.f32 %v2077_v14, %v7294_v7  ;;  %5001 = vrsqrt.f32 %v6655_v15  ;;  %v2717_v23 = vsel %vm523_vm1, %v2465_v39, 0.0  ;;  %v4647_v37 = vpop.f32.mrb[169].mxu1  ;;  %v4665_v11 = vpop.f32.mrb[181].mxu0 }
 0x312   : > { %v2843_v45 = vsel %vm523_vm1, %v2711_v33, 0.0  ;;  %v2676_v36 = vmul.f32 2.0, %v2634_v49  ;;  %v2415_v2 = vmul.f32 2.0, %v2235_v3  ;;  %v2594_v42 = vmul.f32 %v6638_v17, %v6564_v0  ;;  %v6762_v19 = vpop.f32.mrb[170].mxu1  ;;  %v2974_v54 = vpop.f32.mrb[182].mxu0 }
 0x313   : > { %2844 = vadd.xlane.f32.xlu0 %v2843_v45  ;;  %v2421_v10 = vmul.f32 2.0, %v2241_v29  ;;  %vm2595_vm6 = vcmp.eq.f32.partialorder %v6564_v0, inf  ;;  %vm2597_vm7 = vcmp.eq.f32.partialorder %v6564_v0, 0.0  ;;  %v2598_v30 = vand.u32 2147483648, %v6564_v0  ;;  %v4666_v33 = vpop.f32.mrb[183].mxu0  ;;  %v4648_v5 = vpop.f32.mrb[171].mxu1 }
 0x314   : > { %v2694_v14 = vadd.f32 0.0009, %v2676_v36  ;;  %v2236_v59 = vsub.f32 %v2023_v25, %v7295_v41  ;;  %v2433_v35 = vadd.f32 0.0009, %v2415_v2  ;;  %v2596_v63 = vsel %vm2595_vm6, %v6564_v0, %v2594_v42  ;;  %v7296_v25 = vld [vmem:[#allocation35_spill] sm:$0xff]  ;;  %v7297_v29 = vld [vmem:[#allocation52_spill] sm:$0xff] }
 0x315   : > { %v2439_v53 = vadd.f32 0.0009, %v2421_v10  ;;  %v2242_v17 = vsub.f32 %v2080_v28, %v6363_v57  ;;  %v2599_v49 = vsel %vm2597_vm7, %v2598_v30, %v2596_v63  ;;  %v2636_v3 = vmul.f32 %v6651_v40, %v6570_v55  ;;  %v7298_v42 = vld [vmem:[#allocation36_spill] sm:$0xff]  ;;  %v7299_v30 = vld [vmem:[#allocation37_spill] sm:$0xff] }
 0x316   : > { %v2712_v39 = vmul.f32 %v6618_v22, %v2694_v14  ;;  %v2416_v51 = vmul.f32 2.0, %v2236_v59  ;;  %v6770_v7 = vmul.f32 %v2433_v35, %v7296_v25  ;;  %v2671_v36 = vmul.f32 2.0, %v2599_v49  ;;  %v7300_v63 = vld [vmem:[#allocation53_spill] sm:$0xff] }
 0x317   : > { %2718 = vadd.xlane.f32.xlu0 %v2717_v23  ;;  %v6773_v45 = vmul.f32 %v2439_v53, %v7297_v29  ;;  %v2422_v0 = vmul.f32 2.0, %v2242_v17  ;;  %vm2637_vm8 = vcmp.eq.f32.partialorder %v6570_v55, inf  ;;  %vm2639_vm9 = vcmp.eq.f32.partialorder %v6570_v55, 0.0 }
 0x318   : > { %v2846_v57 = vsel %vm523_vm1, %v2712_v39, 0.0  ;;  %v2434_v28 = vadd.f32 0.0009, %v2416_v51  ;;  %v2689_v2 = vadd.f32 0.0009, %v2671_v36  ;;  %v2638_v40 = vsel %vm2637_vm8, %v6570_v55, %v2636_v3  ;;  %v2126_v59 = vpop.f32.mrb[172].mxu1 }
 0x319   : > { %2847 = vadd.xlane.f32.xlu1 %v2846_v57  ;;  %v2440_v10 = vadd.f32 0.0009, %v2422_v0  ;;  %v2640_v23 = vand.u32 2147483648, %v6570_v55  ;;  %v2466_v11 = vmul.f32 %v6503_v27, %v6696_v13  ;;  %v2472_v14 = vmul.f32 %v6608_v34, %v6699_v48  ;;  %v6788_v35 = vpop.f32.mrb[184].mxu0  ;;  %v4651_v5 = vpop.f32.mrb[173].mxu1  ;;  %v7301_v57 = vld [vmem:[#allocation38_spill] sm:$0xff] }
 0x31a   : > { %v6781_v37 = vmul.f32 %v2434_v28, %v7298_v42  ;;  %v2243_v41 = vsub.f32 %v2118_v6, %v7299_v30  ;;  %v2707_v53 = vmul.f32 %v6632_v56, %v2689_v2  ;;  %v2601_v33 = vmul.f32 %v6662_v12, %v6576_v38  ;;  %v4669_v39 = vpop.f32.mrb[185].mxu0  ;;  %v6800_v49 = vpop.f32.mrb[174].mxu1  ;;  %v7302_v42 = vld [vmem:[#allocation42_spill] sm:$0xff] }
 0x31b   : > { %v6792_v17 = vmul.f32 %v2440_v10, %v7300_v63  ;;  %v2641_v55 = vsel %vm2639_vm9, %v2640_v23, %v2638_v40  ;;  %v6796_v27 = vpop.eup %5001  ;;  %v2735_v34 = vsel %vm523_vm1, %v2471_v8, 0.0  ;;  %v2720_v48 = vsel %vm523_vm1, %v2466_v11, 0.0  ;;  %v2982_v51 = vpop.f32.mrb[186].mxu0  ;;  %v7303_v39 = vld [vmem:[#allocation39_spill] sm:$0xff] }
 0x31c   : > { %v2677_v13 = vmul.f32 2.0, %v2641_v55  ;;  %v2423_v6 = vmul.f32 2.0, %v2243_v41  ;;  %v2831_v3 = vsel %vm523_vm1, %v2707_v53, 0.0  ;;  %vm2602_vm10 = vcmp.eq.f32.partialorder %v6576_v38, inf  ;;  %v4670_v25 = vpop.f32.mrb[187].mxu0  ;;  %v4652_v29 = vpop.f32.mrb[175].mxu1 }
 0x31d   : > { %2736 = vadd.xlane.f32.xlu1 %v2735_v34  ;;  %vm2604_vm11 = vcmp.eq.f32.partialorder %v6576_v38, 0.0  ;;  %v2605_v12 = vand.u32 2147483648, %v6576_v38  ;;  %2832 = vadd.xlane.f32.xlu0 %v2831_v3  ;;  %v2603_v0 = vsel %vm2602_vm10, %v6576_v38, %v2601_v33  ;;  %v2244_v28 = vsub.f32 %v6762_v19, %v7301_v57 }
 0x31e   : > { %v2695_v8 = vadd.f32 0.0009, %v2677_v13  ;;  %v2441_v36 = vadd.f32 0.0009, %v2423_v6  ;;  %v3042_v10 = vpack.c.bf16 %v2974_v54, %v6754_v26  ;;  %v2643_v40 = vmul.f32 %v6672_v61, %v6589_v52 }
 0x31f   : > { %v2606_v2 = vsel %vm2604_vm11, %v2605_v12, %v2603_v0  ;;  %vm2644_vm12 = vcmp.eq.f32.partialorder %v6589_v52, inf  ;;  %v2424_v41 = vmul.f32 2.0, %v2244_v28  ;;  %vm2646_vm13 = vcmp.eq.f32.partialorder %v6589_v52, 0.0  ;;  %v7305_v0 = vld [vmem:[#allocation40_spill] sm:$0xff] }
 0x320   : > { %v2713_v23 = vmul.f32 %v6646_v58, %v2695_v8  ;;  %v6815_v11 = vmul.f32 %v2441_v36, %v7302_v42  ;;  %v2672_v30 = vmul.f32 2.0, %v2606_v2  ;;  %v2645_v38 = vsel %vm2644_vm12, %v6589_v52, %v2643_v40  ;;  %4699 = vmatprep.subr.bf16.mxu1 %v3042_v10  ;;  %v2134_v55 = vpop.f32.mrb[176].mxu1 }
 0x321   : > { %v2647_v19 = vand.u32 2147483648, %v6589_v52  ;;  %v2467_v26 = vmul.f32 %v6512_v62, %v6726_v21  ;;  %2721 = vadd.xlane.f32.xlu0 %v2720_v48  ;;  %v2442_v53 = vadd.f32 0.0009, %v2424_v41  ;;  %4700 = vmatpush3.bf16.msra.mxu1 %v3042_v10  ;;  %v2473_v63 = vmul.f32 %v6632_v56, %v6729_v32  ;;  %v2987_v21 = vpop.f32.mrb[188].mxu0  ;;  %v4655_v34 = vpop.f32.mrb[177].mxu1  ;;  %v7304_v48 = vld [vmem:[#allocation44_spill] sm:$0xff] }
 0x322   : > { %v2849_v61 = vsel %vm523_vm1, %v2713_v23, 0.0  ;;  %v2690_v54 = vadd.f32 0.0009, %v2672_v30  ;;  %v2738_v33 = vsel %vm523_vm1, %v2472_v14, 0.0  ;;  %v2245_v52 = vsub.f32 %v2126_v59, %v7303_v39  ;;  %v4673_v32 = vpop.f32.mrb[189].mxu0  ;;  %v2137_v12 = vpop.f32.mrb[178].mxu1 }
 0x323   : > { %2850 = vadd.xlane.f32.xlu1 %v2849_v61  ;;  %v2648_v5 = vsel %vm2646_vm13, %v2647_v19, %v2645_v38  ;;  %v2608_v62 = vmul.f32 %v6689_v43, %v6616_v60  ;;  %v6831_v6 = vmul.f32 %v2442_v53, %v7304_v48  ;;  %v2723_v56 = vsel %vm523_vm1, %v2467_v26, 0.0  ;;  %v2990_v43 = vpop.f32.mrb[190].mxu0  ;;  %v4656_v59 = vpop.f32.mrb[179].mxu1 }
 0x324   : > { %v2708_v13 = vmul.f32 %v6659_v31, %v2690_v54  ;;  %v2678_v3 = vmul.f32 2.0, %v2648_v5  ;;  %v2425_v25 = vmul.f32 2.0, %v2245_v52  ;;  %vm2609_vm14 = vcmp.eq.f32.partialorder %v6616_v60, inf  ;;  %v4674_v28 = vpop.f32.mrb[191].mxu0  ;;  %v7308_v52 = vld [vmem:[#allocation46_spill] sm:$0xff] }
 0x325   : > { %vm2611_vm15 = vcmp.eq.f32.partialorder %v6616_v60, 0.0  ;;  %v2612_v14 = vand.u32 2147483648, %v6616_v60  ;;  %v2610_v36 = vsel %vm2609_vm14, %v6616_v60, %v2608_v62  ;;  %v2246_v57 = vsub.f32 %v6800_v49, %v7305_v0  ;;  %v7306_v60 = vld [vmem:[#allocation45_spill] sm:$0xff] }
 0x326   : > { %v2834_v29 = vsel %vm523_vm1, %v2708_v13, 0.0  ;;  %v2696_v8 = vadd.f32 0.0009, %v2678_v3  ;;  %v2443_v2 = vadd.f32 0.0009, %v2425_v25  ;;  %v3043_v40 = vpack.c.bf16 %v2982_v51, %v6788_v35  ;;  %v7309_v3 = vld [vmem:[#allocation43_spill] sm:$0xff] }
 0x327   : > { %2739 = vadd.xlane.f32.xlu1 %v2738_v33  ;;  %2835 = vadd.xlane.f32.xlu0 %v2834_v29  ;;  %v2613_v10 = vsel %vm2611_vm15, %v2612_v14, %v2610_v36  ;;  %v2650_v23 = vmul.f32 %v6712_v44, %v6623_v16  ;;  %v2426_v41 = vmul.f32 2.0, %v2246_v57  ;;  %vm2651_vm2 = vcmp.eq.f32.partialorder %v6623_v16, inf  ;;  %v7307_v33 = vld [vmem:[#allocation41_spill] sm:$0xff] }
 0x328   : > { %v2714_v42 = vmul.f32 %v6670_v24, %v2696_v8  ;;  %v2673_v30 = vmul.f32 2.0, %v2613_v10  ;;  %v2461_v38 = vmul.f32 %v2443_v2, %v7306_v60  ;;  %vm2653_vm3 = vcmp.eq.f32.partialorder %v6623_v16, 0.0  ;;  %4701 = vmatprep.subr.bf16.mxu1 %v3043_v40  ;;  %v2995_v61 = vpop.f32.mrb[192].mxu0  ;;  %v7311_v29 = vld [vmem:[#allocation29_spill] sm:$0xff]  ;;  %v7315_v2 = vld [vmem:[#allocation54_spill] sm:$0xff]  ;;  %v7316_v10 = vld [vmem:[#allocation56_spill] sm:$0xff] }
 0x329   : > { %v2652_v49 = vsel %vm2651_vm2, %v6623_v16, %v2650_v23  ;;  %v2654_v19 = vand.u32 2147483648, %v6623_v16  ;;  %v2444_v26 = vadd.f32 0.0009, %v2426_v41  ;;  %v2468_v44 = vmul.f32 %v6529_v1, %v6740_v20  ;;  %4702 = vmatpush3.bf16.msra.mxu1 %v3043_v40  ;;  %v4677_v5 = vpop.f32.mrb[193].mxu0 }
 0x32a   : > { %v2852_v35 = vsel %vm523_vm1, %v2714_v42, 0.0  ;;  %v2691_v51 = vadd.f32 0.0009, %v2673_v30  ;;  %5003 = vrsqrt.f32 %v6642_v18  ;;  %v2474_v53 = vmul.f32 %v6659_v31, %v6747_v47  ;;  %v2998_v20 = vpop.f32.mrb[194].mxu0 }
 0x32b   : > { %2853 = vadd.xlane.f32.xlu1 %v2852_v35  ;;  %2724 = vadd.xlane.f32.xlu0 %v2723_v56  ;;  %v2655_v54 = vsel %vm2653_vm3, %v2654_v19, %v2652_v49  ;;  %v2247_v16 = vsub.f32 %v2134_v55, %v7307_v33  ;;  %5005 = vrcp.f32 %v6664_v9  ;;  %v2462_v62 = vmul.f32 %v2444_v26, %v7308_v52  ;;  %v4678_v31 = vpop.f32.mrb[195].mxu0  ;;  %v6911_v49 = vld [vmem:[%s7176_s4] sm:$0xff]  }
 0x32c   : > { %v2709_v39 = vmul.f32 %v6684_v4, %v2691_v51  ;;  %v2679_v1 = vmul.f32 2.0, %v2655_v54  ;;  %v2741_v34 = vsel %vm523_vm1, %v2473_v63, 0.0  ;;  %v2469_v48 = vmul.f32 %v6536_v50, %v6770_v7  ;;  %v7310_v63 = vld [vmem:[#allocation55_spill] sm:$0xff] }
 0x32d   : > { %v2427_v13 = vmul.f32 2.0, %v2247_v16  ;;  %v2248_v56 = vsub.f32 %v2137_v12, %v7309_v3  ;;  %v3044_v32 = vpack.c.bf16 %v2990_v43, %v2987_v21  ;;  %v2475_v9 = vmul.f32 %v6684_v4, %v6773_v45  ;;  %v7312_v50 = vld [vmem:[#allocation47_spill] sm:$0xff]  ;;  %v6881_v4 = vld [vmem:[%s7176_s4 + $0x8] ss:$0 sps:$4 sm:$0xff]  }
 0x32e   : > { %v2837_v47 = vsel %vm523_vm1, %v2709_v39, 0.0  ;;  %v2697_v55 = vadd.f32 0.0009, %v2679_v1  ;;  %v2470_v59 = vmul.f32 %v7310_v63, %v6781_v37  ;;  %v6872_v7 = vmul.f32 %v7312_v50, %v6792_v17  ;;  %v7313_v45 = vld [vmem:[#allocation48_spill] sm:$0xff] }
 0x32f   : > { %2742 = vadd.xlane.f32.xlu1 %v2741_v34  ;;  %2838 = vadd.xlane.f32.xlu0 %v2837_v47  ;;  %v2445_v25 = vadd.f32 0.0009, %v2427_v13  ;;  %v2428_v14 = vmul.f32 2.0, %v2248_v56  ;;  %v6876_v21 = vmul.f32 %v6600_v46, %v6815_v11  ;;  %v3045_v37 = vpack.c.bf16 %v2998_v20, %v2995_v61  ;;  %v7314_v11 = vld [vmem:[#allocation50_spill] sm:$0xff] }
 0x330   : > { %v2715_v8 = vmul.f32 %v7311_v29, %v2697_v55  ;;  %4703 = vmatprep.subr.bf16.mxu1 %v3044_v32  ;;  %v2726_v0 = vsel %vm523_vm1, %v2468_v44, 0.0  ;;  %v6888_v17 = vmul.f32 %v6618_v22, %v6831_v6  ;;  %v3003_v46 = vpop.f32.mrb[196].mxu0  ;;  %v6892_v28 = vmul.f32 %v6646_v58, %v2461_v38 }
 0x331   : > { %v2463_v12 = vmul.f32 %v2445_v25, %v7313_v45  ;;  %v2446_v43 = vadd.f32 0.0009, %v2428_v14  ;;  %4704 = vmatpush3.bf16.msra.mxu1 %v3044_v32  ;;  %v2573_v40 = vmul.f32 %v7316_v10, %v7315_v2  ;;  %v4681_v23 = vpop.f32.mrb[197].mxu0  ;;  %vm2574_vm4 = vcmp.eq.f32.partialorder %v7315_v2, inf }
 0x332   : > { %v2855_v36 = vsel %vm523_vm1, %v2715_v8, 0.0  ;;  %4709 = vmatprep.subr.bf16.mxu1 %v3045_v37  ;;  %v2577_v22 = vand.u32 2147483648, %v7315_v2  ;;  %v6901_v6 = vmul.f32 %v6670_v24, %v2462_v62  ;;  %v3006_v42 = vpop.f32.mrb[198].mxu0  ;;  %v2657_v58 = vmul.f32 %v6796_v27, %v6655_v15 }
 0x333   : > { %2856 = vadd.xlane.f32.xlu1 %v2855_v36  ;;  %2727 = vadd.xlane.f32.xlu0 %v2726_v0  ;;  %v2464_v57 = vmul.f32 %v2446_v43, %v7314_v11  ;;  %v2575_v41 = vsel %vm2574_vm4, %v7315_v2, %v2573_v40  ;;  %vm2576_vm5 = vcmp.eq.f32.partialorder %v7315_v2, 0.0  ;;  %v3046_v60 = vpack.c.bf16 %v3006_v42, %v3003_v46  ;;  %v4682_v38 = vpop.f32.mrb[199].mxu0  ;;  %v5009_v42 = vld [vmem:[%s7177_s5 + $0x8] sm:$0xff]  }
 0x334   : > { %4706 = vmatmul.mubr.msk.bf16.vlgmr.msra.gmra.mrb[180].mxu1 %vm523_vm1, %v6881_v4  ;;  %v5004_v30 = vpop.eup %5003  ;;  %vm2658_vm6 = vcmp.eq.f32.partialorder %v6655_v15, inf  ;;  %v2744_v27 = vsel %vm523_vm1, %v2474_v53, 0.0  ;;  %v2729_v19 = vsel %vm523_vm1, %v2469_v48, 0.0  ;;  %v2578_v35 = vsel %vm2576_vm5, %v2577_v22, %v2575_v41  ;;  %v7319_v41 = vld [vmem:[#allocation21_spill] sm:$0xff]  ;;  %v7321_v38 = vld [vmem:[#allocation23_spill] sm:$0xff] }
 0x335   : > { %4710 = vmatpush3.bf16.msra.mxu1 %v3045_v37  ;;  %4715 = vmatprep.mubr.msk.bf16.mxu1 %vm523_vm1, %v6911_v49  ;;  %v5006_v24 = vpop.eup %5005  ;;  %v2659_v51 = vsel %vm2658_vm6, %v6655_v15, %v2657_v58  ;;  %v2668_v26 = vmul.f32 2.0, %v2578_v35  ;;  %v2661_v44 = vand.u32 2147483648, %v6655_v15  ;;  %v2481_v61 = vmul.f32 %v7311_v29, %v2463_v12  ;;  %v5010_v58 = vld [vmem:[%s7177_s5 + $0x10] sm:$0xff]  }
 0x336   : > { %v2482_v54 = vmul.f32 %v5006_v24, %v2464_v57  ;;  %v2747_v33 = vsel %vm523_vm1, %v2475_v9, 0.0  ;;  %vm2660_vm7 = vcmp.eq.f32.partialorder %v6655_v15, 0.0  ;;  %4711 = vmatprep.subr.bf16.mxu1 %v3046_v60  ;;  %v2615_v53 = vmul.f32 %v5004_v30, %v6642_v18  ;;  %v7318_v30 = vld [vmem:[#allocation20_spill] sm:$0xff] }
 0x337   : > { %2745 = vadd.xlane.f32.xlu1 %v2744_v27  ;;  %2730 = vadd.xlane.f32.xlu0 %v2729_v19  ;;  %v2686_v16 = vadd.f32 0.0009, %v2668_v26  ;;  %v2662_v5 = vsel %vm2660_vm7, %v2661_v44, %v2659_v51  ;;  %vm2616_vm8 = vcmp.eq.f32.partialorder %v6642_v18, inf  ;;  %v2619_v39 = vand.u32 2147483648, %v6642_v18  ;;  %v7323_v19 = vld [vmem:[#allocation25_spill] sm:$0xff]  ;;  %v7324_v44 = vld [vmem:[#allocation26_spill] sm:$0xff] }
 0x338   : > { %v2732_v52 = vsel %vm523_vm1, %v2470_v59, 0.0  ;;  %v2680_v62 = vmul.f32 2.0, %v2662_v5  ;;  %v3011_v1 = vpop.f32.mrb[200].mxu0  ;;  %v2617_v20 = vsel %vm2616_vm8, %v6642_v18, %v2615_v53  ;;  %vm2618_vm9 = vcmp.eq.f32.partialorder %v6642_v18, 0.0 }
 0x339   : > { %4712 = vmatpush3.bf16.msra.mxu1 %v3046_v60  ;;  %v2704_v15 = vmul.f32 %v7310_v63, %v2686_v16  ;;  %v4685_v34 = vpop.f32.mrb[201].mxu0  ;;  %v2620_v13 = vsel %vm2618_vm9, %v2619_v39, %v2617_v20  ;;  %v2750_v55 = vsel %vm523_vm1, %v6872_v7, 0.0  ;;  %v2753_v32 = vsel %vm523_vm1, %v6876_v21, 0.0  ;;  %v7320_v60 = vld [vmem:[#allocation22_spill] sm:$0xff] }
 0x33a   : > { %v2698_v48 = vadd.f32 0.0009, %v2680_v62  ;;  %v3014_v3 = vpop.f32.mrb[202].mxu0  ;;  %v2674_v56 = vmul.f32 2.0, %v2620_v13  ;;  %v2756_v14 = vsel %vm523_vm1, %v6888_v17, 0.0  ;;  %v2759_v63 = vsel %vm523_vm1, %v6892_v28, 0.0 }
 0x33b   : > { %2748 = vadd.xlane.f32.xlu1 %v2747_v33  ;;  %2733 = vadd.xlane.f32.xlu0 %v2732_v52  ;;  %v3047_v31 = vpack.c.bf16 %v3014_v3, %v3011_v1  ;;  %v4686_v47 = vpop.f32.mrb[203].mxu0  ;;  %v2762_v45 = vsel %vm523_vm1, %v6901_v6, 0.0  ;;  %v2765_v43 = vsel %vm523_vm1, %v2481_v61, 0.0  ;;  %v2768_v11 = vsel %vm523_vm1, %v2482_v54, 0.0  ;;  %v5008_v6 = vld [vmem:[%s7177_s5] sm:$0xff]   ;;  %v7326_v52 = vld [vmem:[#allocation28_spill] sm:$0xff] }
 0x33c   : > { %v2716_v9 = vmul.f32 %v5006_v24, %v2698_v48  ;;  %v2692_v25 = vadd.f32 0.0009, %v2674_v56  ;;  %v7317_v22 = vmov 0.0   ;;  %v7322_v24 = vld [vmem:[#allocation24_spill] sm:$0xff]  ;;  %v7325_v33 = vld [vmem:[#allocation27_spill] sm:$0xff]  ;;  %vm3248_vm10 = vcmask 191488  }
 0x33d   : > { %4713 = vmatprep.subr.bf16.mxu1 %v3047_v31 }
 0x33e   : > { %v2710_v18 = vmul.f32 %v7312_v50, %v2692_v25  ;;  %4714 = vmatpush3.bf16.msra.mxu1 %v3047_v31  ;;  %v2822_v50 = vsel %vm523_vm1, %v2704_v15, 0.0  ;;  %v2858_v12 = vsel %vm523_vm1, %v2716_v9, 0.0 }
 0x33f   : > { %2751 = vadd.xlane.f32.xlu1 %v2750_v55  ;;  %2754 = vadd.xlane.f32.xlu0 %v2753_v32 }
 0x340   : > { %v3019_v59 = vpop.f32.mrb[204].mxu0  ;;  %v2840_v57 = vsel %vm523_vm1, %v2710_v18, 0.0 }
 0x341   : > { %v4689_v29 = vpop.f32.mrb[205].mxu0  ;;  %4716 = vmatmul.mubr.msk.bf16.vlgmr.msra.gmra.mrb[184].mxu1 %vm523_vm1, %v6881_v4 }
 0x342   : > { %v3022_v8 = vpop.f32.mrb[206].mxu0  ;;  %4725 = vmatprep.mubr.msk.bf16.mxu1 %vm523_vm1, %v6911_v49 }
 0x343   : > { %2757 = vadd.xlane.f32.xlu1 %v2756_v14  ;;  %2760 = vadd.xlane.f32.xlu0 %v2759_v63  ;;  %v3048_v7 = vpack.c.bf16 %v3022_v8, %v3019_v59  ;;  %v4690_v21 = vpop.f32.mrb[207].mxu0 }
 0x345   : > { %4719 = vmatprep.subr.bf16.mxu1 %v3048_v7 }
 0x346   : > { %4720 = vmatpush3.bf16.msra.mxu1 %v3048_v7 }
 0x347   : > { %2823 = vadd.xlane.f32.xlu1 %v2822_v50  ;;  %2763 = vadd.xlane.f32.xlu0 %v2762_v45 }
 0x348   : > { %v3027_v37 = vpop.f32.mrb[208].mxu0 }
 0x349   : > { %v4693_v36 = vpop.f32.mrb[209].mxu0 }
 0x34a   : > { %v3030_v0 = vpop.f32.mrb[210].mxu0 }
 0x34b   : > { %2859 = vadd.xlane.f32.xlu1 %v2858_v12  ;;  %2766 = vadd.xlane.f32.xlu0 %v2765_v43  ;;  %v3049_v17 = vpack.c.bf16 %v3030_v0, %v3027_v37  ;;  %v4694_v46 = vpop.f32.mrb[211].mxu0 }
 0x34d   : > { %4721 = vmatprep.subr.bf16.mxu1 %v3049_v17 }
 0x34e   : > { %4722 = vmatpush3.bf16.msra.mxu1 %v3049_v17 }
 0x34f   : > { %2769 = vadd.xlane.f32.xlu0 %v2768_v11 }
 0x350   : > { %v3035_v28 = vpop.f32.mrb[212].mxu0 }
 0x351   : > { %v4697_v2 = vpop.f32.mrb[213].mxu0 }
 0x352   : > { %v3038_v10 = vpop.f32.mrb[214].mxu0 }
 0x353   : > { %2841 = vadd.xlane.f32.xlu0 %v2840_v57  ;;  %v3050_v40 = vpack.c.bf16 %v3038_v10, %v3035_v28  ;;  %v4698_v23 = vpop.f32.mrb[215].mxu0 }
 0x355   : > { %4723 = vmatprep.subr.bf16.mxu1 %v3050_v40 }
 0x356   : > { %4724 = vmatpush3.bf16.msra.mxu1 %v3050_v40 }
 0x357   : > { %4729 = vmatprep.subr.bf16.mxu1 %v7317_v22 }
 0x359   : > { %4726 = vmatmul.mubr.msk.bf16.vlgmr.msra.gmra.mrb[188].mxu1 %vm523_vm1, %v6881_v4 }
 0x35a   : > { %4730 = vmatpush3.bf16.msra.mxu1 %v5008_v6  ;;  %4735 = vmatprep.mubr.msk.bf16.mxu1 %vm5215_vm0, %v7317_v22 }
 0x35b   : > { %4731 = vmatprep.subr.bf16.mxu1 %v7317_v22 }
 0x35e   : > { %4732 = vmatpush3.bf16.msra.mxu1 %v5009_v42 }
 0x35f   : > { %4733 = vmatprep.subr.bf16.mxu1 %v7317_v22 }
 0x362   : > { %4734 = vmatpush3.bf16.msra.mxu1 %v5010_v58 }
 0x365   : > { %4736 = vmatmul.mubr.msk.bf16.vlgmr.msra.gmra.mrb[192].mxu1 %vm523_vm1, %v7318_v30 }
 0x366   : > { %4739 = vmatprep.mubr.msk.bf16.mxu1 %vm5215_vm0, %v7317_v22 }
 0x36d   : > { %4740 = vmatmul.mubr.msk.bf16.gmra.mrb[196].mxu1 %vm523_vm1, %v7319_v41 }
 0x36e   : > { %4743 = vmatprep.mubr.msk.bf16.mxu1 %vm5215_vm0, %v7317_v22 }
 0x375   : > { %4744 = vmatmul.mubr.msk.bf16.gmra.mrb[200].mxu1 %vm523_vm1, %v7320_v60  ;;  %v2809_v26 = vpop.xlane.xlu0 %2808 }
 0x376   : > { %4747 = vmatprep.mubr.msk.bf16.mxu1 %vm5215_vm0, %v7317_v22 }
 0x377   : > { %v2812_v27 = vpop.xlane.xlu1 %2811 }
 0x378   : > { %v2861_v36 = vadd.f32 %v2812_v27, %v2809_v26 }
 0x37d   : > { %4748 = vmatmul.mubr.msk.bf16.gmra.mrb[204].mxu1 %vm523_vm1, %v7321_v38 }
 0x37e   : > { %4751 = vmatprep.mubr.msk.bf16.mxu1 %vm5215_vm0, %v7317_v22 }
 0x385   : > { %4752 = vmatmul.mubr.msk.bf16.gmra.mrb[208].mxu1 %vm523_vm1, %v7322_v24 }
 0x386   : > { %4755 = vmatprep.mubr.msk.bf16.mxu1 %vm5215_vm0, %v7317_v22  ;;  %v2815_v35 = vpop.xlane.xlu1 %2814 }
 0x387   : > { %v2862_v46 = vadd.f32 %v2861_v36, %v2815_v35 }
 0x38a   : > { %v2818_v51 = vpop.xlane.xlu1 %2817 }
 0x38b   : > { %v2863_v40 = vadd.f32 %v2862_v46, %v2818_v51 }
 0x38d   : > { %4756 = vmatmul.mubr.msk.bf16.gmra.mrb[212].mxu1 %vm523_vm1, %v7323_v19 }
 0x38e   : > { %4759 = vmatprep.mubr.msk.bf16.mxu1 %vm5215_vm0, %v7317_v22 }
 0x393   : > { %v2821_v54 = vpop.xlane.xlu1 %2820 }
 0x394   : > { %v2864_v42 = vadd.f32 %v2863_v40, %v2821_v54 }
 0x395   : > { %4760 = vmatmul.mubr.msk.bf16.gmra.mrb[216].mxu1 %vm523_vm1, %v7324_v44 }
 0x396   : > { %4763 = vmatprep.mubr.msk.bf16.mxu1 %vm5215_vm0, %v7317_v22 }
 0x39a   : > { %v6993_v61 = vpop.xlane.xlu0 %2826 }
 0x39c   : > { %v6997_v53 = vpop.xlane.xlu1 %2829 }
 0x39d   : > { %4764 = vmatmul.mubr.msk.bf16.gmra.mrb[220].mxu1 %vm523_vm1, %v7325_v33 }
 0x39e   : > { %4767 = vmatprep.mubr.msk.bf16.mxu1 %vm5215_vm0, %v7317_v22  ;;  %vm2900_vm0 = vcmask 0  }
 0x3a0   : > { %v2845_v16 = vpop.xlane.xlu0 %2844 }
 0x3a4   : > { %v2719_v5 = vpop.xlane.xlu0 %2718 }
 0x3a5   : > { %4768 = vmatmul.mubr.msk.bf16.gmra.mrb[224].mxu1 %vm523_vm1, %v7326_v52 }
 0x3a6   : > { %v2848_v39 = vpop.xlane.xlu1 %2847 }
 0x3a7   : > { %v2883_v28 = vadd.f32 %v2848_v39, %v2845_v16  ;;  %v2872_v16 = vadd.f32 %v6997_v53, %v6993_v61 }
 0x3aa   : > { %v2737_v62 = vpop.xlane.xlu1 %2736  ;;  %v7003_v1 = vpop.xlane.xlu0 %2832 }
 0x3ae   : > { %v2722_v20 = vpop.xlane.xlu0 %2721 }
 0x3af   : > { %v2771_v32 = vadd.f32 %v2722_v20, %v2719_v5 }
 0x3b0   : > { %v2851_v15 = vpop.xlane.xlu1 %2850 }
 0x3b1   : > { %v2884_v6 = vadd.f32 %v2883_v28, %v2851_v15 }
 0x3b4   : > { %v2740_v34 = vpop.xlane.xlu1 %2739  ;;  %v7005_v13 = vpop.xlane.xlu0 %2835 }
 0x3b5   : > { %v2782_v14 = vadd.f32 %v2740_v34, %v2737_v62  ;;  %v2873_v34 = vadd.f32 %v2872_v16, %v7003_v1 }
 0x3b8   : > { %v2854_v48 = vpop.xlane.xlu1 %2853  ;;  %v2725_v3 = vpop.xlane.xlu0 %2724 }
 0x3b9   : > { %v2772_v9 = vadd.f32 %v2771_v32, %v2725_v3  ;;  %v2885_v60 = vadd.f32 %v2884_v6, %v2854_v48  ;;  %v2874_v32 = vadd.f32 %v2873_v34, %v7005_v13 }
 0x3bc   : > { %v2743_v56 = vpop.xlane.xlu1 %2742  ;;  %v7007_v31 = vpop.xlane.xlu0 %2838 }
 0x3bd   : > { %v2783_v59 = vadd.f32 %v2782_v14, %v2743_v56 }
 0x3c0   : > { %v2857_v47 = vpop.xlane.xlu1 %2856  ;;  %v2728_v55 = vpop.xlane.xlu0 %2727 }
 0x3c1   : > { %v2773_v63 = vadd.f32 %v2772_v9, %v2728_v55  ;;  %v2886_v26 = vadd.f32 %v2885_v60, %v2857_v47 }
 0x3c4   : > { %v2746_v25 = vpop.xlane.xlu1 %2745  ;;  %v2731_v18 = vpop.xlane.xlu0 %2730 }
 0x3c5   : > { %v2774_v29 = vadd.f32 %v2773_v63, %v2731_v18  ;;  %v2784_v21 = vadd.f32 %v2783_v59, %v2746_v25  ;;  %v2875_v25 = vadd.f32 %v2874_v32, %v7007_v31 }
 0x3c8   : > { %v2749_v8 = vpop.xlane.xlu1 %2748  ;;  %v2734_v7 = vpop.xlane.xlu0 %2733 }
 0x3c9   : > { %v2775_v50 = vadd.f32 %v2774_v29, %v2734_v7  ;;  %v2785_v45 = vadd.f32 %v2784_v21, %v2749_v8 }
 0x3cb   : > { %v2776_v12 = vrot.slane %v2775_v50, 4 }
 0x3cc   : > { %v2752_v43 = vpop.xlane.xlu1 %2751  ;;  %v2755_v37 = vpop.xlane.xlu0 %2754 }
 0x3cd   : > { %v2777_v0 = vadd.f32 %v2776_v12, %v2775_v50  ;;  %v2786_v17 = vadd.f32 %v2785_v45, %v2752_v43 }
 0x3cf   : > { %v2778_v11 = vrot.slane %v2777_v0, 2  ;;  %v2787_v57 = vrot.slane %v2786_v17, 4 }
 0x3d0   : > { %v2758_v2 = vpop.xlane.xlu1 %2757  ;;  %v2761_v10 = vpop.xlane.xlu0 %2760 }
 0x3d1   : > { %v2779_v23 = vadd.f32 %v2778_v11, %v2777_v0  ;;  %v2788_v22 = vadd.f32 %v2787_v57, %v2786_v17  ;;  %v2793_v41 = vadd.f32 %v2758_v2, %v2755_v37 }
 0x3d3   : > { %v2780_v58 = vrot.slane %v2779_v23, 1  ;;  %v2789_v30 = vrot.slane %v2788_v22, 2  ;;  %v2794_v54 = vadd.f32 %v2793_v41, %v2761_v10 }
 0x3d4   : > { %v2824_v38 = vpop.xlane.xlu1 %2823  ;;  %v2764_v24 = vpop.xlane.xlu0 %2763 }
 0x3d5   : > { %v2781_v27 = vadd.f32 %v2780_v58, %v2779_v23  ;;  %v2790_v19 = vadd.f32 %v2789_v30, %v2788_v22  ;;  %v2865_v35 = vadd.f32 %v2864_v42, %v2824_v38  ;;  %v2795_v20 = vadd.f32 %v2794_v54, %v2764_v24 }
 0x3d7   : > { %v2897_v51 = vmul.f32 0.00043402778, %v2781_v27  ;;  %v2791_v44 = vrot.slane %v2790_v19, 1  ;;  %v2866_v33 = vrot.slane %v2865_v35, 4 }
 0x3d8   : > { %v2860_v5 = vpop.xlane.xlu1 %2859  ;;  %v2767_v39 = vpop.xlane.xlu0 %2766 }
 0x3d9   : > { %2901 = vst.msk [vmem:[%s7016_s22] sm:$0x1] %vm2900_vm0, %v2897_v51  ;;  %v2792_v52 = vadd.f32 %v2791_v44, %v2790_v19  ;;  %v2867_v62 = vadd.f32 %v2866_v33, %v2865_v35  ;;  %v2887_v15 = vadd.f32 %v2886_v26, %v2860_v5  ;;  %v2796_v47 = vadd.f32 %v2795_v20, %v2767_v39 }
 0x3db   : > { %v2898_v48 = vmul.f32 0.00043402778, %v2792_v52  ;;  %v2868_v3 = vrot.slane %v2867_v62, 2  ;;  %v2888_v56 = vrot.slane %v2887_v15, 4 }
 0x3dc   : > { %v2770_v55 = vpop.xlane.xlu0 %2769 }
 0x3dd   : > { %2902 = vst.msk [vmem:[%s7016_s22 + $0x1] sm:$0x1] %vm2900_vm0, %v2898_v48  ;;  %v2869_v61 = vadd.f32 %v2868_v3, %v2867_v62  ;;  %v2889_v53 = vadd.f32 %v2888_v56, %v2887_v15  ;;  %v2797_v9 = vadd.f32 %v2796_v47, %v2770_v55 }
 0x3df   : > { %v2870_v18 = vrot.slane %v2869_v61, 1  ;;  %v2890_v14 = vrot.slane %v2889_v53, 2  ;;  %v2798_v63 = vrot.slane %v2797_v9, 4 }
 0x3e0   : > { %v2842_v59 = vpop.xlane.xlu0 %2841 }
 0x3e1   : > { %v2871_v1 = vadd.f32 %v2870_v18, %v2869_v61  ;;  %v2891_v29 = vadd.f32 %v2890_v14, %v2889_v53  ;;  %v2799_v8 = vadd.f32 %v2798_v63, %v2797_v9  ;;  %v2876_v7 = vadd.f32 %v2875_v25, %v2842_v59 }
 0x3e3   : > { %v2904_v13 = vmul.f32 0.00043402778, %v2871_v1  ;;  %v2892_v21 = vrot.slane %v2891_v29, 1  ;;  %v2800_v50 = vrot.slane %v2799_v8, 2  ;;  %v2877_v45 = vrot.slane %v2876_v7, 4 }
 0x3e5   : > { %2907 = vst.msk [vmem:[%s440_s25] sm:$0x1] %vm2900_vm0, %v2904_v13  ;;  %v2893_v31 = vadd.f32 %v2892_v21, %v2891_v29  ;;  %v2801_v12 = vadd.f32 %v2800_v50, %v2799_v8  ;;  %v2878_v43 = vadd.f32 %v2877_v45, %v2876_v7 }
 0x3e7   : > { %v2906_v37 = vmul.f32 0.00043402778, %v2893_v31  ;;  %v2802_v36 = vrot.slane %v2801_v12, 1  ;;  %v2879_v0 = vrot.slane %v2878_v43, 2 }
 0x3e9   : > { %2909 = vst.msk [vmem:[%s440_s25 + $0x2] sm:$0x1] %vm2900_vm0, %v2906_v37  ;;  %v2803_v17 = vadd.f32 %v2802_v36, %v2801_v12  ;;  %v2880_v46 = vadd.f32 %v2879_v0, %v2878_v43 }
 0x3eb   : > { %v2899_v11 = vmul.f32 0.00043402778, %v2803_v17  ;;  %v2881_v57 = vrot.slane %v2880_v46, 1 }
 0x3ed   : > { %2903 = vst.msk [vmem:[%s7016_s22 + $0x2] sm:$0x1] %vm2900_vm0, %v2899_v11  ;;  %v2882_v28 = vadd.f32 %v2881_v57, %v2880_v46 }
 0x3ef   : > { %v2905_v2 = vmul.f32 0.00043402778, %v2882_v28 }
 0x3f1   : > { %2908 = vst.msk [vmem:[%s440_s25 + $0x1] sm:$0x1] %vm2900_vm0, %v2905_v2 }
 0x407   : > { %v4707_v10 = vpop.f32.mrb[180].mxu1 }
 0x408   : > { %v3957_v40 = vpack.c.bf16 %v4707_v10, %v4707_v10  ;;  %v3099_v23 = vpop.f32.mrb[181].mxu1 }
 0x409   : > { %v3955_v22 = vpack.c.bf16 %v3099_v23, %v3099_v23  ;;  %v4708_v6 = vpop.f32.mrb[182].mxu1 }
 0x40a   : > { %3251 = vst.msk [vmem:[%s7039_s17 + $0x8] sm:$0xf] %vm3248_vm10, %v3957_v40  ;;  %v3102_v42 = vpop.f32.mrb[183].mxu1 }
 0x40b   : > { %3249 = vst.msk [vmem:[%s7039_s17] sm:$0xf] %vm3248_vm10, %v3955_v22  ;;  %v3956_v58 = vpack.c.bf16 %v3102_v42, %v3102_v42 }
 0x40d   : > { %3250 = vst.msk [vmem:[%s7039_s17 + $0x4] sm:$0xf] %vm3248_vm10, %v3956_v58 }
 0x414   : > { %v4717_v30 = vpop.f32.mrb[184].mxu1 }
 0x415   : > { %v3960_v41 = vpack.c.bf16 %v4717_v30, %v4717_v30  ;;  %v3147_v60 = vpop.f32.mrb[185].mxu1 }
 0x416   : > { %v3958_v38 = vpack.c.bf16 %v3147_v60, %v3147_v60  ;;  %v4718_v24 = vpop.f32.mrb[186].mxu1 }
 0x417   : > { %3254 = vst.msk [vmem:[%s7039_s17 + $0x14] sm:$0xf] %vm3248_vm10, %v3960_v41  ;;  %v3150_v27 = vpop.f32.mrb[187].mxu1 }
 0x418   : > { %3252 = vst.msk [vmem:[%s7039_s17 + $0xc] sm:$0xf] %vm3248_vm10, %v3958_v38  ;;  %v3959_v19 = vpack.c.bf16 %v3150_v27, %v3150_v27 }
 0x41a   : > { %3253 = vst.msk [vmem:[%s7039_s17 + $0x10] sm:$0xf] %vm3248_vm10, %v3959_v19 }
 0x42c   : > { %v4727_v35 = vpop.f32.mrb[188].mxu1 }
 0x42d   : > { %v3963_v26 = vpack.c.bf16 %v4727_v35, %v4727_v35  ;;  %v3195_v51 = vpop.f32.mrb[189].mxu1 }
 0x42e   : > { %v3961_v44 = vpack.c.bf16 %v3195_v51, %v3195_v51  ;;  %v4728_v54 = vpop.f32.mrb[190].mxu1 }
 0x42f   : > { %3257 = vst.msk [vmem:[%s7039_s17 + $0x20] sm:$0xf] %vm3248_vm10, %v3963_v26  ;;  %v3198_v33 = vpop.f32.mrb[191].mxu1 }
 0x430   : > { %3255 = vst.msk [vmem:[%s7039_s17 + $0x18] sm:$0xf] %vm3248_vm10, %v3961_v44  ;;  %v3962_v16 = vpack.c.bf16 %v3198_v33, %v3198_v33 }
 0x432   : > { %3256 = vst.msk [vmem:[%s7039_s17 + $0x1c] sm:$0xf] %vm3248_vm10, %v3962_v16 }
 0x438   : > { %v3292_v5 = vpop.f32.mrb[192].mxu1 }
 0x439   : > { %v4737_v39 = vpop.f32.mrb[193].mxu1 }
 0x43a   : > { %v3295_v52 = vpop.f32.mrb[194].mxu1 }
 0x43b   : > { %v3363_v62 = vpack.c.bf16 %v3295_v52, %v3292_v5  ;;  %v4738_v20 = vpop.f32.mrb[195].mxu1 }
 0x43d   : > { %4771 = vmatprep.subr.bf16.mxu0 %v3363_v62 }
 0x43e   : > { %4772 = vmatpush3.bf16.msra.mxu0 %v3363_v62 }
 0x440   : > { %v3300_v15 = vpop.f32.mrb[196].mxu1 }
 0x441   : > { %v4741_v34 = vpop.f32.mrb[197].mxu1 }
 0x442   : > { %v3303_v48 = vpop.f32.mrb[198].mxu1 }
 0x443   : > { %v3364_v3 = vpack.c.bf16 %v3303_v48, %v3300_v15  ;;  %v4742_v56 = vpop.f32.mrb[199].mxu1 }
 0x445   : > { %4773 = vmatprep.subr.bf16.mxu0 %v3364_v3 }
 0x446   : > { %4774 = vmatpush3.bf16.msra.mxu0 %v3364_v3 }
 0x448   : > { %v3308_v47 = vpop.f32.mrb[200].mxu1 }
 0x449   : > { %v4745_v55 = vpop.f32.mrb[201].mxu1 }
 0x44a   : > { %v3311_v32 = vpop.f32.mrb[202].mxu1 }
 0x44b   : > { %v3365_v61 = vpack.c.bf16 %v3311_v32, %v3308_v47  ;;  %v4746_v53 = vpop.f32.mrb[203].mxu1 }
 0x44d   : > { %4775 = vmatprep.subr.bf16.mxu0 %v3365_v61 }
 0x44e   : > { %4776 = vmatpush3.bf16.msra.mxu0 %v3365_v61 }
 0x450   : > { %v3316_v9 = vpop.f32.mrb[204].mxu1 }
 0x451   : > { %v4749_v25 = vpop.f32.mrb[205].mxu1  ;;  %4778 = vmatmul.mubr.msk.bf16.vlgmr.msra.gmra.mrb[216].mxu0 %vm523_vm1, %v6881_v4 }
 0x452   : > { %v3319_v18 = vpop.f32.mrb[206].mxu1  ;;  %4787 = vmatprep.mubr.msk.bf16.mxu0 %vm523_vm1, %v6911_v49 }
 0x453   : > { %v3366_v14 = vpack.c.bf16 %v3319_v18, %v3316_v9  ;;  %v4750_v63 = vpop.f32.mrb[207].mxu1 }
 0x455   : > { %4781 = vmatprep.subr.bf16.mxu0 %v3366_v14 }
 0x456   : > { %4782 = vmatpush3.bf16.msra.mxu0 %v3366_v14 }
 0x458   : > { %v3324_v59 = vpop.f32.mrb[208].mxu1 }
 0x459   : > { %v4753_v1 = vpop.f32.mrb[209].mxu1 }
 0x45a   : > { %v3327_v29 = vpop.f32.mrb[210].mxu1 }
 0x45b   : > { %v3367_v8 = vpack.c.bf16 %v3327_v29, %v3324_v59  ;;  %v4754_v7 = vpop.f32.mrb[211].mxu1 }
 0x45d   : > { %4783 = vmatprep.subr.bf16.mxu0 %v3367_v8 }
 0x45e   : > { %4784 = vmatpush3.bf16.msra.mxu0 %v3367_v8 }
 0x460   : > { %v3332_v13 = vpop.f32.mrb[212].mxu1 }
 0x461   : > { %v4757_v21 = vpop.f32.mrb[213].mxu1 }
 0x462   : > { %v3335_v50 = vpop.f32.mrb[214].mxu1 }
 0x463   : > { %v3368_v45 = vpack.c.bf16 %v3335_v50, %v3332_v13  ;;  %v4758_v31 = vpop.f32.mrb[215].mxu1 }
 0x465   : > { %4785 = vmatprep.subr.bf16.mxu0 %v3368_v45 }
 0x466   : > { %4786 = vmatpush3.bf16.msra.mxu0 %v3368_v45 }
 0x468   : > { %v3340_v12 = vpop.f32.mrb[216].mxu1 }
 0x469   : > { %v4761_v43 = vpop.f32.mrb[217].mxu1  ;;  %4788 = vmatmul.mubr.msk.bf16.vlgmr.msra.gmra.mrb[220].mxu0 %vm523_vm1, %v6881_v4 }
 0x46a   : > { %v3343_v37 = vpop.f32.mrb[218].mxu1  ;;  %4797 = vmatprep.mubr.msk.bf16.mxu0 %vm523_vm1, %v6911_v49 }
 0x46b   : > { %v3369_v36 = vpack.c.bf16 %v3343_v37, %v3340_v12  ;;  %v4762_v0 = vpop.f32.mrb[219].mxu1 }
 0x46d   : > { %4791 = vmatprep.subr.bf16.mxu0 %v3369_v36 }
 0x46e   : > { %4792 = vmatpush3.bf16.msra.mxu0 %v3369_v36 }
 0x470   : > { %v3348_v17 = vpop.f32.mrb[220].mxu1 }
 0x471   : > { %v4765_v46 = vpop.f32.mrb[221].mxu1 }
 0x472   : > { %v3351_v11 = vpop.f32.mrb[222].mxu1 }
 0x473   : > { %v3370_v57 = vpack.c.bf16 %v3351_v11, %v3348_v17  ;;  %v4766_v28 = vpop.f32.mrb[223].mxu1 }
 0x475   : > { %4793 = vmatprep.subr.bf16.mxu0 %v3370_v57 }
 0x476   : > { %4794 = vmatpush3.bf16.msra.mxu0 %v3370_v57 }
 0x478   : > { %v3356_v2 = vpop.f32.mrb[224].mxu1 }
 0x479   : > { %v4769_v10 = vpop.f32.mrb[225].mxu1 }
 0x47a   : > { %v3359_v40 = vpop.f32.mrb[226].mxu1 }
 0x47b   : > { %v3371_v49 = vpack.c.bf16 %v3359_v40, %v3356_v2  ;;  %v4770_v23 = vpop.f32.mrb[227].mxu1 }
 0x47d   : > { %4795 = vmatprep.subr.bf16.mxu0 %v3371_v49 }
 0x47e   : > { %4796 = vmatpush3.bf16.msra.mxu0 %v3371_v49 }
 0x481   : > { %4798 = vmatmul.mubr.msk.bf16.vlgmr.msra.gmra.mrb[224].mxu0 %vm523_vm1, %v6881_v4 }
 0x482   : > { %5112 = shalt.err (!%p5109_p8)
}
 0x483   : > { %s5113_s29 = scalar_lea.hbm %s7076_s24, 576  ;;  %s5117_s23 = scalar_lea.hbm %s7180_s8, 1152 }
 0x484   : > { %p5114_p12 = scmp.ne.s32.totalorder %s7076_s24, %s5113_s29  ;;  %p5118_p11 = scmp.lt.u32.totalorder %s7076_s24, %s7180_s8 }
 0x485   : > { %p5119_p13 = scmp.lt.u32.totalorder %s5117_s23, %s5113_s29  ;;  %p5121_p7 = scmp.lt.u32.totalorder %s5113_s29, %s7076_s24 }
 0x486   : > { %p5115_p0 = pnand %p5114_p12, %p5353_p10 }
 0x487   : > { %p5120_p3 = por %p5119_p13, %p5118_p11 }
 0x488   : > { %p5116_p4 = pneg %p5115_p0 }
 0x489   : > { %p5122_p9 = por %p5121_p7, %p5120_p3 }
 0x48b   : > { %p5123_p1 = pnand %p5122_p9, %p5116_p4 }
 0x48d   : > { %5126 = shalt.err (!%p5123_p1)
}
 0x48e   : > { %s5217_s21 = smov 64   ;;  %s5218_s27 = smov 4  }
 0x48f   : > { %4817 = dma.vmem_to_hbm [thread:$0]  (%p5353_p10), %s7078_s15, 576, %s7076_s24, %s3573_s11, %s5217_s21, %s5217_s21, %s5218_s27  }
 0x490   : > { %s429_s14 = scalar_lea.vmem [#allocation9], %s4806_s0  ;;  %s7122_s11 = scalar_lea.hbm %s7181_s9, %s4844_s19 }
 0x491   : > { %s3617_s0 = sshll.u32 %s429_s14, 4  ;;  %s3578_s18 = scalar_lea.sflag [#allocation10], %s5452_s16  ;;  %s7124_s0 = int_to_ptr.vmem [resolvable:$true] %s3617_s0 }
 0x492   : > { %s5127_s20 = scalar_lea.vmem %s7124_s0, 576  ;;  %s5219_s26 = smov [#allocation9]  }
 0x493   : > { %p5128_p5 = scmp.ne.s32.totalorder %s7124_s0, %s5127_s20  ;;  %s5131_s13 = sshll.u32 %s5219_s26, 4  ;;  %s5132_s13 = int_to_ptr.vmem [resolvable:$false] %s5131_s13 }
 0x494   : > { %s5133_s29 = scalar_lea.vmem %s5132_s13, 1152  ;;  %p5134_p8 = scmp.lt.s32.totalorder %s7124_s0, %s5132_s13 }
 0x495   : > { %p5129_p2 = pnand %p5128_p5, %p5353_p10  ;;  %p5135_p12 = scmp.lt.s32.totalorder %s5133_s29, %s5127_s20 }
 0x497   : > { %p5130_p6 = pneg %p5129_p2  ;;  %p5136_p0 = por %p5135_p12, %p5134_p8 }
 0x499   : > { %p5137_p4 = pnand %p5136_p0, %p5130_p6 }
 0x524   : > { %v4779_v4 = vpop.f32.mrb[216].mxu0 }
 0x525   : > { %v3966_v22 = vpack.c.bf16 %v4779_v4, %v4779_v4  ;;  %v3406_v6 = vpop.f32.mrb[217].mxu0 }
 0x526   : > { %v3964_v42 = vpack.c.bf16 %v3406_v6, %v3406_v6  ;;  %v4780_v58 = vpop.f32.mrb[218].mxu0 }
 0x527   : > { %3557 = vst.msk [vmem:[%s429_s14 + $0x8] sm:$0xf] %vm3248_vm10, %v3966_v22  ;;  %v3409_v30 = vpop.f32.mrb[219].mxu0 }
 0x528   : > { %3555 = vst.msk [vmem:[%s429_s14] sm:$0xf] %vm3248_vm10, %v3964_v42  ;;  %v3965_v41 = vpack.c.bf16 %v3409_v30, %v3409_v30 }
 0x52a   : > { %3556 = vst.msk [vmem:[%s429_s14 + $0x4] sm:$0xf] %vm3248_vm10, %v3965_v41 }
 0x53c   : > { %v4789_v60 = vpop.f32.mrb[220].mxu0 }
 0x53d   : > { %v3969_v38 = vpack.c.bf16 %v4789_v60, %v4789_v60  ;;  %v3454_v24 = vpop.f32.mrb[221].mxu0 }
 0x53e   : > { %v3967_v27 = vpack.c.bf16 %v3454_v24, %v3454_v24  ;;  %v4790_v19 = vpop.f32.mrb[222].mxu0 }
 0x53f   : > { %3560 = vst.msk [vmem:[%s429_s14 + $0x14] sm:$0xf] %vm3248_vm10, %v3969_v38  ;;  %v3457_v35 = vpop.f32.mrb[223].mxu0 }
 0x540   : > { %3558 = vst.msk [vmem:[%s429_s14 + $0xc] sm:$0xf] %vm3248_vm10, %v3967_v27  ;;  %v3968_v26 = vpack.c.bf16 %v3457_v35, %v3457_v35 }
 0x542   : > { %3559 = vst.msk [vmem:[%s429_s14 + $0x10] sm:$0xf] %vm3248_vm10, %v3968_v26 }
 0x554   : > { %v4799_v51 = vpop.f32.mrb[224].mxu0 }
 0x555   : > { %v3972_v44 = vpack.c.bf16 %v4799_v51, %v4799_v51  ;;  %v3502_v54 = vpop.f32.mrb[225].mxu0 }
 0x556   : > { %v3970_v33 = vpack.c.bf16 %v3502_v54, %v3502_v54  ;;  %v4800_v16 = vpop.f32.mrb[226].mxu0 }
 0x557   : > { %3563 = vst.msk [vmem:[%s429_s14 + $0x20] sm:$0xf] %vm3248_vm10, %v3972_v44  ;;  %v3505_v5 = vpop.f32.mrb[227].mxu0 }
 0x558   : > { %3561 = vst.msk [vmem:[%s429_s14 + $0x18] sm:$0xf] %vm3248_vm10, %v3970_v33  ;;  %v3971_v39 = vpack.c.bf16 %v3505_v5, %v3505_v5 }
 0x55a   : > { %3562 = vst.msk [vmem:[%s429_s14 + $0x1c] sm:$0xf] %vm3248_vm10, %v3971_v39 }
 0x55b   : > { %5140 = shalt.err (!%p5137_p4)
}
 0x55c   : > { %s5141_s19 = scalar_lea.hbm %s7122_s11, 576  ;;  %s5145_s23 = scalar_lea.hbm %s7181_s9, 1152 }
 0x55d   : > { %p5142_p11 = scmp.ne.s32.totalorder %s7122_s11, %s5141_s19  ;;  %p5146_p7 = scmp.lt.u32.totalorder %s7122_s11, %s7181_s9 }
 0x55e   : > { %p5147_p9 = scmp.lt.u32.totalorder %s5145_s23, %s5141_s19  ;;  %p5149_p5 = scmp.lt.u32.totalorder %s5141_s19, %s7122_s11 }
 0x55f   : > { %p5143_p13 = pnand %p5142_p11, %p5353_p10 }
 0x560   : > { %p5148_p1 = por %p5147_p9, %p5146_p7 }
 0x561   : > { %p5144_p3 = pneg %p5143_p13 }
 0x562   : > { %p5150_p2 = por %p5149_p5, %p5148_p1 }
 0x564   : > { %p5151_p6 = pnand %p5150_p2, %p5144_p3 }
 0x566   : > { %5154 = shalt.err (!%p5151_p6)
}
 0x567   : > { %4818 = dma.vmem_to_hbm [thread:$0]  (%p5353_p10), %s7124_s0, 576, %s7122_s11, %s3578_s18, %s5217_s21, %s5217_s21, %s5218_s27  }
 0x568 PF: > { %s7327_s14 = sld [smem:[#allocation17_spill]]  ;;  %s3646_s15 = sand.u32 1, %s5193_s30  }
 0x569   : > { %p7329_p12 = scmp.ge.s32.totalorder %s5205_s12, 2  ;;  %s3647_s24 = scalar_lea.sflag [#allocation4], %s3646_s15 }
 0x56e   : > { %p7328_p8 = scmp.ne.s32.totalorder %s7327_s14, 0 }
 0x570   : > { %p4833_p0 = pnand %p7329_p12, %p7328_p8 }
 0x572   : > { %5184 = dma.done.wait (!%p4833_p0), %s3647_s24, 576  }
 0x573   : > { %5186 = vsyncadd (!%p4833_p0), %s3647_s24, 4294966720  ;;  %s3656_s28 = scalar_lea.sflag [#allocation10], %s3646_s15 }
 0x574   : > { %5188 = dma.done.wait (!%p4833_p0), %s3656_s28, 576  }
 0x575   : > { %5190 = vsyncadd (!%p4833_p0), %s3656_s28, 4294966720  ;;  %s7330_s12 = sld [smem:[#allocation18_spill]]  ;;  %s7331_s16 = sld [smem:[#allocation16_spill]] }
 0x576   : > { %s7332_s11 = sld [smem:[#allocation19_spill]]  ;;  %s7333_s30 = smov %s5197_s10 }
 0x57b   : > { %p29_p10 = scmp.ge.s32.totalorder %s7330_s12, 4   ;;  %s7334_s10 = smov %s7331_s16 }
 0x57d   :  { %31 = sbr.rel (!%p29_p10) target bundleno = 12 (0xc), region = 147 }
 0x584   :  { %3661 = vsyncpa [#allocation3], 1 }
 0x585   :  { %3663 = vsyncpa [#allocation3 + $0x1], 1 }
 0x586   :  { %3664 = vsyncpa [#allocation6], 1 }
 0x587   :  { %3666 = vsyncpa [#allocation6 + $0x1], 1 }
 0x588   :  { %3667 = vsyncpa [#allocation4], 1 }
 0x589   :  { %3669 = vsyncpa [#allocation4 + $0x1], 1 }
 0x58a   :  { %3670 = vsyncpa [#allocation10], 1 }
 0x58b   :  { %3672 = vsyncpa [#allocation10 + $0x1], 1 }

</bundles_post_ra>
